<compile_context>
chip_gen: v7x
topology: tpu7x:2x2x1
jax: 0.10.0
libtpu: 0.0.40
codegen_flags: <defaults>
</compile_context>

<pallas_src>
import jax
import jax.numpy as jnp
from jax import lax
from jax.experimental import pallas as pl
from jax.experimental.pallas import tpu as pltpu

# ---- module constants (from gpt2.py) ----
N_EMBEDDING = 384
N_HEADS = 6
HEAD_SIZE = N_EMBEDDING // N_HEADS  # 64
BLOCK_SIZE = 256                    # max sequence length (causal mask buffer)


# -------------------- fused MHA kernel (one batch row per grid step) --------------------
def _mha_fused_kernel(x_ref, wqkv_ref, wproj_ref, bproj_ref, o_ref):
    # x_ref    : (1, T, C)   f32   current batch row
    # wqkv_ref : (C, 3*nh*H) bf16  [Q_all | K_all | V_all], head-major columns
    # wproj_ref: (nh*H, C)   bf16  output projection weight
    # bproj_ref: (1, C)      f32   output projection bias
    # o_ref    : (1, T, C)   f32   module output (lane-dense, C = 3*128)
    T = x_ref.shape[1]
    nh, H = N_HEADS, HEAD_SIZE
    DH = nh * H

    x = x_ref[0].astype(jnp.bfloat16)                               # (T, C)

    # Fused QKV projection for all heads: one (T,384)@(384,1152) MXU matmul.
    qkv = jnp.dot(
        x, wqkv_ref[...], preferred_element_type=jnp.float32
    ).astype(jnp.bfloat16)                                          # (T, 3*nh*H)

    # Causal additive mask, computed once per grid step, shared by all heads.
    row = lax.broadcasted_iota(jnp.int32, (T, T), 0)
    col = lax.broadcasted_iota(jnp.int32, (T, T), 1)
    mask_bias = jnp.where(col <= row, 0.0, -1e30).astype(jnp.float32)

    scale = jnp.bfloat16(HEAD_SIZE ** (-0.5))

    head_outs = []
    for h in range(nh):                    # nh = 6, fully unrolled at trace time
        q = qkv[:, h * H:(h + 1) * H] * scale                # (T, H) bf16
        k = qkv[:, DH + h * H:DH + (h + 1) * H]              # (T, H) bf16
        v = qkv[:, 2 * DH + h * H:2 * DH + (h + 1) * H]      # (T, H) bf16

        # scores = (q * scale) @ k.T  -- contract last dims; no k transpose copy.
        s = lax.dot_general(
            q, k, (((1,), (1,)), ((), ())),
            preferred_element_type=jnp.float32,
        )
        s = s + mask_bias                                    # (T, T) f32

        # numerically-stable softmax in f32
        m = jnp.max(s, axis=-1, keepdims=True)
        p = jnp.exp(s - m)
        denom = jnp.sum(p, axis=-1, keepdims=True)
        wei = p * pl.reciprocal(denom, approx=True)          # EUP slot, ~free

        head_outs.append(
            jnp.dot(wei.astype(jnp.bfloat16), v,
                    preferred_element_type=jnp.float32)      # (T, H) f32
            .astype(jnp.bfloat16)
        )

    # torch.cat over heads + output projection + bias, all in-kernel.
    heads_cat = jnp.concatenate(head_outs, axis=-1)                       # (T, nh*H) bf16
    y = jnp.dot(heads_cat, wproj_ref[...],
                preferred_element_type=jnp.float32) + bproj_ref[...]      # (T, C) f32
    o_ref[0] = y.astype(o_ref.dtype)


# -------------------- wrapper --------------------
def multi_head_attention(x, params):
    """Forward pass of MultiHeadAttention (dropout = identity / eval mode).

    x      : (B, T, C) f32
    params : (wq, wk, wv, wp, bp) with wq/wk/wv (n_heads, C, H) in y = x @ W
             layout, wp (n_heads*H, C), bp (1, C).
    """
    wq, wk, wv, wp, bp = params
    B, T, C = x.shape
    nh, H = wq.shape[0], wq.shape[-1]
    DH = nh * H

    # Pack the 18 small per-head weights into one lane-dense (C, 3*nh*H) slab
    # (head-major columns inside each of the Q / K / V groups); bf16 for the MXU.
    def _flat(w):                            # (nh, C, H) -> (C, nh*H)
        return jnp.transpose(w, (1, 0, 2)).reshape(C, nh * H)

    w_qkv = jnp.concatenate([_flat(wq), _flat(wk), _flat(wv)], axis=-1)
    w_qkv = w_qkv.astype(jnp.bfloat16)       # (C, 3*nh*H) = (384, 1152)
    w_proj = wp.astype(jnp.bfloat16)         # (nh*H, C)   = (384, 384)
    b_proj = bp.astype(jnp.float32)          # (1, C)

    return pl.pallas_call(
        _mha_fused_kernel,
        out_shape=jax.ShapeDtypeStruct((B, T, C), jnp.float32),
        grid_spec=pltpu.PrefetchScalarGridSpec(
            num_scalar_prefetch=0,
            grid=(B,),
            in_specs=[
                pl.BlockSpec((1, T, C), lambda b: (b, 0, 0)),
                pl.BlockSpec((C, 3 * DH), lambda b: (0, 0)),   # VMEM-resident
                pl.BlockSpec((DH, C), lambda b: (0, 0)),       # VMEM-resident
                pl.BlockSpec((1, C), lambda b: (0, 0)),
            ],
            out_specs=pl.BlockSpec((1, T, C), lambda b: (b, 0, 0)),
        ),
        compiler_params=pltpu.CompilerParams(
            dimension_semantics=("parallel",),   # v7x: 2 TCs split the batch
        ),
    )(x, w_qkv, w_proj, b_proj)


# -------------------- pure-JAX f32 reference --------------------
def reference(x, params):
    wq, wk, wv, wp, bp = params
    B, T, C = x.shape
    outs = []
    for h in range(N_HEADS):
        q = x @ wq[h]
        k = x @ wk[h]
        v = x @ wv[h]
        wei = (q @ jnp.swapaxes(k, -2, -1)) * (HEAD_SIZE ** -0.5)
        mask = jnp.tril(jnp.ones((T, T), dtype=bool))
        wei = jnp.where(mask, wei, -jnp.inf)
        wei = jax.nn.softmax(wei, axis=-1)
        outs.append(wei @ v)
    cat = jnp.concatenate(outs, axis=-1)
    return cat @ wp + bp


if __name__ == "__main__":
    key = jax.random.PRNGKey(0)
    B, T = 2, 64  # T <= block_size (256)
    C, H = N_EMBEDDING, HEAD_SIZE

    k1, k2, k3, k4, k5, k6 = jax.random.split(key, 6)
    x = jax.random.normal(k1, (B, T, C), dtype=jnp.float32)

    # deterministic synthetic parameters (PyTorch Linear weights, pre-transposed)
    scale_in = 1.0 / jnp.sqrt(jnp.float32(C))
    wq = jax.random.normal(k2, (N_HEADS, C, H), dtype=jnp.float32) * scale_in
    wk = jax.random.normal(k3, (N_HEADS, C, H), dtype=jnp.float32) * scale_in
    wv = jax.random.normal(k4, (N_HEADS, C, H), dtype=jnp.float32) * scale_in
    wp = jax.random.normal(k5, (N_HEADS * H, C), dtype=jnp.float32) / jnp.sqrt(
        jnp.float32(N_HEADS * H)
    )
    bp = jax.random.normal(k6, (1, C), dtype=jnp.float32) * 0.01

    params = (wq, wk, wv, wp, bp)

    out = multi_head_attention(x, params)
    out = jax.block_until_ready(out)

    ref = reference(x, params)
    assert out.shape == (B, T, C), out.shape
    # Kernel uses bf16 MXU inputs (f32 accumulation / softmax), so the tolerance
    # vs. the pure-f32 reference is looser than 1e-4.
    max_err = float(jnp.max(jnp.abs(out - ref)))
    assert jnp.allclose(out, ref, atol=5e-2, rtol=5e-2), max_err
    print("KERNEL_OK")
</pallas_src>

<mosaic_0001>
module attributes {stable_mosaic.version = 11 : i64} {
  func.func @_mha_fused_kernel(%arg0: i32, %arg1: memref<1x64x384xf32, #tpu.memory_space<vmem>>, %arg2: memref<384x1152xbf16, #tpu.memory_space<vmem>>, %arg3: memref<384x384xbf16, #tpu.memory_space<vmem>>, %arg4: memref<1x384xf32, #tpu.memory_space<vmem>>, %arg5: memref<1x64x384xf32, #tpu.memory_space<vmem>>) attributes {dimension_semantics = [#tpu.dimension_semantics<parallel>], iteration_bounds = array<i64: 2>, scalar_prefetch = 0 : i64, scratch_operands = 0 : i64, tpu.core_type = #tpu.core_type<tc>, window_params = [{transform_indices = @transform_0, window_bounds = array<i64: 1, 64, 384>}, {pipeline_mode = #tpu.pipeline_mode<synchronous>, transform_indices = @transform_1, window_bounds = array<i64: 384, 1152>}, {pipeline_mode = #tpu.pipeline_mode<synchronous>, transform_indices = @transform_2, window_bounds = array<i64: 384, 384>}, {pipeline_mode = #tpu.pipeline_mode<synchronous>, transform_indices = @transform_3, window_bounds = array<i64: 1, 384>}, {transform_indices = @transform_4, window_bounds = array<i64: 1, 64, 384>}]} {
    %c0 = arith.constant 0 : index
    %c0_0 = arith.constant 0 : index
    %c0_1 = arith.constant 0 : index
    %0 = vector.load %arg1[%c0, %c0_0, %c0_1] : memref<1x64x384xf32, #tpu.memory_space<vmem>>, vector<1x64x384xf32>
    %1 = vector.shape_cast %0 : vector<1x64x384xf32> to vector<64x384xf32>
    %2 = arith.truncf %1 : vector<64x384xf32> to vector<64x384xbf16>
    %c0_2 = arith.constant 0 : index
    %c0_3 = arith.constant 0 : index
    %3 = vector.load %arg2[%c0_2, %c0_3] : memref<384x1152xbf16, #tpu.memory_space<vmem>>, vector<384x1152xbf16>
    %cst = arith.constant dense<0.000000e+00> : vector<64x1152xf32>
    %4 = tpu.matmul %2, %3, %cst {dimension_numbers = #tpu.dot_dimension_numbers<[1], [0], [0], [1], [0, 0, 1, 1], [], []>} : vector<64x384xbf16>, vector<384x1152xbf16>, vector<64x1152xf32> -> vector<64x1152xf32>
    %5 = arith.truncf %4 : vector<64x1152xf32> to vector<64x1152xbf16>
    %6 = tpu.iota {dimensions = array<i32: 0>} : vector<64x64xi32>
    %7 = tpu.iota {dimensions = array<i32: 1>} : vector<64x64xi32>
    %8 = arith.cmpi sle, %7, %6 : vector<64x64xi32>
    %cst_4 = arith.constant 0.000000e+00 : f32
    %cst_5 = arith.constant -1.000000e+30 : f32
    %9 = vector.broadcast %cst_4 : f32 to vector<64x64xf32>
    %10 = vector.broadcast %cst_5 : f32 to vector<64x64xf32>
    %11 = arith.select %8, %9, %10 : vector<64x64xi1>, vector<64x64xf32>
    %12 = vector.extract_strided_slice %5 {offsets = [0, 0], sizes = [64, 64], strides = [1, 1]} : vector<64x1152xbf16> to vector<64x64xbf16>
    %cst_6 = arith.constant 1.250000e-01 : bf16
    %13 = vector.broadcast %cst_6 : bf16 to vector<64x64xbf16>
    %14 = arith.mulf %12, %13 : vector<64x64xbf16>
    %15 = vector.extract_strided_slice %5 {offsets = [0, 384], sizes = [64, 64], strides = [1, 1]} : vector<64x1152xbf16> to vector<64x64xbf16>
    %16 = vector.extract_strided_slice %5 {offsets = [0, 768], sizes = [64, 64], strides = [1, 1]} : vector<64x1152xbf16> to vector<64x64xbf16>
    %cst_7 = arith.constant dense<0.000000e+00> : vector<64x64xf32>
    %17 = tpu.matmul %14, %15, %cst_7 {dimension_numbers = #tpu.dot_dimension_numbers<[1], [1], [0], [0], [0, 0, 1, 0], [], []>} : vector<64x64xbf16>, vector<64x64xbf16>, vector<64x64xf32> -> vector<64x64xf32>
    %18 = arith.addf %17, %11 : vector<64x64xf32>
    %cst_8 = arith.constant dense<0xFF800000> : vector<64xf32>
    %19 = vector.multi_reduction <maximumf>, %18, %cst_8 [1] : vector<64x64xf32> to vector<64xf32>
    %20 = vector.shape_cast %19 : vector<64xf32> to vector<64x1xf32>
    %21 = vector.broadcast %20 : vector<64x1xf32> to vector<64x64xf32>
    %22 = arith.subf %18, %21 : vector<64x64xf32>
    %23 = math.exp %22 : vector<64x64xf32>
    %cst_9 = arith.constant dense<0.000000e+00> : vector<64xf32>
    %24 = vector.multi_reduction <add>, %23, %cst_9 [1] : vector<64x64xf32> to vector<64xf32>
    %25 = vector.shape_cast %24 : vector<64xf32> to vector<64x1xf32>
    %26 = tpu.reciprocal %25 {approx = true} : vector<64x1xf32> -> vector<64x1xf32>
    %27 = vector.broadcast %26 : vector<64x1xf32> to vector<64x64xf32>
    %28 = arith.mulf %23, %27 : vector<64x64xf32>
    %29 = arith.truncf %28 : vector<64x64xf32> to vector<64x64xbf16>
    %cst_10 = arith.constant dense<0.000000e+00> : vector<64x64xf32>
    %30 = tpu.matmul %29, %16, %cst_10 {dimension_numbers = #tpu.dot_dimension_numbers<[1], [0], [0], [1], [0, 0, 1, 1], [], []>} : vector<64x64xbf16>, vector<64x64xbf16>, vector<64x64xf32> -> vector<64x64xf32>
    %31 = arith.truncf %30 : vector<64x64xf32> to vector<64x64xbf16>
    %32 = vector.extract_strided_slice %5 {offsets = [0, 64], sizes = [64, 64], strides = [1, 1]} : vector<64x1152xbf16> to vector<64x64xbf16>
    %cst_11 = arith.constant 1.250000e-01 : bf16
    %33 = vector.broadcast %cst_11 : bf16 to vector<64x64xbf16>
    %34 = arith.mulf %32, %33 : vector<64x64xbf16>
    %35 = vector.extract_strided_slice %5 {offsets = [0, 448], sizes = [64, 64], strides = [1, 1]} : vector<64x1152xbf16> to vector<64x64xbf16>
    %36 = vector.extract_strided_slice %5 {offsets = [0, 832], sizes = [64, 64], strides = [1, 1]} : vector<64x1152xbf16> to vector<64x64xbf16>
    %cst_12 = arith.constant dense<0.000000e+00> : vector<64x64xf32>
    %37 = tpu.matmul %34, %35, %cst_12 {dimension_numbers = #tpu.dot_dimension_numbers<[1], [1], [0], [0], [0, 0, 1, 0], [], []>} : vector<64x64xbf16>, vector<64x64xbf16>, vector<64x64xf32> -> vector<64x64xf32>
    %38 = arith.addf %37, %11 : vector<64x64xf32>
    %cst_13 = arith.constant dense<0xFF800000> : vector<64xf32>
    %39 = vector.multi_reduction <maximumf>, %38, %cst_13 [1] : vector<64x64xf32> to vector<64xf32>
    %40 = vector.shape_cast %39 : vector<64xf32> to vector<64x1xf32>
    %41 = vector.broadcast %40 : vector<64x1xf32> to vector<64x64xf32>
    %42 = arith.subf %38, %41 : vector<64x64xf32>
    %43 = math.exp %42 : vector<64x64xf32>
    %cst_14 = arith.constant dense<0.000000e+00> : vector<64xf32>
    %44 = vector.multi_reduction <add>, %43, %cst_14 [1] : vector<64x64xf32> to vector<64xf32>
    %45 = vector.shape_cast %44 : vector<64xf32> to vector<64x1xf32>
    %46 = tpu.reciprocal %45 {approx = true} : vector<64x1xf32> -> vector<64x1xf32>
    %47 = vector.broadcast %46 : vector<64x1xf32> to vector<64x64xf32>
    %48 = arith.mulf %43, %47 : vector<64x64xf32>
    %49 = arith.truncf %48 : vector<64x64xf32> to vector<64x64xbf16>
    %cst_15 = arith.constant dense<0.000000e+00> : vector<64x64xf32>
    %50 = tpu.matmul %49, %36, %cst_15 {dimension_numbers = #tpu.dot_dimension_numbers<[1], [0], [0], [1], [0, 0, 1, 1], [], []>} : vector<64x64xbf16>, vector<64x64xbf16>, vector<64x64xf32> -> vector<64x64xf32>
    %51 = arith.truncf %50 : vector<64x64xf32> to vector<64x64xbf16>
    %52 = vector.extract_strided_slice %5 {offsets = [0, 128], sizes = [64, 64], strides = [1, 1]} : vector<64x1152xbf16> to vector<64x64xbf16>
    %cst_16 = arith.constant 1.250000e-01 : bf16
    %53 = vector.broadcast %cst_16 : bf16 to vector<64x64xbf16>
    %54 = arith.mulf %52, %53 : vector<64x64xbf16>
    %55 = vector.extract_strided_slice %5 {offsets = [0, 512], sizes = [64, 64], strides = [1, 1]} : vector<64x1152xbf16> to vector<64x64xbf16>
    %56 = vector.extract_strided_slice %5 {offsets = [0, 896], sizes = [64, 64], strides = [1, 1]} : vector<64x1152xbf16> to vector<64x64xbf16>
    %cst_17 = arith.constant dense<0.000000e+00> : vector<64x64xf32>
    %57 = tpu.matmul %54, %55, %cst_17 {dimension_numbers = #tpu.dot_dimension_numbers<[1], [1], [0], [0], [0, 0, 1, 0], [], []>} : vector<64x64xbf16>, vector<64x64xbf16>, vector<64x64xf32> -> vector<64x64xf32>
    %58 = arith.addf %57, %11 : vector<64x64xf32>
    %cst_18 = arith.constant dense<0xFF800000> : vector<64xf32>
    %59 = vector.multi_reduction <maximumf>, %58, %cst_18 [1] : vector<64x64xf32> to vector<64xf32>
    %60 = vector.shape_cast %59 : vector<64xf32> to vector<64x1xf32>
    %61 = vector.broadcast %60 : vector<64x1xf32> to vector<64x64xf32>
    %62 = arith.subf %58, %61 : vector<64x64xf32>
    %63 = math.exp %62 : vector<64x64xf32>
    %cst_19 = arith.constant dense<0.000000e+00> : vector<64xf32>
    %64 = vector.multi_reduction <add>, %63, %cst_19 [1] : vector<64x64xf32> to vector<64xf32>
    %65 = vector.shape_cast %64 : vector<64xf32> to vector<64x1xf32>
    %66 = tpu.reciprocal %65 {approx = true} : vector<64x1xf32> -> vector<64x1xf32>
    %67 = vector.broadcast %66 : vector<64x1xf32> to vector<64x64xf32>
    %68 = arith.mulf %63, %67 : vector<64x64xf32>
    %69 = arith.truncf %68 : vector<64x64xf32> to vector<64x64xbf16>
    %cst_20 = arith.constant dense<0.000000e+00> : vector<64x64xf32>
    %70 = tpu.matmul %69, %56, %cst_20 {dimension_numbers = #tpu.dot_dimension_numbers<[1], [0], [0], [1], [0, 0, 1, 1], [], []>} : vector<64x64xbf16>, vector<64x64xbf16>, vector<64x64xf32> -> vector<64x64xf32>
    %71 = arith.truncf %70 : vector<64x64xf32> to vector<64x64xbf16>
    %72 = vector.extract_strided_slice %5 {offsets = [0, 192], sizes = [64, 64], strides = [1, 1]} : vector<64x1152xbf16> to vector<64x64xbf16>
    %cst_21 = arith.constant 1.250000e-01 : bf16
    %73 = vector.broadcast %cst_21 : bf16 to vector<64x64xbf16>
    %74 = arith.mulf %72, %73 : vector<64x64xbf16>
    %75 = vector.extract_strided_slice %5 {offsets = [0, 576], sizes = [64, 64], strides = [1, 1]} : vector<64x1152xbf16> to vector<64x64xbf16>
    %76 = vector.extract_strided_slice %5 {offsets = [0, 960], sizes = [64, 64], strides = [1, 1]} : vector<64x1152xbf16> to vector<64x64xbf16>
    %cst_22 = arith.constant dense<0.000000e+00> : vector<64x64xf32>
    %77 = tpu.matmul %74, %75, %cst_22 {dimension_numbers = #tpu.dot_dimension_numbers<[1], [1], [0], [0], [0, 0, 1, 0], [], []>} : vector<64x64xbf16>, vector<64x64xbf16>, vector<64x64xf32> -> vector<64x64xf32>
    %78 = arith.addf %77, %11 : vector<64x64xf32>
    %cst_23 = arith.constant dense<0xFF800000> : vector<64xf32>
    %79 = vector.multi_reduction <maximumf>, %78, %cst_23 [1] : vector<64x64xf32> to vector<64xf32>
    %80 = vector.shape_cast %79 : vector<64xf32> to vector<64x1xf32>
    %81 = vector.broadcast %80 : vector<64x1xf32> to vector<64x64xf32>
    %82 = arith.subf %78, %81 : vector<64x64xf32>
    %83 = math.exp %82 : vector<64x64xf32>
    %cst_24 = arith.constant dense<0.000000e+00> : vector<64xf32>
    %84 = vector.multi_reduction <add>, %83, %cst_24 [1] : vector<64x64xf32> to vector<64xf32>
    %85 = vector.shape_cast %84 : vector<64xf32> to vector<64x1xf32>
    %86 = tpu.reciprocal %85 {approx = true} : vector<64x1xf32> -> vector<64x1xf32>
    %87 = vector.broadcast %86 : vector<64x1xf32> to vector<64x64xf32>
    %88 = arith.mulf %83, %87 : vector<64x64xf32>
    %89 = arith.truncf %88 : vector<64x64xf32> to vector<64x64xbf16>
    %cst_25 = arith.constant dense<0.000000e+00> : vector<64x64xf32>
    %90 = tpu.matmul %89, %76, %cst_25 {dimension_numbers = #tpu.dot_dimension_numbers<[1], [0], [0], [1], [0, 0, 1, 1], [], []>} : vector<64x64xbf16>, vector<64x64xbf16>, vector<64x64xf32> -> vector<64x64xf32>
    %91 = arith.truncf %90 : vector<64x64xf32> to vector<64x64xbf16>
    %92 = vector.extract_strided_slice %5 {offsets = [0, 256], sizes = [64, 64], strides = [1, 1]} : vector<64x1152xbf16> to vector<64x64xbf16>
    %cst_26 = arith.constant 1.250000e-01 : bf16
    %93 = vector.broadcast %cst_26 : bf16 to vector<64x64xbf16>
    %94 = arith.mulf %92, %93 : vector<64x64xbf16>
    %95 = vector.extract_strided_slice %5 {offsets = [0, 640], sizes = [64, 64], strides = [1, 1]} : vector<64x1152xbf16> to vector<64x64xbf16>
    %96 = vector.extract_strided_slice %5 {offsets = [0, 1024], sizes = [64, 64], strides = [1, 1]} : vector<64x1152xbf16> to vector<64x64xbf16>
    %cst_27 = arith.constant dense<0.000000e+00> : vector<64x64xf32>
    %97 = tpu.matmul %94, %95, %cst_27 {dimension_numbers = #tpu.dot_dimension_numbers<[1], [1], [0], [0], [0, 0, 1, 0], [], []>} : vector<64x64xbf16>, vector<64x64xbf16>, vector<64x64xf32> -> vector<64x64xf32>
    %98 = arith.addf %97, %11 : vector<64x64xf32>
    %cst_28 = arith.constant dense<0xFF800000> : vector<64xf32>
    %99 = vector.multi_reduction <maximumf>, %98, %cst_28 [1] : vector<64x64xf32> to vector<64xf32>
    %100 = vector.shape_cast %99 : vector<64xf32> to vector<64x1xf32>
    %101 = vector.broadcast %100 : vector<64x1xf32> to vector<64x64xf32>
    %102 = arith.subf %98, %101 : vector<64x64xf32>
    %103 = math.exp %102 : vector<64x64xf32>
    %cst_29 = arith.constant dense<0.000000e+00> : vector<64xf32>
    %104 = vector.multi_reduction <add>, %103, %cst_29 [1] : vector<64x64xf32> to vector<64xf32>
    %105 = vector.shape_cast %104 : vector<64xf32> to vector<64x1xf32>
    %106 = tpu.reciprocal %105 {approx = true} : vector<64x1xf32> -> vector<64x1xf32>
    %107 = vector.broadcast %106 : vector<64x1xf32> to vector<64x64xf32>
    %108 = arith.mulf %103, %107 : vector<64x64xf32>
    %109 = arith.truncf %108 : vector<64x64xf32> to vector<64x64xbf16>
    %cst_30 = arith.constant dense<0.000000e+00> : vector<64x64xf32>
    %110 = tpu.matmul %109, %96, %cst_30 {dimension_numbers = #tpu.dot_dimension_numbers<[1], [0], [0], [1], [0, 0, 1, 1], [], []>} : vector<64x64xbf16>, vector<64x64xbf16>, vector<64x64xf32> -> vector<64x64xf32>
    %111 = arith.truncf %110 : vector<64x64xf32> to vector<64x64xbf16>
    %112 = vector.extract_strided_slice %5 {offsets = [0, 320], sizes = [64, 64], strides = [1, 1]} : vector<64x1152xbf16> to vector<64x64xbf16>
    %cst_31 = arith.constant 1.250000e-01 : bf16
    %113 = vector.broadcast %cst_31 : bf16 to vector<64x64xbf16>
    %114 = arith.mulf %112, %113 : vector<64x64xbf16>
    %115 = vector.extract_strided_slice %5 {offsets = [0, 704], sizes = [64, 64], strides = [1, 1]} : vector<64x1152xbf16> to vector<64x64xbf16>
    %116 = vector.extract_strided_slice %5 {offsets = [0, 1088], sizes = [64, 64], strides = [1, 1]} : vector<64x1152xbf16> to vector<64x64xbf16>
    %cst_32 = arith.constant dense<0.000000e+00> : vector<64x64xf32>
    %117 = tpu.matmul %114, %115, %cst_32 {dimension_numbers = #tpu.dot_dimension_numbers<[1], [1], [0], [0], [0, 0, 1, 0], [], []>} : vector<64x64xbf16>, vector<64x64xbf16>, vector<64x64xf32> -> vector<64x64xf32>
    %118 = arith.addf %117, %11 : vector<64x64xf32>
    %cst_33 = arith.constant dense<0xFF800000> : vector<64xf32>
    %119 = vector.multi_reduction <maximumf>, %118, %cst_33 [1] : vector<64x64xf32> to vector<64xf32>
    %120 = vector.shape_cast %119 : vector<64xf32> to vector<64x1xf32>
    %121 = vector.broadcast %120 : vector<64x1xf32> to vector<64x64xf32>
    %122 = arith.subf %118, %121 : vector<64x64xf32>
    %123 = math.exp %122 : vector<64x64xf32>
    %cst_34 = arith.constant dense<0.000000e+00> : vector<64xf32>
    %124 = vector.multi_reduction <add>, %123, %cst_34 [1] : vector<64x64xf32> to vector<64xf32>
    %125 = vector.shape_cast %124 : vector<64xf32> to vector<64x1xf32>
    %126 = tpu.reciprocal %125 {approx = true} : vector<64x1xf32> -> vector<64x1xf32>
    %127 = vector.broadcast %126 : vector<64x1xf32> to vector<64x64xf32>
    %128 = arith.mulf %123, %127 : vector<64x64xf32>
    %129 = arith.truncf %128 : vector<64x64xf32> to vector<64x64xbf16>
    %cst_35 = arith.constant dense<0.000000e+00> : vector<64x64xf32>
    %130 = tpu.matmul %129, %116, %cst_35 {dimension_numbers = #tpu.dot_dimension_numbers<[1], [0], [0], [1], [0, 0, 1, 1], [], []>} : vector<64x64xbf16>, vector<64x64xbf16>, vector<64x64xf32> -> vector<64x64xf32>
    %131 = arith.truncf %130 : vector<64x64xf32> to vector<64x64xbf16>
    %132 = tpu.concatenate %31, %51, %71, %91, %111, %131 in 1 : vector<64x64xbf16>, vector<64x64xbf16>, vector<64x64xbf16>, vector<64x64xbf16>, vector<64x64xbf16>, vector<64x64xbf16> -> vector<64x384xbf16>
    %c0_36 = arith.constant 0 : index
    %c0_37 = arith.constant 0 : index
    %133 = vector.load %arg3[%c0_36, %c0_37] : memref<384x384xbf16, #tpu.memory_space<vmem>>, vector<384x384xbf16>
    %cst_38 = arith.constant dense<0.000000e+00> : vector<64x384xf32>
    %134 = tpu.matmul %132, %133, %cst_38 {dimension_numbers = #tpu.dot_dimension_numbers<[1], [0], [0], [1], [0, 0, 1, 1], [], []>} : vector<64x384xbf16>, vector<384x384xbf16>, vector<64x384xf32> -> vector<64x384xf32>
    %c0_39 = arith.constant 0 : index
    %c0_40 = arith.constant 0 : index
    %135 = vector.load %arg4[%c0_39, %c0_40] : memref<1x384xf32, #tpu.memory_space<vmem>>, vector<1x384xf32>
    %136 = vector.broadcast %135 : vector<1x384xf32> to vector<64x384xf32>
    %137 = arith.addf %134, %136 : vector<64x384xf32>
    %c0_41 = arith.constant 0 : index
    %c0_42 = arith.constant 0 : index
    %c0_43 = arith.constant 0 : index
    %138 = vector.load %arg5[%c0_41, %c0_42, %c0_43] : memref<1x64x384xf32, #tpu.memory_space<vmem>>, vector<1x64x384xf32>
    %139 = vector.shape_cast %138 : vector<1x64x384xf32> to vector<64x384xf32>
    %140 = vector.shape_cast %137 : vector<64x384xf32> to vector<1x64x384xf32>
    tpu.vector_store %arg5[%c0_41, %c0_42, %c0_43], %140 {strides = array<i32>} : memref<1x64x384xf32, #tpu.memory_space<vmem>>, vector<1x64x384xf32>,
    return
  }
  func.func @transform_0(%arg0: i32) -> (i32, i32, i32) {
    %c0_i32 = arith.constant 0 : i32
    %c0_i32_0 = arith.constant 0 : i32
    %c0_i32_1 = arith.constant 0 : i32
    return %arg0, %c0_i32, %c0_i32_0 : i32, i32, i32
  }
  func.func @transform_1(%arg0: i32) -> (i32, i32) {
    %c0_i32 = arith.constant 0 : i32
    %c0_i32_0 = arith.constant 0 : i32
    %c0_i32_1 = arith.constant 0 : i32
    return %c0_i32, %c0_i32_0 : i32, i32
  }
  func.func @transform_2(%arg0: i32) -> (i32, i32) {
    %c0_i32 = arith.constant 0 : i32
    %c0_i32_0 = arith.constant 0 : i32
    %c0_i32_1 = arith.constant 0 : i32
    return %c0_i32, %c0_i32_0 : i32, i32
  }
  func.func @transform_3(%arg0: i32) -> (i32, i32) {
    %c0_i32 = arith.constant 0 : i32
    %c0_i32_0 = arith.constant 0 : i32
    %c0_i32_1 = arith.constant 0 : i32
    return %c0_i32, %c0_i32_0 : i32, i32
  }
  func.func @transform_4(%arg0: i32) -> (i32, i32, i32) {
    %c0_i32 = arith.constant 0 : i32
    %c0_i32_0 = arith.constant 0 : i32
    %c0_i32_1 = arith.constant 0 : i32
    return %arg0, %c0_i32, %c0_i32_0 : i32, i32, i32
  }
}

</mosaic_0001>

<bundles_post_ra>
// kernel: tpu_custom_call.1
= control target key start
LH: loop header
LB: loop body
LE: loop exit
PB: predicated region body
PF: predicated region fallthrough
CT: control target
= control target key end

     0   :  { %9 = vsyncpa [#allocation3], 0  ;;  %s8277_s0 = inlined_call_operand.hbm [shape: f32[2,64,384], index: 0, kind: input, shape index: {}]   ;;  %s8278_s1 = inlined_call_operand.hbm [shape: bf16[384,1152], index: 1, kind: input, shape index: {}]   ;;  %s8279_s2 = inlined_call_operand.hbm [shape: bf16[384,384], index: 2, kind: input, shape index: {}]   ;;  %s8280_s3 = inlined_call_operand.vmem [shape: f32[1,384], index: 3, kind: input, shape index: {}]   ;;  %s8281_s4 = inlined_call_operand.hbm [shape: f32[2,64,384], index: 4, kind: output, shape index: {}]  }
   0x1   :  { %11 = vsyncpa [#allocation3 + $0x1], 0 }
   0x2   :  { %12 = vsyncpa [#allocation6], 0 }
   0x3   :  { %13 = vsyncpa [#allocation4], 0 }
   0x4   :  { %15 = vsyncpa [#allocation4 + $0x1], 0  ;;  %s6900_s15 = smov 0   ;;  %s6902_s16 = smov 0  }
   0x5   :  { %s6904_s17 = smov 0   ;;  %s6906_s18 = smov 0  }
   0x6 LB: > { %s6921_s19 = sadd.s32 4294967295, %s6858_s18   ;;  %s5096_s20 = sadd.s32 4294967294, %s6858_s18   ;;  %s6858_s18 = sphi %s6906_s18, %s8410_s18   ;;  %s6854_s17 = sphi %s6904_s17, %s8409_s17   ;;  %s6850_s16 = sphi %s6902_s16, %s8408_s16   ;;  %s6846_s15 = sphi %s6900_s15, %s8407_s15  }
   0x7   : > { %p41_p0 = scmp.ne.s32.totalorder %s6850_s16, %s6846_s15  ;;  %p8282_p1 = scmp.eq.s32.totalorder %s6921_s19, 0 }
   0x8   : > { %p134_p3 = scmp.eq.s32.totalorder %s5096_s20, 1  ;;  %p5097_p5 = scmp.ge.s32.totalorder %s6858_s18, 1 }
   0x9   : > { %p6930_p4 = por %p8282_p1, %p41_p0  ;;  %p141_p7 = scmp.lt.s32.totalorder %s6858_s18, 3 }
   0xa   : > { %p6935_p6 = por %p134_p3, %p41_p0  ;;  %s6860_s24 = smov [#allocation5]  }
   0xb   : > { %s8315_s21 = scalar_select %p6930_p4, 1, 0 }
   0xc   : > { %s8316_s22 = scalar_select %p6935_p6, 1, 0 }
   0xd   : > { %p6940_p8 = pnand %p5097_p5, %p141_p7  ;;  %s153_s25 = sshll.u32 %s6860_s24, 4  ;;  %s6944_s25 = int_to_ptr.vmem [resolvable:$true] %s153_s25 }
   0xe   : > { %s6861_s27 = smov [#allocation7]   ;;  %s6702_s5 = scalar_lea.hbm %s8278_s1, 27648 }
   0xf   : > { %p6036_p9 = pneg %p6940_p8  ;;  %s166_s28 = sshll.u32 %s6861_s27, 4  ;;  %s6955_s28 = int_to_ptr.vmem [resolvable:$true] %s166_s28 }
  0x10   : > { %p6703_p12 = scmp.ne.s32.totalorder %s8278_s1, %s6702_s5  ;;  %p6709_p5 = scmp.lt.u32.totalorder %s6702_s5, %s8278_s1 }
  0x11   : > { %p6951_p11 = pnand %p6036_p9, %p8282_p1 }
  0x13   : > { %p6704_p13 = pneg %p6951_p11 }
  0x15   : > { %p6705_p0 = pnand %p6704_p13, %p6703_p12 }
  0x17   : > { %p6706_p3 = pneg %p6705_p0 }
  0x19   : > { %p6711_p7 = pnand %p6709_p5, %p6706_p3 }
  0x1b   : > { %6714 = shalt.err (!%p6711_p7)
}
  0x1c   : > { %s6715_s10 = scalar_lea.vmem %s6944_s25, 27648  ;;  %p6723_p2 = scmp.lt.s32.totalorder %s6944_s25, %s6944_s25 }
  0x1d   : > { %p6716_p9 = scmp.ne.s32.totalorder %s6944_s25, %s6715_s10  ;;  %p6724_p12 = scmp.lt.s32.totalorder %s6715_s10, %s6715_s10 }
  0x1f   : > { %p6718_p10 = pnand %p6716_p9, %p6704_p13  ;;  %p6725_p0 = por %p6724_p12, %p6723_p2 }
  0x21   : > { %p6719_p1 = pneg %p6718_p10 }
  0x23   : > { %p6726_p6 = pnand %p6725_p0, %p6719_p1 }
  0x25   : > { %6729 = shalt.err (!%p6726_p6)
}
  0x26   : > { %s6862_s11 = smov 576   ;;  %s6863_s12 = smov 36  }
  0x27   : > { %6039 = dma.hbm_to_vmem [thread:$0]  (!%p6951_p11), %s8278_s1, 27648, %s6944_s25, [#allocation6], %s6862_s11, %s6862_s11, %s6863_s12  }
  0x28   : > { %s6730_s27 = scalar_lea.hbm %s8279_s2, 9216 }
  0x29   : > { %p6731_p2 = scmp.ne.s32.totalorder %s8279_s2, %s6730_s27  ;;  %p6737_p10 = scmp.lt.u32.totalorder %s6730_s27, %s8279_s2 }
  0x2b   : > { %p6733_p1 = pnand %p6731_p2, %p6704_p13 }
  0x2d   : > { %p6734_p6 = pneg %p6733_p1 }
  0x2f   : > { %p6739_p3 = pnand %p6737_p10, %p6734_p6 }
  0x31   : > { %6742 = shalt.err (!%p6739_p3)
}
  0x32   : > { %s6743_s25 = scalar_lea.vmem %s6955_s28, 9216  ;;  %p6751_p12 = scmp.lt.s32.totalorder %s6955_s28, %s6955_s28 }
  0x33   : > { %p6744_p5 = scmp.ne.s32.totalorder %s6955_s28, %s6743_s25  ;;  %p6752_p0 = scmp.lt.s32.totalorder %s6743_s25, %s6743_s25 }
  0x35   : > { %p6746_p7 = pnand %p6744_p5, %p6704_p13  ;;  %p6753_p2 = por %p6752_p0, %p6751_p12 }
  0x37   : > { %p6747_p9 = pneg %p6746_p7 }
  0x39   : > { %p6754_p1 = pnand %p6753_p2, %p6747_p9 }
  0x3b   : > { %6757 = shalt.err (!%p6754_p1)
}
  0x3c   : > { %s6864_s7 = smov 192   ;;  %s6865_s8 = smov 12  }
  0x3d   : > { %6042 = dma.hbm_to_vmem [thread:$0]  (!%p6951_p11), %s8279_s2, 9216, %s6955_s28, [#allocation6], %s6864_s7, %s6864_s7, %s6865_s8  }
  0x3e   : > { %s7010_s11 = sadd.s32 1, %s6858_s18   ;;  %s28_s13 = sadd.s32 1, %s6854_s17 }
  0x3f   : > { %s25_s12 = ssub.s32 %s6858_s18, %s7010_s11  ;;  %p35_p6 = scmp.ne.s32.totalorder %s6854_s17, %s6850_s16 }
  0x40   : > { %p26_p13 = scmp.eq.s32.totalorder %s25_s12, 0  ;;  %p36_p10 = scmp.eq.s32.totalorder %s6858_s18, 0 }
  0x41   : > { %p8319_p5 = scmp.eq.s32.totalorder %s6921_s19, 1  ;;  %p6053_p9 = scmp.lt.s32.totalorder %s6858_s18, 2 }
  0x42   : > { %s7019_s14 = scalar_select %p26_p13, %s6854_s17, %s28_s13  }
  0x43   : > { %p37_p3 = por %p36_p10, %p35_p6  ;;  %p7023_p7 = por %p8319_p5, %p35_p6 }
  0x44   : > { %s183_s26 = sand.u32 1, %s6854_s17   ;;  %s6021_s28 = smul.u32 3072, %s6858_s18 }
  0x45   : > { %s8320_s20 = scalar_select %p7023_p7, 1, 0 }
  0x46   : > { %s6020_s24 = smul.u32 192, %s183_s26  ;;  %p7030_p11 = pnand %p6053_p9, %p37_p3 }
  0x47   : > { %s7037_s5 = scalar_lea.hbm %s8277_s0, %s6021_s28  ;;  %s7041_s7 = scalar_lea.sflag [#allocation3], %s183_s26 }
  0x48   : > { %s187_s6 = scalar_lea.vmem [#allocation2], %s6020_s24  ;;  %s6758_s8 = scalar_lea.hbm %s7037_s5, 3072 }
  0x49   : > { %s194_s25 = sshll.u32 %s187_s6, 4  ;;  %p6759_p12 = scmp.ne.s32.totalorder %s7037_s5, %s6758_s8  ;;  %s7039_s25 = int_to_ptr.vmem [resolvable:$true] %s194_s25 }
  0x4a   : > { %p6760_p0 = pneg %p7030_p11  ;;  %s6763_s12 = scalar_lea.hbm %s8277_s0, 6144 }
  0x4b   : > { %p6764_p13 = scmp.lt.u32.totalorder %s7037_s5, %s8277_s0  ;;  %p6765_p6 = scmp.lt.u32.totalorder %s6763_s12, %s6758_s8 }
  0x4c   : > { %p6761_p2 = pnand %p6760_p0, %p6759_p12  ;;  %p6767_p3 = scmp.lt.u32.totalorder %s6758_s8, %s7037_s5 }
  0x4d   : > { %p6766_p10 = por %p6765_p6, %p6764_p13 }
  0x4e   : > { %p6762_p1 = pneg %p6761_p2 }
  0x4f   : > { %p6768_p5 = por %p6767_p3, %p6766_p10 }
  0x51   : > { %p6769_p9 = pnand %p6768_p5, %p6762_p1 }
  0x53   : > { %6772 = shalt.err (!%p6769_p9)
}
  0x54   : > { %s6773_s26 = scalar_lea.vmem %s7039_s25, 3072  ;;  %s6866_s24 = smov [#allocation2]  }
  0x55   : > { %p6774_p12 = scmp.ne.s32.totalorder %s7039_s25, %s6773_s26  ;;  %s6778_s29 = sshll.u32 %s6866_s24, 4  ;;  %s6779_s29 = int_to_ptr.vmem [resolvable:$false] %s6778_s29 }
  0x56   : > { %s6780_s30 = scalar_lea.vmem %s6779_s29, 6144  ;;  %p6781_p4 = scmp.lt.s32.totalorder %s7039_s25, %s6779_s29 }
  0x57   : > { %p6776_p2 = pnand %p6774_p12, %p6760_p0  ;;  %p6782_p13 = scmp.lt.s32.totalorder %s6780_s30, %s6773_s26 }
  0x59   : > { %p6777_p7 = pneg %p6776_p2  ;;  %p6783_p6 = por %p6782_p13, %p6781_p4 }
  0x5b   : > { %p6784_p10 = pnand %p6783_p6, %p6777_p7 }
  0x5d   : > { %6787 = shalt.err (!%p6784_p10)
}
  0x5e   : > { %s6867_s6 = smov 384   ;;  %s6868_s8 = smov 24  }
  0x5f   : > { %6046 = dma.hbm_to_vmem [thread:$0]  (!%p7030_p11), %s7037_s5, 3072, %s7039_s25, %s7041_s7, %s6867_s6, %s6867_s6, %s6868_s8  }
  0x60   : > { %206 = sbr.rel (%p6940_p8) target bundleno = 4686 (0x124e), region = 36 }
  0x67   : > { %s7072_s9 = sand.u32 1, %s6850_s16   ;;  %p8322_p4 = scmp.ne.s32.totalorder %s8315_s21, 0 }
  0x68   : > { %s6022_s10 = smul.u32 192, %s7072_s9  ;;  %s209_s12 = scalar_lea.sflag [#allocation3], %s7072_s9 }
  0x6a   : > { %s7078_s13 = scalar_lea.vmem [#allocation2], %s6022_s10 }
  0x6b   : > { %6833 = dma.done.wait (%p8322_p4), %s209_s12, 3072  }
  0x6c   : > { %6835 = vsyncadd (%p8322_p4), %s209_s12, 4294964224  ;;  %p8323_p7 = scmp.eq.s32.totalorder %s6921_s19, 0 }
  0x6e   : > { %6837 = dma.done.wait (%p8323_p7), [#allocation6], 36864   ;;  %p8324_p8 = pmov %p8323_p7 }
  0x6f   : > { %v8285_v0 = vmov 0   ;;  %v6102_v1 = vld [vmem:[#allocation5 + $0x4] ss:$36 sps:$4 sm:$0xff]   ;;  %v6108_v5 = vld [vmem:[#allocation5 + $0x4c] ss:$36 sps:$4 sm:$0xff]   ;;  %v258_v58 = vld [vmem:[%s7078_s13 + $0x58] sm:$0xff] }
  0x70   : > { %6839 = vsyncadd (%p8324_p8), [#allocation6], 4294930432  ;;  %1732 = vmatprep.mubr.bf16.mxu1 %v8285_v0  ;;  %v6104_v2 = vld [vmem:[#allocation5 + $0x484] ss:$36 sps:$4 sm:$0xff]   ;;  %1627 = vmatprep.subr.bf16.mxu0 %v6102_v1  ;;  %v6110_v6 = vld [vmem:[#allocation5 + $0x4cc] ss:$36 sps:$4 sm:$0xff]  }
  0x71   : > { %v6106_v3 = vld [vmem:[#allocation5] ss:$36 sps:$4 sm:$0xff]   ;;  %1700 = vmatprep.subr.bf16.mxu1 %v6104_v2  ;;  %v6112_v7 = vld [vmem:[#allocation5 + $0x48] ss:$36 sps:$4 sm:$0xff]   ;;  %v6114_v9 = vld [vmem:[#allocation5 + $0x94] ss:$36 sps:$4 sm:$0xff]  }
  0x72   : > { %v6107_v4 = vld [vmem:[#allocation5 + $0x480] ss:$36 sps:$4 sm:$0xff]   ;;  %1628 = vmatpush1.bf16.msra.mxu0 %v6106_v3  ;;  %v6113_v8 = vld [vmem:[#allocation5 + $0x4c8] ss:$36 sps:$4 sm:$0xff]   ;;  %v6116_v10 = vld [vmem:[#allocation5 + $0x514] ss:$36 sps:$4 sm:$0xff]  }
  0x73   : > { %1701 = vmatpush1.bf16.msra.mxu1 %v6107_v4  ;;  %1629 = vmatprep.subr.bf16.mxu0 %v6108_v5  ;;  %v6118_v11 = vld [vmem:[#allocation5 + $0x90] ss:$36 sps:$4 sm:$0xff]   ;;  %v6120_v13 = vld [vmem:[#allocation5 + $0xdc] ss:$36 sps:$4 sm:$0xff]   ;;  %v6126_v17 = vld [vmem:[#allocation5 + $0x124] ss:$36 sps:$4 sm:$0xff]  }
  0x74   : > { %1702 = vmatprep.subr.bf16.mxu1 %v6110_v6  ;;  %v6119_v12 = vld [vmem:[#allocation5 + $0x510] ss:$36 sps:$4 sm:$0xff]   ;;  %v6122_v14 = vld [vmem:[#allocation5 + $0x55c] ss:$36 sps:$4 sm:$0xff]   ;;  %v6128_v18 = vld [vmem:[#allocation5 + $0x5a4] ss:$36 sps:$4 sm:$0xff]  }
  0x75   : > { %v6124_v15 = vld [vmem:[#allocation5 + $0xd8] ss:$36 sps:$4 sm:$0xff]   ;;  %v6130_v19 = vld [vmem:[#allocation5 + $0x120] ss:$36 sps:$4 sm:$0xff]   ;;  %v6132_v21 = vld [vmem:[#allocation5 + $0x16c] ss:$36 sps:$4 sm:$0xff]  }
  0x76   : > { %1630 = vmatpush1.bf16.msra.mxu0 %v6112_v7  ;;  %v6125_v16 = vld [vmem:[#allocation5 + $0x558] ss:$36 sps:$4 sm:$0xff]   ;;  %v6131_v20 = vld [vmem:[#allocation5 + $0x5a0] ss:$36 sps:$4 sm:$0xff]   ;;  %v6134_v22 = vld [vmem:[#allocation5 + $0x5ec] ss:$36 sps:$4 sm:$0xff]  }
  0x77   : > { %1703 = vmatpush1.bf16.msra.mxu1 %v6113_v8  ;;  %1631 = vmatprep.subr.bf16.mxu0 %v6114_v9  ;;  %v6136_v23 = vld [vmem:[#allocation5 + $0x168] ss:$36 sps:$4 sm:$0xff]   ;;  %v6138_v25 = vld [vmem:[#allocation5 + $0x1b4] ss:$36 sps:$4 sm:$0xff]   ;;  %v6144_v29 = vld [vmem:[#allocation5 + $0x1fc] ss:$36 sps:$4 sm:$0xff]  }
  0x78   : > { %1704 = vmatprep.subr.bf16.mxu1 %v6116_v10  ;;  %v6137_v24 = vld [vmem:[#allocation5 + $0x5e8] ss:$36 sps:$4 sm:$0xff]   ;;  %v6140_v26 = vld [vmem:[#allocation5 + $0x634] ss:$36 sps:$4 sm:$0xff]   ;;  %v6146_v30 = vld [vmem:[#allocation5 + $0x67c] ss:$36 sps:$4 sm:$0xff]  }
  0x79   : > { %v6142_v27 = vld [vmem:[#allocation5 + $0x1b0] ss:$36 sps:$4 sm:$0xff]   ;;  %v6148_v31 = vld [vmem:[#allocation5 + $0x1f8] ss:$36 sps:$4 sm:$0xff]   ;;  %v252_v34 = vld [vmem:[%s7078_s13 + $0x28] sm:$0xff]  ;;  %vm2408_vm0 = vcmask 523264  }
  0x7a   : > { %1632 = vmatpush1.bf16.msra.mxu0 %v6118_v11  ;;  %v6143_v28 = vld [vmem:[#allocation5 + $0x630] ss:$36 sps:$4 sm:$0xff]   ;;  %v6149_v32 = vld [vmem:[#allocation5 + $0x678] ss:$36 sps:$4 sm:$0xff]   ;;  %v6150_v35 = vld [vmem:[#allocation5 + $0x244] ss:$36 sps:$4 sm:$0xff]  }
  0x7b   : > { %1705 = vmatpush1.bf16.msra.mxu1 %v6119_v12  ;;  %1633 = vmatprep.subr.bf16.mxu0 %v6120_v13  ;;  %v249_v33 = vld [vmem:[%s7078_s13 + $0x10] sm:$0xff]  ;;  %v6152_v38 = vld [vmem:[#allocation5 + $0x8] ss:$36 sps:$4 sm:$0xff]   ;;  %v6155_v39 = vld [vmem:[#allocation5 + $0x240] ss:$36 sps:$4 sm:$0xff]   ;;  %s6871_s21 = smov 64  }
  0x7c   : > { %1706 = vmatprep.subr.bf16.mxu1 %v6122_v14  ;;  %v6154_v36 = vld [vmem:[#allocation5 + $0xc] ss:$36 sps:$4 sm:$0xff]   ;;  %v7091_v37 = vpack.c.bf16 %v252_v34, %v249_v33  ;;  %v6160_v41 = vld [vmem:[#allocation5 + $0x54] ss:$36 sps:$4 sm:$0xff]   ;;  %v6166_v45 = vld [vmem:[#allocation5 + $0x9c] ss:$36 sps:$4 sm:$0xff]  }
  0x7d   : > { %v6156_v40 = vld [vmem:[#allocation5 + $0x28c] ss:$36 sps:$4 sm:$0xff]   ;;  %v6162_v44 = vld [vmem:[#allocation5 + $0x2d4] ss:$36 sps:$4 sm:$0xff]   ;;  %v6168_v48 = vld [vmem:[#allocation5 + $0x31c] ss:$36 sps:$4 sm:$0xff]  }
  0x7e   : > { %1634 = vmatpush1.bf16.msra.mxu0 %v6124_v15  ;;  %v6158_v42 = vld [vmem:[#allocation5 + $0x50] ss:$36 sps:$4 sm:$0xff]   ;;  %v6161_v43 = vld [vmem:[#allocation5 + $0x288] ss:$36 sps:$4 sm:$0xff]   ;;  %v6164_v46 = vld [vmem:[#allocation5 + $0x98] ss:$36 sps:$4 sm:$0xff]  }
  0x7f   : > { %1707 = vmatpush1.bf16.msra.mxu1 %v6125_v16  ;;  %1635 = vmatprep.subr.bf16.mxu0 %v6126_v17  ;;  %v6167_v47 = vld [vmem:[#allocation5 + $0x2d0] ss:$36 sps:$4 sm:$0xff]   ;;  %v6172_v49 = vld [vmem:[#allocation5 + $0xe4] ss:$36 sps:$4 sm:$0xff]   ;;  %v6173_v53 = vld [vmem:[#allocation5 + $0x318] ss:$36 sps:$4 sm:$0xff]  }
  0x80   : > { %1708 = vmatprep.subr.bf16.mxu1 %v6128_v18  ;;  %v248_v50 = vld [vmem:[%s7078_s13 + $0x8] sm:$0xff]  ;;  %v251_v51 = vld [vmem:[%s7078_s13 + $0x20] sm:$0xff]  ;;  %v6184_v63 = vld [vmem:[#allocation5 + $0x174] ss:$36 sps:$4 sm:$0xff]   ;;  %s8169_s5 = scalar_lea.vmem [#allocation8], %s6022_s10  ;;  %s6023_s25 = smul.u32 3072, %s6921_s19 }
  0x81   : > { %v6170_v52 = vld [vmem:[#allocation5 + $0xe0] ss:$36 sps:$4 sm:$0xff]   ;;  %v7097_v54 = vpack.c.bf16 %v251_v51, %v248_v50  ;;  %v6178_v56 = vld [vmem:[#allocation5 + $0x12c] ss:$36 sps:$4 sm:$0xff]   ;;  %v6186_v5 = vld [vmem:[#allocation5 + $0x3f4] ss:$36 sps:$4 sm:$0xff]  }
  0x82   : > { %1636 = vmatpush1.bf16.msra.mxu0 %v6130_v19  ;;  %v6174_v55 = vld [vmem:[#allocation5 + $0x364] ss:$36 sps:$4 sm:$0xff]   ;;  %v6180_v61 = vld [vmem:[#allocation5 + $0x3ac] ss:$36 sps:$4 sm:$0xff]   ;;  %v6190_v6 = vld [vmem:[#allocation5 + $0x1bc] ss:$36 sps:$4 sm:$0xff]   ;;  %s8228_s26 = scalar_lea.hbm %s8281_s4, %s6023_s25 }
  0x83   : > { %1709 = vmatpush1.bf16.msra.mxu1 %v6131_v20  ;;  %1637 = vmatprep.subr.bf16.mxu0 %v6132_v21  ;;  %v255_v57 = vld [vmem:[%s7078_s13 + $0x40] sm:$0xff]  ;;  %v6176_v59 = vld [vmem:[#allocation5 + $0x128] ss:$36 sps:$4 sm:$0xff]   ;;  %v6182_v1 = vld [vmem:[#allocation5 + $0x170] ss:$36 sps:$4 sm:$0xff]   ;;  %s5004_s7 = sshll.u32 %s8169_s5, 4  ;;  %s8230_s7 = int_to_ptr.vmem [resolvable:$true] %s5004_s7 }
  0x84   : > { %1710 = vmatprep.subr.bf16.mxu1 %v6134_v22  ;;  %1659 = vmatprep.mubr.bf16.mxu0 %v7097_v54  ;;  %v6179_v60 = vld [vmem:[#allocation5 + $0x360] ss:$36 sps:$4 sm:$0xff]   ;;  %v7102_v62 = vpack.c.bf16 %v258_v58, %v255_v57  ;;  %v6185_v2 = vld [vmem:[#allocation5 + $0x3a8] ss:$36 sps:$4 sm:$0xff]   ;;  %v261_v3 = vld [vmem:[%s7078_s13 + $0x70] sm:$0xff]  ;;  %s4991_s24 = scalar_lea.sflag [#allocation4], %s7072_s9 }
  0x85   : > { %v264_v4 = vld [vmem:[%s7078_s13 + $0x88] sm:$0xff]  ;;  %v6188_v8 = vld [vmem:[#allocation5 + $0x1b8] ss:$36 sps:$4 sm:$0xff]   ;;  %v6191_v9 = vld [vmem:[#allocation5 + $0x3f0] ss:$36 sps:$4 sm:$0xff]   ;;  %s6788_s29 = scalar_lea.vmem %s8230_s7, 3072 }
  0x86   : > { %1638 = vmatpush1.bf16.msra.mxu0 %v6136_v23  ;;  %v7108_v7 = vpack.c.bf16 %v264_v4, %v261_v3  ;;  %v6192_v10 = vld [vmem:[#allocation5 + $0x43c] ss:$36 sps:$4 sm:$0xff]   ;;  %v6196_v11 = vld [vmem:[#allocation5 + $0x204] ss:$36 sps:$4 sm:$0xff]   ;;  %v6200_v16 = vld [vmem:[#allocation5 + $0x24c] ss:$36 sps:$4 sm:$0xff]   ;;  %p6789_p11 = scmp.ne.s32.totalorder %s8230_s7, %s6788_s29 }
  0x87   : > { %1711 = vmatpush1.bf16.msra.mxu1 %v6137_v24  ;;  %1639 = vmatprep.subr.bf16.mxu0 %v6138_v25  ;;  %v6194_v12 = vld [vmem:[#allocation5 + $0x200] ss:$36 sps:$4 sm:$0xff]   ;;  %v6197_v13 = vld [vmem:[#allocation5 + $0x438] ss:$36 sps:$4 sm:$0xff]   ;;  %v257_v20 = vld [vmem:[%s7078_s13 + $0x50] sm:$0xff]  ;;  %p8404_p0 = scmp.ne.s32.totalorder %s8320_s20, 0 }
  0x88   : > { %1712 = vmatprep.subr.bf16.mxu1 %v6140_v26  ;;  %v247_v14 = vld [vmem:[%s7078_s13] sm:$0xff]  ;;  %v250_v15 = vld [vmem:[%s7078_s13 + $0x18] sm:$0xff]  ;;  %v6198_v23 = vld [vmem:[#allocation5 + $0x248] ss:$36 sps:$4 sm:$0xff]   ;;  %s6872_s30 = smov [#allocation8]  }
  0x89   : > { %v267_v17 = vld [vmem:[%s7078_s13 + $0xa0] sm:$0xff]  ;;  %v270_v18 = vld [vmem:[%s7078_s13 + $0xb8] sm:$0xff]  ;;  %v7120_v22 = vpack.c.bf16 %v250_v15, %v247_v14  ;;  %v6201_v26 = vld [vmem:[#allocation5 + $0x290] ss:$36 sps:$4 sm:$0xff]   ;;  %p6790_p1 = pnand %p6789_p11, %p8404_p0  ;;  %s6792_s6 = sshll.u32 %s6872_s30, 4  ;;  %s6793_s6 = int_to_ptr.vmem [resolvable:$false] %s6792_s6 }
  0x8a   : > { %1640 = vmatpush1.bf16.msra.mxu0 %v6142_v27  ;;  %v254_v19 = vld [vmem:[%s7078_s13 + $0x38] sm:$0xff]  ;;  %v7118_v21 = vpack.c.bf16 %v270_v18, %v267_v17  ;;  %v253_v27 = vld [vmem:[%s7078_s13 + $0x30] sm:$0xff]  ;;  %v6209_v34 = vld [vmem:[#allocation5 + $0x324] ss:$36 sps:$4 sm:$0xff]   ;;  %s6794_s8 = scalar_lea.vmem %s6793_s6, 6144  ;;  %p6795_p5 = scmp.lt.s32.totalorder %s8230_s7, %s6793_s6 }
  0x8b   : > { %1713 = vmatpush1.bf16.msra.mxu1 %v6143_v28  ;;  %1641 = vmatprep.subr.bf16.mxu0 %v6144_v29  ;;  %v7122_v24 = vpack.c.bf16 %v257_v20, %v254_v19  ;;  %v6203_v25 = vld [vmem:[#allocation5 + $0x294] ss:$36 sps:$4 sm:$0xff]   ;;  %v256_v28 = vld [vmem:[%s7078_s13 + $0x48] sm:$0xff]  ;;  %v6206_v29 = vld [vmem:[#allocation5 + $0x2dc] ss:$36 sps:$4 sm:$0xff]   ;;  %p6791_p3 = pneg %p6790_p1  ;;  %p6796_p9 = scmp.lt.s32.totalorder %s6794_s8, %s6788_s29 }
  0x8c   : > { %1714 = vmatprep.subr.bf16.mxu1 %v6146_v30  ;;  %v260_v30 = vld [vmem:[%s7078_s13 + $0x68] sm:$0xff]  ;;  %v6204_v33 = vld [vmem:[#allocation5 + $0x2d8] ss:$36 sps:$4 sm:$0xff]   ;;  %v6219_v4 = vld [vmem:[#allocation5 + $0x440] ss:$36 sps:$4 sm:$0xff]  }
  0x8d   : > { %v6215_v50 = vld [vmem:[#allocation5 + $0x3b4] ss:$36 sps:$4 sm:$0xff]   ;;  %v268_v57 = vld [vmem:[%s7078_s13 + $0xa8] sm:$0xff]  ;;  %v6218_v58 = vld [vmem:[#allocation5 + $0x3fc] ss:$36 sps:$4 sm:$0xff]   ;;  %p6797_p12 = por %p6796_p9, %p6795_p5 }
  0x8e   : > { %1642 = vmatpush1.bf16.msra.mxu0 %v6148_v31  ;;  %v263_v31 = vld [vmem:[%s7078_s13 + $0x80] sm:$0xff]  ;;  %v6267_v15 = vld [vmem:[#allocation5 + $0x208] ss:$36 sps:$4 sm:$0xff]   ;;  %v6228_v17 = vld [vmem:[#allocation5 + $0x518] ss:$36 sps:$4 sm:$0xff]  }
  0x8f   : > { %1715 = vmatpush1.bf16.msra.mxu1 %v6149_v32  ;;  %1643 = vmatprep.subr.bf16.mxu0 %v6150_v35  ;;  %v7132_v32 = vpack.c.bf16 %v256_v28, %v253_v27  ;;  %v7134_v35 = vpack.c.bf16 %v263_v31, %v260_v30  ;;  %v6263_v3 = vld [vmem:[#allocation5 + $0x17c] ss:$36 sps:$4 sm:$0xff]   ;;  %v6233_v18 = vld [vmem:[#allocation5 + $0x564] ss:$36 sps:$4 sm:$0xff]   ;;  %v6270_v19 = vld [vmem:[#allocation5 + $0x250] ss:$36 sps:$4 sm:$0xff]   ;;  %p6798_p2 = pnand %p6797_p12, %p6791_p3 }
  0x90   : > { %1773 = vmatprep.subr.bf16.mxu1 %v6154_v36  ;;  %v6246_v36 = vld [vmem:[#allocation5 + $0x10] ss:$36 sps:$4 sm:$0xff]   ;;  %v6230_v14 = vld [vmem:[#allocation5 + $0x51c] ss:$36 sps:$4 sm:$0xff]   ;;  %v6278_v27 = vld [vmem:[#allocation5 + $0x2e4] ss:$36 sps:$4 sm:$0xff]  }
  0x91   : > { %v6275_v20 = vld [vmem:[#allocation5 + $0x29c] ss:$36 sps:$4 sm:$0xff]   ;;  %v6234_v28 = vld [vmem:[#allocation5 + $0x5a8] ss:$36 sps:$4 sm:$0xff]  }
  0x92   : > { %1733 = vmatmul.mubr.bf16.vlgmr.msra.gmra.mrb[0].mxu1 %v7091_v37  ;;  %1644 = vmatpush1.bf16.msra.mxu0 %v6155_v39  ;;  %v6207_v39 = vld [vmem:[#allocation5 + $0x320] ss:$36 sps:$4 sm:$0xff]   ;;  %v6281_v31 = vld [vmem:[#allocation5 + $0x32c] ss:$36 sps:$4 sm:$0xff]  }
  0x93   : > { %1774 = vmatpush1.bf16.msra.mxu1 %v6152_v38  ;;  %1645 = vmatprep.subr.bf16.mxu0 %v6156_v40  ;;  %v6248_v38 = vld [vmem:[#allocation5 + $0x14] ss:$36 sps:$4 sm:$0xff]   ;;  %v259_v40 = vld [vmem:[%s7078_s13 + $0x60] sm:$0xff] }
  0x94   : > { %1775 = vmatprep.subr.bf16.mxu1 %v6160_v41  ;;  %1742 = vmatprep.mubr.bf16.mxu1 %v8285_v0  ;;  %v262_v41 = vld [vmem:[%s7078_s13 + $0x78] sm:$0xff]  ;;  %v6276_v30 = vld [vmem:[#allocation5 + $0x2e0] ss:$36 sps:$4 sm:$0xff]  }
  0x96   : > { %1646 = vmatpush1.bf16.msra.mxu0 %v6161_v43  ;;  %v6212_v43 = vld [vmem:[#allocation5 + $0x36c] ss:$36 sps:$4 sm:$0xff]  }
  0x97   : > { %1776 = vmatpush1.bf16.msra.mxu1 %v6158_v42  ;;  %1647 = vmatprep.subr.bf16.mxu0 %v6162_v44  ;;  %v6251_v42 = vld [vmem:[#allocation5 + $0x5c] ss:$36 sps:$4 sm:$0xff]  }
  0x98   : > { %1777 = vmatprep.subr.bf16.mxu1 %v6166_v45  ;;  %v266_v44 = vld [vmem:[%s7078_s13 + $0x98] sm:$0xff]  ;;  %v269_v45 = vld [vmem:[%s7078_s13 + $0xb0] sm:$0xff] }
  0x99   : > { %v7144_v51 = vpack.c.bf16 %v269_v45, %v266_v44  ;;  %v6285_v44 = vld [vmem:[#allocation5 + $0x3b8] ss:$36 sps:$4 sm:$0xff]  }
  0x9a   : > { %1648 = vmatpush1.bf16.msra.mxu0 %v6167_v47  ;;  %1743 = vmatmul.mubr.bf16.gmra.mrb[4].mxu1 %v7102_v62  ;;  %v6254_v47 = vld [vmem:[#allocation5 + $0xa4] ss:$36 sps:$4 sm:$0xff]   ;;  %v6314_v45 = vld [vmem:[#allocation5 + $0x1c] ss:$36 sps:$4 sm:$0xff]  }
  0x9b   : > { %1778 = vmatpush1.bf16.msra.mxu1 %v6164_v46  ;;  %1649 = vmatprep.subr.bf16.mxu0 %v6168_v48  ;;  %v6249_v46 = vld [vmem:[#allocation5 + $0x58] ss:$36 sps:$4 sm:$0xff]   ;;  %v7142_v48 = vpack.c.bf16 %v262_v41, %v259_v40  ;;  %v6245_v40 = vld [vmem:[#allocation5 + $0x684] ss:$36 sps:$4 sm:$0xff]   ;;  %v6282_v41 = vld [vmem:[#allocation5 + $0x370] ss:$36 sps:$4 sm:$0xff]  }
  0x9c   : > { %1779 = vmatprep.subr.bf16.mxu1 %v6172_v49  ;;  %1752 = vmatprep.mubr.bf16.mxu1 %v8285_v0  ;;  %v6210_v49 = vld [vmem:[#allocation5 + $0x368] ss:$36 sps:$4 sm:$0xff]  }
  0x9e   : > { %1650 = vmatpush1.bf16.msra.mxu0 %v6173_v53  ;;  %v6213_v53 = vld [vmem:[#allocation5 + $0x3b0] ss:$36 sps:$4 sm:$0xff]  }
  0x9f   : > { %1780 = vmatpush1.bf16.msra.mxu1 %v6170_v52  ;;  %1651 = vmatprep.subr.bf16.mxu0 %v6174_v55  ;;  %v6252_v52 = vld [vmem:[#allocation5 + $0xa0] ss:$36 sps:$4 sm:$0xff]   ;;  %v6257_v55 = vld [vmem:[#allocation5 + $0xec] ss:$36 sps:$4 sm:$0xff]  }
  0xa0   : > { %1781 = vmatprep.subr.bf16.mxu1 %v6178_v56  ;;  %v265_v56 = vld [vmem:[%s7078_s13 + $0x90] sm:$0xff] }
  0xa2   : > { %1652 = vmatpush1.bf16.msra.mxu0 %v6179_v60  ;;  %1753 = vmatmul.mubr.bf16.gmra.mrb[8].mxu1 %v7108_v7  ;;  %v6260_v60 = vld [vmem:[#allocation5 + $0x134] ss:$36 sps:$4 sm:$0xff]  }
  0xa3   : > { %1782 = vmatpush1.bf16.msra.mxu1 %v6176_v59  ;;  %1653 = vmatprep.subr.bf16.mxu0 %v6180_v61  ;;  %v6255_v59 = vld [vmem:[#allocation5 + $0xe8] ss:$36 sps:$4 sm:$0xff]   ;;  %v7150_v61 = vpack.c.bf16 %v268_v57, %v265_v56  ;;  %v6296_v57 = vld [vmem:[#allocation5 + $0x494] ss:$36 sps:$4 sm:$0xff]  }
  0xa4   : > { %1783 = vmatprep.subr.bf16.mxu1 %v6184_v63  ;;  %1762 = vmatprep.mubr.bf16.mxu1 %v8285_v0  ;;  %v6216_v63 = vld [vmem:[#allocation5 + $0x3f8] ss:$36 sps:$4 sm:$0xff]   ;;  %v6326_v56 = vld [vmem:[#allocation5 + $0xac] ss:$36 sps:$4 sm:$0xff]  }
  0xa6   : > { %1654 = vmatpush1.bf16.msra.mxu0 %v6185_v2  ;;  %v6258_v2 = vld [vmem:[#allocation5 + $0x130] ss:$36 sps:$4 sm:$0xff]  }
  0xa7   : > { %1784 = vmatpush1.bf16.msra.mxu1 %v6182_v1  ;;  %1655 = vmatprep.subr.bf16.mxu0 %v6186_v5  ;;  %v6221_v1 = vld [vmem:[#allocation5 + $0x444] ss:$36 sps:$4 sm:$0xff]   ;;  %v6224_v5 = vld [vmem:[#allocation5 + $0x48c] ss:$36 sps:$4 sm:$0xff]  }
  0xa8   : > { %1785 = vmatprep.subr.bf16.mxu1 %v6190_v6  ;;  %v6261_v6 = vld [vmem:[#allocation5 + $0x178] ss:$36 sps:$4 sm:$0xff]  }
  0xaa   : > { %1656 = vmatpush1.bf16.msra.mxu0 %v6191_v9  ;;  %1763 = vmatmul.mubr.bf16.gmra.mrb[12].mxu1 %v7118_v21  ;;  %v6222_v9 = vld [vmem:[#allocation5 + $0x488] ss:$36 sps:$4 sm:$0xff]  }
  0xab   : > { %1786 = vmatpush1.bf16.msra.mxu1 %v6188_v8  ;;  %1657 = vmatprep.subr.bf16.mxu0 %v6192_v10  ;;  %v6266_v8 = vld [vmem:[#allocation5 + $0x1c4] ss:$36 sps:$4 sm:$0xff]   ;;  %v6227_v10 = vld [vmem:[#allocation5 + $0x4d4] ss:$36 sps:$4 sm:$0xff]  }
  0xac   : > { %1787 = vmatprep.subr.bf16.mxu1 %v6196_v11  ;;  %1805 = vmatprep.mubr.bf16.mxu1 %v7097_v54  ;;  %v6264_v11 = vld [vmem:[#allocation5 + $0x1c0] ss:$36 sps:$4 sm:$0xff]  }
  0xae   : > { %1658 = vmatpush1.bf16.msra.mxu0 %v6197_v13  ;;  %v6225_v13 = vld [vmem:[#allocation5 + $0x4d0] ss:$36 sps:$4 sm:$0xff]  }
  0xaf   : > { %1788 = vmatpush1.bf16.msra.mxu1 %v6194_v12  ;;  %1919 = vmatprep.subr.bf16.mxu0 %v6248_v38  ;;  %v6269_v12 = vld [vmem:[#allocation5 + $0x20c] ss:$36 sps:$4 sm:$0xff]   ;;  %v6284_v38 = vld [vmem:[#allocation5 + $0x374] ss:$36 sps:$4 sm:$0xff]  }
  0xb0   : > { %1789 = vmatprep.subr.bf16.mxu1 %v6200_v16  ;;  %v6272_v16 = vld [vmem:[#allocation5 + $0x254] ss:$36 sps:$4 sm:$0xff]  }
  0xb1   : > { %1660 = vmatmul.mubr.bf16.vlgmr.msra.gmra.mrb[0].mxu0 %v7120_v22 }
  0xb2   : > { %1669 = vmatprep.mubr.bf16.mxu0 %v7122_v24  ;;  %1920 = vmatpush1.bf16.msra.mxu0 %v6246_v36  ;;  %v6279_v36 = vld [vmem:[#allocation5 + $0x328] ss:$36 sps:$4 sm:$0xff]  }
  0xb3   : > { %1790 = vmatpush1.bf16.msra.mxu1 %v6198_v23  ;;  %1921 = vmatprep.subr.bf16.mxu0 %v6251_v42  ;;  %v6231_v23 = vld [vmem:[#allocation5 + $0x560] ss:$36 sps:$4 sm:$0xff]  }
  0xb4   : > { %1791 = vmatprep.subr.bf16.mxu1 %v6203_v25  ;;  %v6236_v25 = vld [vmem:[#allocation5 + $0x5ac] ss:$36 sps:$4 sm:$0xff]   ;;  %v6287_v42 = vld [vmem:[#allocation5 + $0x3bc] ss:$36 sps:$4 sm:$0xff]  }
  0xb6   : > { %1922 = vmatpush1.bf16.msra.mxu0 %v6249_v46  ;;  %v6290_v46 = vld [vmem:[#allocation5 + $0x404] ss:$36 sps:$4 sm:$0xff]  }
  0xb7   : > { %1792 = vmatpush1.bf16.msra.mxu1 %v6201_v26  ;;  %1923 = vmatprep.subr.bf16.mxu0 %v6254_v47  ;;  %v6273_v26 = vld [vmem:[#allocation5 + $0x298] ss:$36 sps:$4 sm:$0xff]   ;;  %v6288_v47 = vld [vmem:[#allocation5 + $0x400] ss:$36 sps:$4 sm:$0xff]  }
  0xb8   : > { %1793 = vmatprep.subr.bf16.mxu1 %v6206_v29  ;;  %v6239_v29 = vld [vmem:[#allocation5 + $0x5f4] ss:$36 sps:$4 sm:$0xff]  }
  0xb9   : > { %1670 = vmatmul.mubr.bf16.gmra.mrb[4].mxu0 %v7132_v32 }
  0xba   : > { %1679 = vmatprep.mubr.bf16.mxu0 %v7134_v35  ;;  %1924 = vmatpush1.bf16.msra.mxu0 %v6252_v52  ;;  %v6293_v52 = vld [vmem:[#allocation5 + $0x44c] ss:$36 sps:$4 sm:$0xff]  }
  0xbb   : > { %1794 = vmatpush1.bf16.msra.mxu1 %v6204_v33  ;;  %1925 = vmatprep.subr.bf16.mxu0 %v6257_v55  ;;  %v6237_v33 = vld [vmem:[#allocation5 + $0x5f0] ss:$36 sps:$4 sm:$0xff]   ;;  %v6291_v55 = vld [vmem:[#allocation5 + $0x448] ss:$36 sps:$4 sm:$0xff]  }
  0xbc   : > { %1795 = vmatprep.subr.bf16.mxu1 %v6209_v34  ;;  %v6242_v34 = vld [vmem:[#allocation5 + $0x63c] ss:$36 sps:$4 sm:$0xff]  }
  0xbe   : > { %1926 = vmatpush1.bf16.msra.mxu0 %v6255_v59  ;;  %v6299_v59 = vld [vmem:[#allocation5 + $0x4dc] ss:$36 sps:$4 sm:$0xff]  }
  0xbf   : > { %1796 = vmatpush1.bf16.msra.mxu1 %v6207_v39  ;;  %1927 = vmatprep.subr.bf16.mxu0 %v6260_v60  ;;  %v6240_v39 = vld [vmem:[#allocation5 + $0x638] ss:$36 sps:$4 sm:$0xff]   ;;  %v6324_v60 = vld [vmem:[#allocation5 + $0xa8] ss:$36 sps:$4 sm:$0xff]  }
  0xc0   : > { %1797 = vmatprep.subr.bf16.mxu1 %v6212_v43  ;;  %v6243_v43 = vld [vmem:[#allocation5 + $0x680] ss:$36 sps:$4 sm:$0xff]  }
  0xc1   : > { %1680 = vmatmul.mubr.bf16.gmra.mrb[8].mxu0 %v7142_v48 }
  0xc2   : > { %1689 = vmatprep.mubr.bf16.mxu0 %v7144_v51  ;;  %1928 = vmatpush1.bf16.msra.mxu0 %v6258_v2  ;;  %v6302_v2 = vld [vmem:[#allocation5 + $0x524] ss:$36 sps:$4 sm:$0xff]  }
  0xc3   : > { %1798 = vmatpush1.bf16.msra.mxu1 %v6210_v49  ;;  %1929 = vmatprep.subr.bf16.mxu0 %v6263_v3  ;;  %v6312_v49 = vld [vmem:[#allocation5 + $0x18] ss:$36 sps:$4 sm:$0xff]   ;;  %v6328_v3 = vld [vmem:[#allocation5 + $0xf0] ss:$36 sps:$4 sm:$0xff]  }
  0xc4   : > { %1799 = vmatprep.subr.bf16.mxu1 %v6215_v50  ;;  %v6320_v50 = vld [vmem:[#allocation5 + $0x64] ss:$36 sps:$4 sm:$0xff]  }
  0xc6   : > { %1930 = vmatpush1.bf16.msra.mxu0 %v6261_v6  ;;  %v6305_v6 = vld [vmem:[#allocation5 + $0x56c] ss:$36 sps:$4 sm:$0xff]  }
  0xc7   : > { %1800 = vmatpush1.bf16.msra.mxu1 %v6213_v53  ;;  %1931 = vmatprep.subr.bf16.mxu0 %v6266_v8  ;;  %v6318_v53 = vld [vmem:[#allocation5 + $0x60] ss:$36 sps:$4 sm:$0xff]   ;;  %v6333_v8 = vld [vmem:[#allocation5 + $0x138] ss:$36 sps:$4 sm:$0xff]  }
  0xc8   : > { %1801 = vmatprep.subr.bf16.mxu1 %v6218_v58  ;;  %v6294_v58 = vld [vmem:[#allocation5 + $0x490] ss:$36 sps:$4 sm:$0xff]  }
  0xc9   : > { %1690 = vmatmul.mubr.bf16.gmra.mrb[12].mxu0 %v7150_v61 }
  0xca   : > { %1951 = vmatprep.mubr.bf16.mxu0 %v7097_v54  ;;  %1932 = vmatpush1.bf16.msra.mxu0 %v6264_v11  ;;  %v6308_v11 = vld [vmem:[#allocation5 + $0x5b4] ss:$36 sps:$4 sm:$0xff]  }
  0xcb   : > { %1802 = vmatpush1.bf16.msra.mxu1 %v6216_v63  ;;  %1933 = vmatprep.subr.bf16.mxu0 %v6269_v12  ;;  %v6297_v63 = vld [vmem:[#allocation5 + $0x4d8] ss:$36 sps:$4 sm:$0xff]   ;;  %v6338_v12 = vld [vmem:[#allocation5 + $0x180] ss:$36 sps:$4 sm:$0xff]  }
  0xcc   : > { %1803 = vmatprep.subr.bf16.mxu1 %v6221_v1  ;;  %v6330_v1 = vld [vmem:[#allocation5 + $0xf4] ss:$36 sps:$4 sm:$0xff]  }
  0xce   : > { %1934 = vmatpush1.bf16.msra.mxu0 %v6267_v15  ;;  %v6311_v15 = vld [vmem:[#allocation5 + $0x5fc] ss:$36 sps:$4 sm:$0xff]  }
  0xcf   : > { %1804 = vmatpush1.bf16.msra.mxu1 %v6219_v4  ;;  %1935 = vmatprep.subr.bf16.mxu0 %v6272_v16  ;;  %v6335_v4 = vld [vmem:[#allocation5 + $0x13c] ss:$36 sps:$4 sm:$0xff]   ;;  %v6343_v16 = vld [vmem:[#allocation5 + $0x1c8] ss:$36 sps:$4 sm:$0xff]  }
  0xd0   : > { %1846 = vmatprep.subr.bf16.mxu1 %v6224_v5  ;;  %v6300_v5 = vld [vmem:[#allocation5 + $0x520] ss:$36 sps:$4 sm:$0xff]  }
  0xd2   : > { %1806 = vmatmul.mubr.bf16.vlgmr.msra.gmra.mrb[16].mxu1 %v7120_v22  ;;  %1936 = vmatpush1.bf16.msra.mxu0 %v6270_v19  ;;  %v6317_v19 = vld [vmem:[#allocation5 + $0x644] ss:$36 sps:$4 sm:$0xff]  }
  0xd3   : > { %1847 = vmatpush1.bf16.msra.mxu1 %v6222_v9  ;;  %1815 = vmatprep.mubr.bf16.mxu1 %v7122_v24  ;;  %v6340_v9 = vld [vmem:[#allocation5 + $0x184] ss:$36 sps:$4 sm:$0xff]  }
  0xd4   : > { %1848 = vmatprep.subr.bf16.mxu1 %v6227_v10  ;;  %1937 = vmatprep.subr.bf16.mxu0 %v6275_v20  ;;  %v6303_v10 = vld [vmem:[#allocation5 + $0x568] ss:$36 sps:$4 sm:$0xff]   ;;  %v6348_v20 = vld [vmem:[#allocation5 + $0x210] ss:$36 sps:$4 sm:$0xff]  }
  0xd6   : > { %1938 = vmatpush1.bf16.msra.mxu0 %v6273_v26  ;;  %v6323_v26 = vld [vmem:[#allocation5 + $0x68c] ss:$36 sps:$4 sm:$0xff]  }
  0xd7   : > { %1849 = vmatpush1.bf16.msra.mxu1 %v6225_v13  ;;  %1939 = vmatprep.subr.bf16.mxu0 %v6278_v27  ;;  %v6345_v13 = vld [vmem:[#allocation5 + $0x1cc] ss:$36 sps:$4 sm:$0xff]   ;;  %v6353_v27 = vld [vmem:[#allocation5 + $0x258] ss:$36 sps:$4 sm:$0xff]  }
  0xd8   : > { %1850 = vmatprep.subr.bf16.mxu1 %v6230_v14  ;;  %v6306_v14 = vld [vmem:[#allocation5 + $0x5b0] ss:$36 sps:$4 sm:$0xff]  }
  0xda   : > { %1816 = vmatmul.mubr.bf16.gmra.mrb[20].mxu1 %v7132_v32  ;;  %1940 = vmatpush1.bf16.msra.mxu0 %v6276_v30  ;;  %v6327_v30 = vld [vmem:[#allocation5 + $0x260] ss:$36 sps:$4 sm:$0xff]  }
  0xdb   : > { %1851 = vmatpush1.bf16.msra.mxu1 %v6228_v17  ;;  %1825 = vmatprep.mubr.bf16.mxu1 %v7134_v35  ;;  %v6350_v17 = vld [vmem:[#allocation5 + $0x214] ss:$36 sps:$4 sm:$0xff]  }
  0xdc   : > { %1852 = vmatprep.subr.bf16.mxu1 %v6233_v18  ;;  %1941 = vmatprep.subr.bf16.mxu0 %v6281_v31  ;;  %v6309_v18 = vld [vmem:[#allocation5 + $0x5f8] ss:$36 sps:$4 sm:$0xff]   ;;  %v6358_v31 = vld [vmem:[#allocation5 + $0x2a0] ss:$36 sps:$4 sm:$0xff]  }
  0xde   : > { %1942 = vmatpush1.bf16.msra.mxu0 %v6279_v36  ;;  %v6332_v36 = vld [vmem:[#allocation5 + $0x2a8] ss:$36 sps:$4 sm:$0xff]  }
  0xdf   : > { %1853 = vmatpush1.bf16.msra.mxu1 %v6231_v23  ;;  %1943 = vmatprep.subr.bf16.mxu0 %v6284_v38  ;;  %v6355_v23 = vld [vmem:[#allocation5 + $0x25c] ss:$36 sps:$4 sm:$0xff]   ;;  %v6363_v38 = vld [vmem:[#allocation5 + $0x2e8] ss:$36 sps:$4 sm:$0xff]  }
  0xe0   : > { %1854 = vmatprep.subr.bf16.mxu1 %v6236_v25  ;;  %v6315_v25 = vld [vmem:[#allocation5 + $0x640] ss:$36 sps:$4 sm:$0xff]  }
  0xe2   : > { %1826 = vmatmul.mubr.bf16.gmra.mrb[24].mxu1 %v7142_v48  ;;  %1944 = vmatpush1.bf16.msra.mxu0 %v6282_v41  ;;  %v6337_v41 = vld [vmem:[#allocation5 + $0x2f0] ss:$36 sps:$4 sm:$0xff]  }
  0xe3   : > { %1855 = vmatpush1.bf16.msra.mxu1 %v6234_v28  ;;  %1835 = vmatprep.mubr.bf16.mxu1 %v7144_v51  ;;  %v6360_v28 = vld [vmem:[#allocation5 + $0x2a4] ss:$36 sps:$4 sm:$0xff]  }
  0xe4   : > { %1856 = vmatprep.subr.bf16.mxu1 %v6239_v29  ;;  %1945 = vmatprep.subr.bf16.mxu0 %v6287_v42  ;;  %v6321_v29 = vld [vmem:[#allocation5 + $0x688] ss:$36 sps:$4 sm:$0xff]   ;;  %v6367_v42 = vld [vmem:[#allocation5 + $0x330] ss:$36 sps:$4 sm:$0xff]  }
  0xe6   : > { %1946 = vmatpush1.bf16.msra.mxu0 %v6285_v44  ;;  %v6341_v44 = vld [vmem:[#allocation5 + $0xb0] ss:$36 sps:$4 sm:$0xff]  }
  0xe7   : > { %1857 = vmatpush1.bf16.msra.mxu1 %v6237_v33  ;;  %1947 = vmatprep.subr.bf16.mxu0 %v6290_v46  ;;  %v6365_v33 = vld [vmem:[#allocation5 + $0x2ec] ss:$36 sps:$4 sm:$0xff]   ;;  %v6370_v46 = vld [vmem:[#allocation5 + $0x378] ss:$36 sps:$4 sm:$0xff]  }
  0xe8   : > { %1858 = vmatprep.subr.bf16.mxu1 %v6242_v34  ;;  %v6331_v34 = vld [vmem:[#allocation5 + $0x20] ss:$36 sps:$4 sm:$0xff]  }
  0xea   : > { %1836 = vmatmul.mubr.bf16.gmra.mrb[28].mxu1 %v7150_v61  ;;  %1948 = vmatpush1.bf16.msra.mxu0 %v6288_v47  ;;  %v6375_v47 = vld [vmem:[#allocation5 + $0x3c4] ss:$36 sps:$4 sm:$0xff]  }
  0xeb   : > { %1859 = vmatpush1.bf16.msra.mxu1 %v6240_v39  ;;  %1878 = vmatprep.mubr.bf16.mxu1 %v8285_v0  ;;  %v6369_v39 = vld [vmem:[#allocation5 + $0x334] ss:$36 sps:$4 sm:$0xff]  }
  0xec   : > { %1860 = vmatprep.subr.bf16.mxu1 %v6245_v40  ;;  %1949 = vmatprep.subr.bf16.mxu0 %v6293_v52  ;;  %v6336_v40 = vld [vmem:[#allocation5 + $0x68] ss:$36 sps:$4 sm:$0xff]   ;;  %v6373_v52 = vld [vmem:[#allocation5 + $0x3c0] ss:$36 sps:$4 sm:$0xff]  }
  0xee   : > { %1950 = vmatpush1.bf16.msra.mxu0 %v6291_v55  ;;  %v6378_v55 = vld [vmem:[#allocation5 + $0x40c] ss:$36 sps:$4 sm:$0xff]  }
  0xef   : > { %1861 = vmatpush1.bf16.msra.mxu1 %v6243_v43  ;;  %1992 = vmatprep.subr.bf16.mxu0 %v6296_v57  ;;  %v6372_v43 = vld [vmem:[#allocation5 + $0x37c] ss:$36 sps:$4 sm:$0xff]   ;;  %v6376_v57 = vld [vmem:[#allocation5 + $0x408] ss:$36 sps:$4 sm:$0xff]  }
  0xf0   : > { %2065 = vmatprep.subr.bf16.mxu1 %v6314_v45  ;;  %v6342_v45 = vld [vmem:[#allocation5 + $0x338] ss:$36 sps:$4 sm:$0xff]  }
  0xf1   : > { %1952 = vmatmul.mubr.bf16.vlgmr.msra.gmra.mrb[16].mxu0 %v7120_v22 }
  0xf2   : > { %1879 = vmatmul.mubr.bf16.vlgmr.msra.gmra.mrb[16].mxu1 %v7091_v37  ;;  %1993 = vmatpush1.bf16.msra.mxu0 %v6294_v58  ;;  %v6381_v58 = vld [vmem:[#allocation5 + $0x454] ss:$36 sps:$4 sm:$0xff]  }
  0xf3   : > { %1888 = vmatprep.mubr.bf16.mxu1 %v8285_v0  ;;  %2066 = vmatpush1.bf16.msra.mxu1 %v6312_v49  ;;  %v6346_v49 = vld [vmem:[#allocation5 + $0xf8] ss:$36 sps:$4 sm:$0xff]  }
  0xf4   : > { %2067 = vmatprep.subr.bf16.mxu1 %v6320_v50  ;;  %1961 = vmatprep.mubr.bf16.mxu0 %v7122_v24  ;;  %v6347_v50 = vld [vmem:[#allocation5 + $0x380] ss:$36 sps:$4 sm:$0xff]  }
  0xf5   : > { %1994 = vmatprep.subr.bf16.mxu0 %v6299_v59  ;;  %v6356_v59 = vld [vmem:[#allocation5 + $0x188] ss:$36 sps:$4 sm:$0xff]  }
  0xf6   : > { %1995 = vmatpush1.bf16.msra.mxu0 %v6297_v63  ;;  %v6379_v63 = vld [vmem:[#allocation5 + $0x450] ss:$36 sps:$4 sm:$0xff]  }
  0xf7   : > { %2068 = vmatpush1.bf16.msra.mxu1 %v6318_v53  ;;  %1996 = vmatprep.subr.bf16.mxu0 %v6302_v2  ;;  %v6351_v53 = vld [vmem:[#allocation5 + $0x140] ss:$36 sps:$4 sm:$0xff]   ;;  %v6361_v2 = vld [vmem:[#allocation5 + $0x1d0] ss:$36 sps:$4 sm:$0xff]  }
  0xf8   : > { %2069 = vmatprep.subr.bf16.mxu1 %v6326_v56  ;;  %v6352_v56 = vld [vmem:[#allocation5 + $0x3c8] ss:$36 sps:$4 sm:$0xff]  }
  0xf9   : > { %1962 = vmatmul.mubr.bf16.gmra.mrb[20].mxu0 %v7132_v32 }
  0xfa   : > { %1889 = vmatmul.mubr.bf16.gmra.mrb[20].mxu1 %v7102_v62  ;;  %1997 = vmatpush1.bf16.msra.mxu0 %v6300_v5  ;;  %v6387_v5 = vld [vmem:[#allocation5 + $0x4e4] ss:$36 sps:$4 sm:$0xff]  }
  0xfb   : > { %1898 = vmatprep.mubr.bf16.mxu1 %v8285_v0  ;;  %2070 = vmatpush1.bf16.msra.mxu1 %v6324_v60  ;;  %v6357_v60 = vld [vmem:[#allocation5 + $0x410] ss:$36 sps:$4 sm:$0xff]  }
  0xfc   : > { %2071 = vmatprep.subr.bf16.mxu1 %v6330_v1  ;;  %1971 = vmatprep.mubr.bf16.mxu0 %v7134_v35  ;;  %v6384_v1 = vld [vmem:[#allocation5 + $0x49c] ss:$36 sps:$4 sm:$0xff]  }
  0xfd   : > { %1998 = vmatprep.subr.bf16.mxu0 %v6305_v6  ;;  %v6366_v6 = vld [vmem:[#allocation5 + $0x218] ss:$36 sps:$4 sm:$0xff]  }
  0xfe   : > { %1999 = vmatpush1.bf16.msra.mxu0 %v6303_v10  ;;  %v6388_v10 = vld [vmem:[#allocation5 + $0x528] ss:$36 sps:$4 sm:$0xff]  }
  0xff   : > { %2072 = vmatpush1.bf16.msra.mxu1 %v6328_v3  ;;  %2000 = vmatprep.subr.bf16.mxu0 %v6308_v11  ;;  %v6362_v3 = vld [vmem:[#allocation5 + $0x458] ss:$36 sps:$4 sm:$0xff]  }
 0x100   : > { %2073 = vmatprep.subr.bf16.mxu1 %v6335_v4  ;;  %v6382_v4 = vld [vmem:[#allocation5 + $0x498] ss:$36 sps:$4 sm:$0xff]  }
 0x101   : > { %1972 = vmatmul.mubr.bf16.gmra.mrb[24].mxu0 %v7142_v48  ;;  %v6393_v11 = vld [vmem:[#allocation5 + $0x574] ss:$36 sps:$4 sm:$0xff]  }
 0x102   : > { %1899 = vmatmul.mubr.bf16.gmra.mrb[24].mxu1 %v7108_v7  ;;  %2001 = vmatpush1.bf16.msra.mxu0 %v6306_v14  ;;  %v6399_v14 = vld [vmem:[#allocation5 + $0x604] ss:$36 sps:$4 sm:$0xff]  }
 0x103   : > { %1908 = vmatprep.mubr.bf16.mxu1 %v8285_v0  ;;  %2074 = vmatpush1.bf16.msra.mxu1 %v6333_v8  ;;  %v6385_v8 = vld [vmem:[#allocation5 + $0x4e0] ss:$36 sps:$4 sm:$0xff]  }
 0x104   : > { %2075 = vmatprep.subr.bf16.mxu1 %v6340_v9  ;;  %1981 = vmatprep.mubr.bf16.mxu0 %v7144_v51  ;;  %v6390_v9 = vld [vmem:[#allocation5 + $0x52c] ss:$36 sps:$4 sm:$0xff]  }
 0x105   : > { %2002 = vmatprep.subr.bf16.mxu0 %v6311_v15  ;;  %v6400_v15 = vld [vmem:[#allocation5 + $0x648] ss:$36 sps:$4 sm:$0xff]  }
 0x106   : > { %2003 = vmatpush1.bf16.msra.mxu0 %v6309_v18  ;;  %v6410_v18 = vld [vmem:[#allocation5 + $0x5c0] ss:$36 sps:$4 sm:$0xff]  }
 0x107   : > { %2076 = vmatpush1.bf16.msra.mxu1 %v6338_v12  ;;  %2004 = vmatprep.subr.bf16.mxu0 %v6317_v19  ;;  %v6396_v12 = vld [vmem:[#allocation5 + $0x5bc] ss:$36 sps:$4 sm:$0xff]  }
 0x108   : > { %2077 = vmatprep.subr.bf16.mxu1 %v6345_v13  ;;  %v6394_v13 = vld [vmem:[#allocation5 + $0x5b8] ss:$36 sps:$4 sm:$0xff]  }
 0x109   : > { %1982 = vmatmul.mubr.bf16.gmra.mrb[28].mxu0 %v7150_v61 }
 0x10a   : > { %1909 = vmatmul.mubr.bf16.gmra.mrb[28].mxu1 %v7118_v21  ;;  %2005 = vmatpush1.bf16.msra.mxu0 %v6315_v25  ;;  %v6412_v25 = vld [vmem:[#allocation5 + $0x650] ss:$36 sps:$4 sm:$0xff]  }
 0x10b   : > { %2097 = vmatprep.mubr.bf16.mxu1 %v7097_v54  ;;  %2078 = vmatpush1.bf16.msra.mxu1 %v6343_v16  ;;  %v6405_v16 = vld [vmem:[#allocation5 + $0x694] ss:$36 sps:$4 sm:$0xff]  }
 0x10c   : > { %2079 = vmatprep.subr.bf16.mxu1 %v6350_v17  ;;  %2024 = vmatprep.mubr.bf16.mxu0 %v8285_v0  ;;  %v6407_v17 = vld [vmem:[#allocation5 + $0x4e8] ss:$36 sps:$4 sm:$0xff]  }
 0x10d   : > { %2006 = vmatprep.subr.bf16.mxu0 %v6323_v26 }
 0x10e   : > { %2007 = vmatpush1.bf16.msra.mxu0 %v6321_v29 }
 0x10f   : > { %2080 = vmatpush1.bf16.msra.mxu1 %v6348_v20  ;;  %5444 = vmatprep.subr.bf16.mxu0 %v6327_v30 }
 0x110   : > { %2081 = vmatprep.subr.bf16.mxu1 %v6355_v23 }
 0x111   : > { %2025 = vmatmul.mubr.bf16.vlgmr.msra.gmra.mrb[16].mxu0 %v7091_v37 }
 0x112   : > { %5445 = vmatpush3.bf16.msra.mxu0 %v6331_v34  ;;  %2034 = vmatprep.mubr.bf16.mxu0 %v8285_v0 }
 0x113   : > { %2082 = vmatpush1.bf16.msra.mxu1 %v6353_v27  ;;  %5446 = vmatprep.subr.bf16.mxu0 %v6332_v36  ;;  %v6413_v27 = vld [vmem:[#allocation5 + $0x698] ss:$36 sps:$4 sm:$0xff]  }
 0x114   : > { %2083 = vmatprep.subr.bf16.mxu1 %v6360_v28 }
 0x116   : > { %5447 = vmatpush3.bf16.msra.mxu0 %v6336_v40 }
 0x117   : > { %2084 = vmatpush1.bf16.msra.mxu1 %v6358_v31  ;;  %5448 = vmatprep.subr.bf16.mxu0 %v6337_v41 }
 0x118   : > { %2085 = vmatprep.subr.bf16.mxu1 %v6365_v33 }
 0x119   : > { %2035 = vmatmul.mubr.bf16.gmra.mrb[20].mxu0 %v7102_v62 }
 0x11a   : > { %5449 = vmatpush3.bf16.msra.mxu0 %v6341_v44  ;;  %2044 = vmatprep.mubr.bf16.mxu0 %v8285_v0 }
 0x11b   : > { %2086 = vmatpush1.bf16.msra.mxu1 %v6363_v38  ;;  %5450 = vmatprep.subr.bf16.mxu0 %v6342_v45 }
 0x11c   : > { %2087 = vmatprep.subr.bf16.mxu1 %v6369_v39 }
 0x11e   : > { %5451 = vmatpush3.bf16.msra.mxu0 %v6346_v49 }
 0x11f   : > { %2088 = vmatpush1.bf16.msra.mxu1 %v6367_v42  ;;  %5452 = vmatprep.subr.bf16.mxu0 %v6347_v50 }
 0x120   : > { %2089 = vmatprep.subr.bf16.mxu1 %v6372_v43 }
 0x121   : > { %2045 = vmatmul.mubr.bf16.gmra.mrb[24].mxu0 %v7108_v7 }
 0x122   : > { %5453 = vmatpush3.bf16.msra.mxu0 %v6351_v53  ;;  %2054 = vmatprep.mubr.bf16.mxu0 %v8285_v0 }
 0x123   : > { %2090 = vmatpush1.bf16.msra.mxu1 %v6370_v46  ;;  %5454 = vmatprep.subr.bf16.mxu0 %v6352_v56 }
 0x124   : > { %2091 = vmatprep.subr.bf16.mxu1 %v6375_v47 }
 0x126   : > { %5455 = vmatpush3.bf16.msra.mxu0 %v6356_v59 }
 0x127   : > { %2092 = vmatpush1.bf16.msra.mxu1 %v6373_v52  ;;  %5456 = vmatprep.subr.bf16.mxu0 %v6357_v60 }
 0x128   : > { %2093 = vmatprep.subr.bf16.mxu1 %v6378_v55 }
 0x129   : > { %2055 = vmatmul.mubr.bf16.gmra.mrb[28].mxu0 %v7118_v21 }
 0x12a   : > { %5457 = vmatpush3.bf16.msra.mxu0 %v6361_v2  ;;  %2243 = vmatprep.mubr.bf16.mxu0 %v7097_v54  ;;  %v6391_v54 = vld [vmem:[#allocation5 + $0x570] ss:$36 sps:$4 sm:$0xff]  }
 0x12b   : > { %2094 = vmatpush1.bf16.msra.mxu1 %v6376_v57  ;;  %5458 = vmatprep.subr.bf16.mxu0 %v6362_v3 }
 0x12c   : > { %2095 = vmatprep.subr.bf16.mxu1 %v6381_v58 }
 0x12e   : > { %5459 = vmatpush3.bf16.msra.mxu0 %v6366_v6 }
 0x12f   : > { %2096 = vmatpush1.bf16.msra.mxu1 %v6379_v63 }
 0x130   : > { %2138 = vmatprep.subr.bf16.mxu1 %v6384_v1 }
 0x131   : > { %2244 = vmatmul.mubr.bf16.vlgmr.msra.gmra.mrb[32].mxu0 %v7120_v22 }
 0x132   : > { %2098 = vmatmul.mubr.bf16.vlgmr.msra.gmra.mrb[32].mxu1 %v7120_v22  ;;  %2251 = vmatprep.mubr.bf16.mxu0 %v7122_v24  ;;  %v6397_v22 = vld [vmem:[#allocation5 + $0x600] ss:$36 sps:$4 sm:$0xff]  }
 0x133   : > { %2139 = vmatpush1.bf16.msra.mxu1 %v6382_v4  ;;  %2107 = vmatprep.mubr.bf16.mxu1 %v7122_v24  ;;  %v6402_v24 = vld [vmem:[#allocation5 + $0x64c] ss:$36 sps:$4 sm:$0xff]  }
 0x134   : > { %2140 = vmatprep.subr.bf16.mxu1 %v6387_v5 }
 0x137   : > { %2141 = vmatpush1.bf16.msra.mxu1 %v6385_v8 }
 0x138   : > { %2142 = vmatprep.subr.bf16.mxu1 %v6390_v9 }
 0x139   : > { %2252 = vmatmul.mubr.bf16.gmra.mrb[36].mxu0 %v7132_v32 }
 0x13a   : > { %2108 = vmatmul.mubr.bf16.gmra.mrb[36].mxu1 %v7132_v32  ;;  %2259 = vmatprep.mubr.bf16.mxu0 %v7134_v35  ;;  %v6403_v32 = vld [vmem:[#allocation5 + $0x690] ss:$36 sps:$4 sm:$0xff]  }
 0x13b   : > { %2143 = vmatpush1.bf16.msra.mxu1 %v6388_v10  ;;  %2117 = vmatprep.mubr.bf16.mxu1 %v7134_v35  ;;  %v6406_v35 = vld [vmem:[#allocation5 + $0x4a0] ss:$36 sps:$4 sm:$0xff]  }
 0x13c   : > { %2144 = vmatprep.subr.bf16.mxu1 %v6393_v11 }
 0x13f   : > { %2145 = vmatpush1.bf16.msra.mxu1 %v6391_v54 }
 0x140   : > { %2146 = vmatprep.subr.bf16.mxu1 %v6396_v12 }
 0x141   : > { %2260 = vmatmul.mubr.bf16.gmra.mrb[40].mxu0 %v7142_v48 }
 0x142   : > { %2118 = vmatmul.mubr.bf16.gmra.mrb[40].mxu1 %v7142_v48  ;;  %2267 = vmatprep.mubr.bf16.mxu0 %v7144_v51  ;;  %v6408_v48 = vld [vmem:[#allocation5 + $0x530] ss:$36 sps:$4 sm:$0xff]  }
 0x143   : > { %2147 = vmatpush1.bf16.msra.mxu1 %v6394_v13  ;;  %2127 = vmatprep.mubr.bf16.mxu1 %v7144_v51  ;;  %v6409_v51 = vld [vmem:[#allocation5 + $0x578] ss:$36 sps:$4 sm:$0xff]  }
 0x144   : > { %2148 = vmatprep.subr.bf16.mxu1 %v6399_v14 }
 0x147   : > { %2149 = vmatpush1.bf16.msra.mxu1 %v6397_v22 }
 0x148   : > { %2150 = vmatprep.subr.bf16.mxu1 %v6402_v24 }
 0x149   : > { %2268 = vmatmul.mubr.bf16.gmra.mrb[44].mxu0 %v7150_v61 }
 0x14a   : > { %2128 = vmatmul.mubr.bf16.gmra.mrb[44].mxu1 %v7150_v61  ;;  %v6411_v61 = vld [vmem:[#allocation5 + $0x608] ss:$36 sps:$4 sm:$0xff]  }
 0x14b   : > { %2151 = vmatpush1.bf16.msra.mxu1 %v6400_v15  ;;  %2170 = vmatprep.mubr.bf16.mxu1 %v8285_v0 }
 0x14c   : > { %2152 = vmatprep.subr.bf16.mxu1 %v6405_v16 }
 0x14f   : > { %2153 = vmatpush1.bf16.msra.mxu1 %v6403_v32 }
 0x150   : > { %5644 = vmatprep.subr.bf16.mxu1 %v6406_v35 }
 0x152   : > { %2171 = vmatmul.mubr.bf16.vlgmr.msra.gmra.mrb[32].mxu1 %v7091_v37 }
 0x153   : > { %5645 = vmatpush3.bf16.msra.mxu1 %v6406_v35  ;;  %2180 = vmatprep.mubr.bf16.mxu1 %v8285_v0 }
 0x154   : > { %5646 = vmatprep.subr.bf16.mxu1 %v6407_v17 }
 0x157   : > { %5647 = vmatpush3.bf16.msra.mxu1 %v6407_v17 }
 0x158   : > { %5648 = vmatprep.subr.bf16.mxu1 %v6408_v48 }
 0x15a   : > { %2181 = vmatmul.mubr.bf16.gmra.mrb[36].mxu1 %v7102_v62 }
 0x15b   : > { %5649 = vmatpush3.bf16.msra.mxu1 %v6408_v48  ;;  %2190 = vmatprep.mubr.bf16.mxu1 %v8285_v0 }
 0x15c   : > { %5650 = vmatprep.subr.bf16.mxu1 %v6409_v51 }
 0x15f   : > { %5651 = vmatpush3.bf16.msra.mxu1 %v6409_v51 }
 0x160   : > { %5652 = vmatprep.subr.bf16.mxu1 %v6410_v18 }
 0x162   : > { %2191 = vmatmul.mubr.bf16.gmra.mrb[40].mxu1 %v7108_v7 }
 0x163   : > { %5653 = vmatpush3.bf16.msra.mxu1 %v6410_v18  ;;  %2200 = vmatprep.mubr.bf16.mxu1 %v8285_v0 }
 0x164   : > { %5654 = vmatprep.subr.bf16.mxu1 %v6411_v61 }
 0x165   : > { %v1734_v19 = vpop.f32.mrb[0].mxu1 }
 0x166   : > { %v1736_v20 = vpop.f32.mrb[1].mxu1 }
 0x167   : > { %v1738_v23 = vpop.f32.mrb[2].mxu1  ;;  %5655 = vmatpush3.bf16.msra.mxu1 %v6411_v61 }
 0x168   : > { %v1740_v26 = vpop.f32.mrb[3].mxu1  ;;  %5656 = vmatprep.subr.bf16.mxu1 %v6412_v25 }
 0x16a   : > { %2201 = vmatmul.mubr.bf16.gmra.mrb[44].mxu1 %v7118_v21 }
 0x16b   : > { %5657 = vmatpush3.bf16.msra.mxu1 %v6412_v25  ;;  %5660 = vmatprep.mubr.bf16.mxu1 %v7091_v37 }
 0x16c   : > { %5658 = vmatprep.subr.bf16.mxu1 %v6413_v27 }
 0x16d   : > { %v1744_v28 = vpop.f32.mrb[4].mxu1 }
 0x16e   : > { %v1746_v29 = vpop.f32.mrb[5].mxu1 }
 0x16f   : > { %5659 = vmatpush3.bf16.msra.mxu1 %v6413_v27  ;;  %v1748_v30 = vpop.f32.mrb[6].mxu1 }
 0x170   : > { %v1750_v31 = vpop.f32.mrb[7].mxu1 }
 0x172   : > { %5661 = vmatmul.mubr.bf16.vlgmr.msra.gmra.mrb[48].mxu1 %v7102_v62 }
 0x173   : > { %5664 = vmatprep.mubr.bf16.mxu1 %v7108_v7 }
 0x175   : > { %v1754_v33 = vpop.f32.mrb[8].mxu1 }
 0x176   : > { %v1756_v34 = vpop.f32.mrb[9].mxu1 }
 0x177   : > { %v1758_v36 = vpop.f32.mrb[10].mxu1 }
 0x178   : > { %v1760_v38 = vpop.f32.mrb[11].mxu1 }
 0x17a   : > { %5665 = vmatmul.mubr.bf16.gmra.mrb[52].mxu1 %v7118_v21 }
 0x17d   : > { %v1764_v39 = vpop.f32.mrb[12].mxu1 }
 0x17e   : > { %v1766_v41 = vpop.f32.mrb[13].mxu1 }
 0x17f   : > { %v1768_v43 = vpop.f32.mrb[14].mxu1 }
 0x180   : > { %v1770_v62 = vpop.f32.mrb[15].mxu1 }
 0x184   : > { %v1661_v40 = vpop.f32.mrb[0].mxu0 }
 0x185   : > { %v1735_v37 = vadd.f32 %v1734_v19, %v1661_v40  ;;  %v1663_v42 = vpop.f32.mrb[1].mxu0 }
 0x186   : > { %v7212_v44 = vadd.f32 %v1736_v20, %v1663_v42  ;;  %v1665_v45 = vpop.f32.mrb[2].mxu0 }
 0x187   : > { %v1739_v46 = vadd.f32 %v1738_v23, %v1665_v45  ;;  %v1667_v47 = vpop.f32.mrb[3].mxu0 }
 0x188   : > { %v7214_v7 = vadd.f32 %v1740_v26, %v1667_v47 }
 0x189   : > { %v2341_v49 = vpack.c.bf16 %v1739_v46, %v1735_v37 }
 0x18b   : > { %v7218_v50 = vmul.bf16 1040203264, %v2341_v49 }
 0x18c   : > { %v1671_v52 = vpop.f32.mrb[4].mxu0 }
 0x18d   : > { %v7220_v53 = vadd.f32 %v1744_v28, %v1671_v52  ;;  %v1673_v55 = vpop.f32.mrb[5].mxu0  ;;  %5676 = vmatprep.mubr.msk.bf16.mxu0 %vm2408_vm0, %v7218_v50 }
 0x18e   : > { %v7224_v56 = vadd.f32 %v1746_v29, %v1673_v55  ;;  %v1675_v57 = vpop.f32.mrb[6].mxu0 }
 0x18f   : > { %v1749_v58 = vadd.f32 %v1748_v30, %v1675_v57  ;;  %v1677_v59 = vpop.f32.mrb[7].mxu0 }
 0x190   : > { %v7226_v60 = vadd.f32 %v1750_v31, %v1677_v59 }
 0x191   : > { %v2350_v63 = vpack.c.bf16 %v1749_v58, %v7220_v53 }
 0x193   : > { %v7291_v49 = vmul.bf16 1040203264, %v2350_v63 }
 0x194   : > { %v1681_v2 = vpop.f32.mrb[8].mxu0 }
 0x195   : > { %v1755_v3 = vadd.f32 %v1754_v33, %v1681_v2  ;;  %v1683_v4 = vpop.f32.mrb[9].mxu0 }
 0x196   : > { %v7231_v5 = vadd.f32 %v1756_v34, %v1683_v4  ;;  %v1685_v6 = vpop.f32.mrb[10].mxu0 }
 0x197   : > { %v1759_v8 = vadd.f32 %v1758_v36, %v1685_v6  ;;  %v1687_v9 = vpop.f32.mrb[11].mxu0 }
 0x198   : > { %v7233_v10 = vadd.f32 %v1760_v38, %v1687_v9 }
 0x199   : > { %v2359_v11 = vpack.c.bf16 %v1759_v8, %v1755_v3 }
 0x19b   : > { %v7293_v52 = vmul.bf16 1040203264, %v2359_v11 }
 0x19c   : > { %v1691_v12 = vpop.f32.mrb[12].mxu0 }
 0x19d   : > { %v1765_v13 = vadd.f32 %v1764_v39, %v1691_v12  ;;  %v1693_v14 = vpop.f32.mrb[13].mxu0 }
 0x19e   : > { %v7237_v22 = vadd.f32 %v1766_v41, %v1693_v14  ;;  %v1695_v24 = vpop.f32.mrb[14].mxu0 }
 0x19f   : > { %v1769_v15 = vadd.f32 %v1768_v43, %v1695_v24  ;;  %v1697_v16 = vpop.f32.mrb[15].mxu0 }
 0x1a0   : > { %v7239_v32 = vadd.f32 %v1770_v62, %v1697_v16 }
 0x1a1   : > { %v2368_v35 = vpack.c.bf16 %v1769_v15, %v1765_v13 }
 0x1a3   : > { %v7299_v58 = vmul.bf16 1040203264, %v2368_v35 }
 0x1c5   : > { %v7243_v48 = vpop.f32.mrb[16].mxu1 }
 0x1c6   : > { %8325 = vst [vmem:[#allocation12_spill] sm:$0xff] %v7243_v48  ;;  %v1882_v51 = vpop.f32.mrb[17].mxu1 }
 0x1c7   : > { %v7245_v18 = vpop.f32.mrb[18].mxu1 }
 0x1c8   : > { %8326 = vst [vmem:[#allocation13_spill] sm:$0xff] %v7245_v18  ;;  %v1886_v19 = vpop.f32.mrb[19].mxu1 }
 0x1c9   : > { %v7249_v20 = vpack.c.bf16 %v1886_v19, %v1882_v51 }
 0x1cb   : > { %5996 = vmatprep.subr.msk.bf16.mxu0 %vm2408_vm0, %v7249_v20  ;;  %v2422_v23 = vsel %vm2408_vm0, %v7249_v20, 0 }
 0x1cc   : > { %5669 = vmatpush3.bf16.xpose.msra.mxu0 %v2422_v23 }
 0x1cd   : > { %v7255_v25 = vpop.f32.mrb[20].mxu1 }
 0x1ce   : > { %8327 = vst [vmem:[#allocation14_spill] sm:$0xff] %v7255_v25  ;;  %v1892_v26 = vpop.f32.mrb[21].mxu1 }
 0x1cf   : > { %v7257_v27 = vpop.f32.mrb[22].mxu1 }
 0x1d0   : > { %8328 = vst [vmem:[#allocation15_spill] sm:$0xff] %v7257_v27  ;;  %v1896_v29 = vpop.f32.mrb[23].mxu1 }
 0x1d1   : > { %v7261_v30 = vpack.c.bf16 %v1896_v29, %v1892_v26 }
 0x1d3   : > { %5997 = vmatprep.subr.msk.bf16.mxu0 %vm2408_vm0, %v7261_v30  ;;  %v2425_v31 = vsel %vm2408_vm0, %v7261_v30, 0 }
 0x1d4   : > { %5671 = vmatpush3.bf16.xpose.msra.mxu0 %v2425_v31 }
 0x1d5   : > { %v7267_v33 = vpop.f32.mrb[24].mxu1 }
 0x1d6   : > { %8329 = vst [vmem:[#allocation16_spill] sm:$0xff] %v7267_v33  ;;  %v1902_v34 = vpop.f32.mrb[25].mxu1 }
 0x1d7   : > { %v7269_v36 = vpop.f32.mrb[26].mxu1 }
 0x1d8   : > { %8330 = vst [vmem:[#allocation17_spill] sm:$0xff] %v7269_v36  ;;  %v1906_v39 = vpop.f32.mrb[27].mxu1 }
 0x1d9   : > { %v7273_v40 = vpack.c.bf16 %v1906_v39, %v1902_v34 }
 0x1db   : > { %5998 = vmatprep.subr.msk.bf16.mxu0 %vm2408_vm0, %v7273_v40  ;;  %v2428_v41 = vsel %vm2408_vm0, %v7273_v40, 0 }
 0x1dc   : > { %5673 = vmatpush3.bf16.xpose.msra.mxu0 %v2428_v41 }
 0x1dd   : > { %v7279_v37 = vpop.f32.mrb[28].mxu1 }
 0x1de   : > { %8331 = vst [vmem:[#allocation18_spill] sm:$0xff] %v7279_v37  ;;  %v1912_v42 = vpop.f32.mrb[29].mxu1 }
 0x1df   : > { %v7281_v43 = vpop.f32.mrb[30].mxu1 }
 0x1e0   : > { %8332 = vst [vmem:[#allocation19_spill] sm:$0xff] %v7281_v43  ;;  %v1916_v62 = vpop.f32.mrb[31].mxu1 }
 0x1e1   : > { %v7285_v46 = vpack.c.bf16 %v1916_v62, %v1912_v42 }
 0x1e3   : > { %5999 = vmatprep.subr.msk.bf16.mxu0 %vm2408_vm0, %v7285_v46  ;;  %v2431_v47 = vsel %vm2408_vm0, %v7285_v46, 0 }
 0x1e4   : > { %5675 = vmatpush3.bf16.xpose.msra.mxu0 %v2431_v47  ;;  %v2026_v53 = vpop.f32.mrb[16].mxu0 }
 0x1e5   : > { %v2028_v55 = vpop.f32.mrb[17].mxu0 }
 0x1e6   : > { %v2030_v57 = vpop.f32.mrb[18].mxu0 }
 0x1e7   : > { %v7301_v59 = vpack.c.bf16 %v2030_v57, %v2026_v53  ;;  %v2032_v2 = vpop.f32.mrb[19].mxu0 }
 0x1e8   : > { %v7303_v3 = vpack.c.bf16 %v2032_v2, %v2028_v55 }
 0x1ea   : > { %8333 = vst [vmem:[#allocation20_spill] sm:$0xff] %v7303_v3 }
 0x1eb   : > { %5677 = vmatmul.mubr.msk.bf16.vlgmr.msra.gmra.mrb[48].mxu0 %vm2408_vm0, %v7291_v49 }
 0x1ec   : > { %5680 = vmatprep.mubr.msk.bf16.mxu0 %vm2408_vm0, %v7293_v52  ;;  %v2036_v63 = vpop.f32.mrb[20].mxu0 }
 0x1ed   : > { %v2038_v4 = vpop.f32.mrb[21].mxu0 }
 0x1ee   : > { %v2040_v6 = vpop.f32.mrb[22].mxu0 }
 0x1ef   : > { %v7307_v8 = vpack.c.bf16 %v2040_v6, %v2036_v63  ;;  %v2042_v9 = vpop.f32.mrb[23].mxu0 }
 0x1f0   : > { %v7309_v11 = vpack.c.bf16 %v2042_v9, %v2038_v4 }
 0x1f2   : > { %8334 = vst [vmem:[#allocation21_spill] sm:$0xff] %v7309_v11 }
 0x1f3   : > { %5681 = vmatmul.mubr.msk.bf16.gmra.mrb[52].mxu0 %vm2408_vm0, %v7299_v58 }
 0x1f4   : > { %v2046_v12 = vpop.f32.mrb[24].mxu0 }
 0x1f5   : > { %v2048_v13 = vpop.f32.mrb[25].mxu0 }
 0x1f6   : > { %v2050_v14 = vpop.f32.mrb[26].mxu0 }
 0x1f7   : > { %v7311_v24 = vpack.c.bf16 %v2050_v14, %v2046_v12  ;;  %v2052_v15 = vpop.f32.mrb[27].mxu0 }
 0x1f8   : > { %v7313_v16 = vpack.c.bf16 %v2052_v15, %v2048_v13 }
 0x1fa   : > { %8335 = vst [vmem:[#allocation22_spill] sm:$0xff] %v7313_v16 }
 0x1fc   : > { %v2056_v35 = vpop.f32.mrb[28].mxu0 }
 0x1fd   : > { %v2058_v51 = vpop.f32.mrb[29].mxu0 }
 0x1fe   : > { %v2060_v19 = vpop.f32.mrb[30].mxu0 }
 0x1ff   : > { %v7315_v23 = vpack.c.bf16 %v2060_v19, %v2056_v35  ;;  %v2062_v26 = vpop.f32.mrb[31].mxu0 }
 0x200   : > { %v7317_v29 = vpack.c.bf16 %v2062_v26, %v2058_v51 }
 0x202   : > { %8336 = vst [vmem:[#allocation23_spill] sm:$0xff] %v7317_v29 }
 0x204   : > { %v5460_v31 = vpop.f32.mrb[32].mxu0 }
 0x205   : > { %v5461_v34 = vpop.f32.mrb[33].mxu0 }
 0x206   : > { %v5462_v39 = vadd.f32 %v5461_v34, %v5460_v31  ;;  %v5463_v41 = vpop.f32.mrb[34].mxu0 }
 0x207   : > { %v5464_v42 = vpop.f32.mrb[35].mxu0 }
 0x208   : > { %v5465_v62 = vadd.f32 %v5464_v42, %v5463_v41 }
 0x20c   : > { %v5466_v47 = vpop.f32.mrb[36].mxu0 }
 0x20d   : > { %v5467_v53 = vpop.f32.mrb[37].mxu0 }
 0x20e   : > { %v5468_v55 = vadd.f32 %v5467_v53, %v5466_v47  ;;  %v5469_v57 = vpop.f32.mrb[38].mxu0 }
 0x20f   : > { %v5470_v2 = vpop.f32.mrb[39].mxu0 }
 0x210   : > { %v5471_v63 = vadd.f32 %v5470_v2, %v5469_v57 }
 0x214   : > { %v5472_v4 = vpop.f32.mrb[40].mxu0 }
 0x215   : > { %v5473_v6 = vpop.f32.mrb[41].mxu0 }
 0x216   : > { %v5474_v9 = vadd.f32 %v5473_v6, %v5472_v4  ;;  %v5475_v12 = vpop.f32.mrb[42].mxu0 }
 0x217   : > { %v5476_v13 = vpop.f32.mrb[43].mxu0 }
 0x218   : > { %v5477_v14 = vadd.f32 %v5476_v13, %v5475_v12 }
 0x21c   : > { %v5478_v15 = vpop.f32.mrb[44].mxu0 }
 0x21d   : > { %v5479_v35 = vpop.f32.mrb[45].mxu0 }
 0x21e   : > { %v5480_v19 = vadd.f32 %v5479_v35, %v5478_v15  ;;  %v5481_v26 = vpop.f32.mrb[46].mxu0 }
 0x21f   : > { %v5482_v34 = vpop.f32.mrb[47].mxu0 }
 0x220   : > { %v5483_v42 = vadd.f32 %v5482_v34, %v5481_v26 }
 0x225   : > { %v2172_v51 = vpop.f32.mrb[32].mxu1 }
 0x226   : > { %v2174_v31 = vpop.f32.mrb[33].mxu1 }
 0x227   : > { %v2176_v41 = vpop.f32.mrb[34].mxu1 }
 0x228   : > { %v7319_v0 = vpack.c.bf16 %v2176_v41, %v2172_v51  ;;  %v2178_v47 = vpop.f32.mrb[35].mxu1 }
 0x229   : > { %v7321_v53 = vpack.c.bf16 %v2178_v47, %v2174_v31 }
 0x22a   : > { %5684 = vmatprep.subr.bf16.mxu1 %v7319_v0 }
 0x22b   : > { %5685 = vmatpush3.bf16.msra.mxu1 %v7319_v0 }
 0x22d   : > { %v2182_v57 = vpop.f32.mrb[36].mxu1 }
 0x22e   : > { %v2184_v2 = vpop.f32.mrb[37].mxu1 }
 0x22f   : > { %v2186_v4 = vpop.f32.mrb[38].mxu1 }
 0x230   : > { %v7325_v6 = vpack.c.bf16 %v2186_v4, %v2182_v57  ;;  %v2188_v12 = vpop.f32.mrb[39].mxu1 }
 0x231   : > { %v7327_v13 = vpack.c.bf16 %v2188_v12, %v2184_v2 }
 0x232   : > { %5686 = vmatprep.subr.bf16.mxu1 %v7325_v6 }
 0x233   : > { %5687 = vmatpush3.bf16.msra.mxu1 %v7325_v6 }
 0x235   : > { %v2192_v15 = vpop.f32.mrb[40].mxu1 }
 0x236   : > { %v2194_v35 = vpop.f32.mrb[41].mxu1 }
 0x237   : > { %v2196_v51 = vpop.f32.mrb[42].mxu1 }
 0x238   : > { %v7331_v26 = vpack.c.bf16 %v2196_v51, %v2192_v15  ;;  %v2198_v31 = vpop.f32.mrb[43].mxu1 }
 0x239   : > { %v7333_v34 = vpack.c.bf16 %v2198_v31, %v2194_v35 }
 0x23a   : > { %5688 = vmatprep.subr.bf16.mxu1 %v7331_v26 }
 0x23b   : > { %5689 = vmatpush3.bf16.msra.mxu1 %v7331_v26 }
 0x23d   : > { %v2202_v41 = vpop.f32.mrb[44].mxu1 }
 0x23e   : > { %v2204_v47 = vpop.f32.mrb[45].mxu1 }
 0x23f   : > { %v2206_v57 = vpop.f32.mrb[46].mxu1 }
 0x240   : > { %v7337_v2 = vpack.c.bf16 %v2206_v57, %v2202_v41  ;;  %v2208_v4 = vpop.f32.mrb[47].mxu1 }
 0x241   : > { %v7339_v12 = vpack.c.bf16 %v2208_v4, %v2204_v47 }
 0x242   : > { %5690 = vmatprep.subr.bf16.mxu1 %v7337_v2 }
 0x243   : > { %5691 = vmatpush3.bf16.msra.mxu1 %v7337_v2 }
 0x245   : > { %v5662_v15 = vpop.f32.mrb[48].mxu1 }
 0x246   : > { %v2310_v51 = vpop.f32.mrb[49].mxu1  ;;  %v2319_v35 = vadd.f32 %v5662_v15, %v5468_v55 }
 0x247   : > { %v2311_v31 = vadd.f32 %v5462_v39, %v2310_v51  ;;  %v5663_v45 = vpop.f32.mrb[50].mxu1  ;;  %v2377_v39 = vlaneseq }
 0x248   : > { %v2313_v38 = vpop.f32.mrb[51].mxu1  ;;  %v2322_v28 = vadd.f32 %v5663_v45, %v5471_v63 }
 0x249   : > { %v2314_v61 = vadd.f32 %v5465_v62, %v2313_v38  ;;  %v7351_v15 = vshrl.u32 %v2377_v39, 7  ;;  %v2387_v38 = vand.u32 127, %v2377_v39 }
 0x24a   : > { %v7343_v17 = vpack.c.bf16 %v2322_v28, %v2319_v35 }
 0x24b   : > { %v7345_v54 = vpack.c.bf16 %v2314_v61, %v2311_v31  ;;  %8338 = vst [vmem:[#allocation25_spill] sm:$0xff] %v7351_v15  ;;  %v2380_v28 = vadd.s32 16, %v7351_v15  ;;  %v2381_v61 = vadd.s32 24, %v7351_v15  ;;  %v2379_v45 = vadd.s32 8, %v7351_v15 }
 0x24c   : > { %vm2388_vm2 = vcmp.le.s32.totalorder %v2387_v38, %v7351_v15  ;;  %v2382_v63 = vadd.s32 32, %v7351_v15  ;;  %v2384_v35 = vadd.s32 48, %v7351_v15  ;;  %v2383_v31 = vadd.s32 40, %v7351_v15 }
 0x24d   : > { %v5666_v41 = vpop.f32.mrb[52].mxu1  ;;  %vm2390_vm1 = vcmp.le.s32.totalorder %v2387_v38, %v2380_v28  ;;  %vm2391_vm3 = vcmp.le.s32.totalorder %v2387_v38, %v2381_v61  ;;  %vm2389_vm4 = vcmp.le.s32.totalorder %v2387_v38, %v2379_v45  ;;  %v2385_v28 = vadd.s32 56, %v7351_v15 }
 0x24e   : > { %v2326_v57 = vpop.f32.mrb[53].mxu1  ;;  %v2335_v47 = vadd.f32 %v5666_v41, %v5480_v19  ;;  %vm2392_vm5 = vcmp.le.s32.totalorder %v2387_v38, %v2382_v63  ;;  %vm2394_vm6 = vcmp.le.s32.totalorder %v2387_v38, %v2384_v35  ;;  %vm2393_vm7 = vcmp.le.s32.totalorder %v2387_v38, %v2383_v31 }
 0x24f   : > { %v2327_v4 = vadd.f32 %v5474_v9, %v2326_v57  ;;  %v5667_v1 = vpop.f32.mrb[54].mxu1  ;;  %vm2395_vm8 = vcmp.le.s32.totalorder %v2387_v38, %v2385_v28 }
 0x250   : > { %v2329_v21 = vpop.f32.mrb[55].mxu1  ;;  %v2338_v37 = vadd.f32 %v5667_v1, %v5483_v42  ;;  %v6870_v1 = vmov -1e+30  }
 0x251   : > { %v2330_v43 = vadd.f32 %v5477_v14, %v2329_v21  ;;  %v7357_v21 = vsel %vm2390_vm1, 0.0, %v6870_v1  ;;  %v7361_v62 = vsel %vm2391_vm3, 0.0, %v6870_v1  ;;  %v7365_v19 = vsel %vm2389_vm4, 0.0, %v6870_v1 }
 0x252   : > { %v7347_v33 = vpack.c.bf16 %v2338_v37, %v2335_v47  ;;  %v7359_v37 = vsel %vm2388_vm2, 0.0, %v6870_v1  ;;  %v7376_v45 = vsel %vm2392_vm5, 0.0, %v6870_v1  ;;  %v7384_v35 = vsel %vm2395_vm8, 0.0, %v6870_v1 }
 0x253   : > { %v7349_v55 = vpack.c.bf16 %v2330_v43, %v2327_v4 }
 0x254   : > { %8337 = vst [vmem:[#allocation24_spill] sm:$0xff] %v7347_v33 }
 0x2be   : > { %v5678_v43 = vpop.f32.mrb[48].mxu0 }
 0x2bf   : > { %v2476_v9 = vadd.f32 %v5678_v43, %v7357_v21  ;;  %v2467_v14 = vpop.f32.mrb[49].mxu0 }
 0x2c0   : > { %v2468_v42 = vadd.f32 %v2467_v14, %v7359_v37  ;;  %v5679_v51 = vpop.f32.mrb[50].mxu0 }
 0x2c1   : > { %v2479_v41 = vadd.f32 %v5679_v51, %v7361_v62  ;;  %v2470_v57 = vpop.f32.mrb[51].mxu0  ;;  %v2504_v47 = vsel %vm2408_vm0, %v2476_v9, -inf  ;;  %v7379_v51 = vsel %vm2394_vm6, 0.0, %v6870_v1 }
 0x2c2   : > { %v2471_v4 = vadd.f32 %v2470_v57, %v7365_v19  ;;  %2505 = vmax.xlane.f32.xlu1 %v2504_v47  ;;  %v2498_v39 = vsel %vm2408_vm0, %v2468_v42, -inf  ;;  %v7381_v47 = vsel %vm2393_vm7, 0.0, %v6870_v1 }
 0x2c3   : > { %2499 = vmax.xlane.f32.xlu0 %v2498_v39  ;;  %v2507_v61 = vsel %vm2408_vm0, %v2479_v41, -inf }
 0x2c4   : > { %v2501_v14 = vsel %vm2408_vm0, %v2471_v4, -inf }
 0x2c6   : > { %2508 = vmax.xlane.f32.xlu1 %v2507_v61  ;;  %v5682_v43 = vpop.f32.mrb[52].mxu0 }
 0x2c7   : > { %v2483_v57 = vpop.f32.mrb[53].mxu0  ;;  %2502 = vmax.xlane.f32.xlu0 %v2501_v14  ;;  %v2492_v15 = vadd.f32 %v5682_v43, %v7379_v51 }
 0x2c8   : > { %v2484_v63 = vadd.f32 %v2483_v57, %v7376_v45  ;;  %v5683_v39 = vpop.f32.mrb[54].mxu0 }
 0x2c9   : > { %v2486_v31 = vpop.f32.mrb[55].mxu0  ;;  %v2495_v38 = vadd.f32 %v5683_v39, %v7384_v35  ;;  %v2516_v14 = vsel %vm2408_vm0, %v2492_v15, -inf }
 0x2ca   : > { %v7388_v61 = vadd.f32 %v2486_v31, %v7381_v47  ;;  %v2510_v36 = vsel %vm2408_vm0, %v2484_v63, -inf }
 0x2cb   : > { %2511 = vmax.xlane.f32.xlu0 %v2510_v36  ;;  %v2519_v1 = vsel %vm2408_vm0, %v2495_v38, -inf }
 0x2cc   : > { %v2513_v28 = vsel %vm2408_vm0, %v7388_v61, -inf }
 0x2cd   : > { %2514 = vmax.xlane.f32.xlu1 %v2513_v28 }
 0x2cf   : > { %2517 = vmax.xlane.f32.xlu0 %v2516_v14 }
 0x2d1   : > { %2520 = vmax.xlane.f32.xlu1 %v2519_v1 }
 0x34f   : > { %v2506_v57 = vpop.xlane.xlu1 %2505 }
 0x350   : > { %v2524_v43 = vsub.f32 %v2476_v9, %v2506_v57  ;;  %v2500_v25 = vpop.xlane.xlu0 %2499 }
 0x351   : > { %v2522_v31 = vsub.f32 %v2468_v42, %v2500_v25 }
 0x352   : > { %v2534_v27 = vmul.f32 1.442695, %v2524_v43 }
 0x353   : > { %v2530_v48 = vmul.f32 1.442695, %v2522_v31  ;;  %v2509_v18 = vpop.xlane.xlu1 %2508 }
 0x354   : > { %6510 = vpow2.f32 %v2534_v27  ;;  %v2525_v36 = vsub.f32 %v2479_v41, %v2509_v18  ;;  %v2503_v39 = vpop.xlane.xlu0 %2502 }
 0x355   : > { %v2523_v29 = vsub.f32 %v2471_v4, %v2503_v39  ;;  %6512 = vpow2.f32 %v2530_v48 }
 0x356   : > { %v2536_v16 = vmul.f32 1.442695, %v2525_v36 }
 0x357   : > { %v2532_v28 = vmul.f32 1.442695, %v2523_v29 }
 0x358   : > { %6514 = vpow2.f32 %v2536_v16  ;;  %v2512_v11 = vpop.xlane.xlu0 %2511 }
 0x359   : > { %6516 = vpow2.f32 %v2532_v28  ;;  %v2526_v14 = vsub.f32 %v2484_v63, %v2512_v11 }
 0x35a   : > { %v2515_v4 = vpop.xlane.xlu1 %2514 }
 0x35b   : > { %v2538_v9 = vmul.f32 1.442695, %v2526_v14  ;;  %v2527_v31 = vsub.f32 %v7388_v61, %v2515_v4 }
 0x35c   : > { %v2518_v3 = vpop.xlane.xlu0 %2517 }
 0x35d   : > { %v2528_v1 = vsub.f32 %v2492_v15, %v2518_v3  ;;  %v2540_v39 = vmul.f32 1.442695, %v2527_v31 }
 0x35e   : > { %v6511_v33 = vpop.eup %6510  ;;  %v2521_v63 = vpop.xlane.xlu1 %2520 }
 0x35f   : > { %v2542_v57 = vmul.f32 1.442695, %v2528_v1  ;;  %v2552_v25 = vsel %vm2408_vm0, %v6511_v33, 0.0  ;;  %v6513_v42 = vpop.eup %6512  ;;  %v2529_v43 = vsub.f32 %v2495_v38, %v2521_v63 }
 0x360   : > { %2553 = vadd.xlane.f32.xlu0 %v2552_v25  ;;  %v2546_v27 = vsel %vm2408_vm0, %v6513_v42, 0.0 }
 0x361   : > { %6518 = vpow2.f32 %v2542_v57  ;;  %v2544_v36 = vmul.f32 1.442695, %v2529_v43 }
 0x362   : > { %v6515_v18 = vpop.eup %6514  ;;  %6520 = vpow2.f32 %v2538_v9 }
 0x363   : > { %v2555_v48 = vsel %vm2408_vm0, %v6515_v18, 0.0  ;;  %v6517_v16 = vpop.eup %6516  ;;  %6522 = vpow2.f32 %v2544_v36 }
 0x364   : > { %2556 = vadd.xlane.f32.xlu1 %v2555_v48  ;;  %2547 = vadd.xlane.f32.xlu0 %v2546_v27  ;;  %v2549_v11 = vsel %vm2408_vm0, %v6517_v16, 0.0  ;;  %6524 = vpow2.f32 %v2540_v39 }
 0x368   : > { %2550 = vadd.xlane.f32.xlu1 %v2549_v11 }
 0x36b   : > { %v7400_v3 = vpop.eup %6518 }
 0x36c   : > { %v2564_v29 = vsel %vm2408_vm0, %v7400_v3, 0.0  ;;  %v7404_v15 = vpop.eup %6520 }
 0x36d   : > { %2565 = vadd.xlane.f32.xlu0 %v2564_v29  ;;  %v2558_v41 = vsel %vm2408_vm0, %v7404_v15, 0.0 }
 0x371   : > { %2559 = vadd.xlane.f32.xlu0 %v2558_v41 }
 0x379   : > { %2689 = vrot.lane.b32.xlu1 %v7261_v30, %s6871_s21  ;;  %v6523_v30 = vpop.eup %6522 }
 0x37a   : > { %v6525_v28 = vpop.eup %6524 }
 0x37d   : > { %2691 = vrot.lane.b32.xlu1 %v7273_v40, %s6871_s21  ;;  %v2567_v40 = vsel %vm2408_vm0, %v6523_v30, 0.0 }
 0x387   : > { %2687 = vrot.lane.b32.xlu0 %v7249_v20, %s6871_s21  ;;  %v2561_v20 = vsel %vm2408_vm0, %v6525_v28, 0.0 }
 0x38b   : > { %2675 = vrot.lane.b32.xlu0 %v7218_v50, %s6871_s21 }
 0x38f   : > { %2679 = vrot.lane.b32.xlu0 %v7293_v52, %s6871_s21 }
 0x3a1   : > { %2568 = vadd.xlane.f32.xlu1 %v2567_v40 }
 0x3a5   : > { %2562 = vadd.xlane.f32.xlu1 %v2561_v20 }
 0x3b6   : > { %2693 = vrot.lane.b32.xlu1 %v7285_v46, %s6871_s21 }
 0x3ba   : > { %2677 = vrot.lane.b32.xlu1 %v7291_v49, %s6871_s21 }
 0x3be   : > { %2681 = vrot.lane.b32.xlu1 %v7299_v58, %s6871_s21 }
 0x3ed   : > { %v2554_v50 = vpop.xlane.xlu0 %2553 }
 0x3f1   : > { %v2557_v52 = vpop.xlane.xlu1 %2556  ;;  %v2548_v61 = vpop.xlane.xlu0 %2547 }
 0x3f2   : > { %6526 = vrcp.f32 %v2557_v52 }
 0x3f3   : > { %6528 = vrcp.f32 %v2548_v61 }
 0x3f4   : > { %6530 = vrcp.f32 %v2554_v50 }
 0x3f5   : > { %v2551_v38 = vpop.xlane.xlu1 %2550 }
 0x3f6   : > { %6532 = vrcp.f32 %v2551_v38 }
 0x3f9   : > { %v2690_v63 = vpop.permute.xlu1 %2689 }
 0x3fa   : > { %v2566_v14 = vpop.xlane.xlu0 %2565 }
 0x3fc   : > { %v6527_v1 = vpop.eup %6526 }
 0x3fd   : > { %v6529_v9 = vpop.eup %6528  ;;  %v2581_v48 = vmul.f32 %v6527_v1, %v6515_v18  ;;  %v2711_v18 = vsel %vm2408_vm0, %v2690_v63, 0 }
 0x3fe   : > { %v2560_v57 = vpop.xlane.xlu0 %2559  ;;  %v6531_v25 = vpop.eup %6530  ;;  %v2578_v27 = vmul.f32 %v6529_v9, %v6513_v42 }
 0x3ff   : > { %v2580_v11 = vmul.f32 %v6531_v25, %v6511_v33  ;;  %v2692_v42 = vpop.permute.xlu1 %2691 }
 0x400   : > { %v6533_v46 = vpop.eup %6532  ;;  %v2714_v33 = vsel %vm2408_vm0, %v2692_v42, 0 }
 0x401   : > { %v2579_v49 = vmul.f32 %v6533_v46, %v6517_v16  ;;  %v2587_v41 = vpack.c.bf16 %v2581_v48, %v2580_v11 }
 0x402   : > { %v2688_v29 = vpop.permute.xlu0 %2687 }
 0x403   : > { %6000 = vmatprep.subr.msk.bf16.mxu1 %vm2408_vm0, %v2688_v29  ;;  %v2586_v58 = vpack.c.bf16 %v2579_v49, %v2578_v27  ;;  %v2708_v4 = vsel %vm2408_vm0, %v2688_v29, 0 }
 0x405   : > { %5692 = vmatprep.mubr.msk.bf16.mxu1 %vm2408_vm0, %v2586_v58 }
 0x406   : > { %5693 = vmatmul.mubr.msk.bf16.vlgmr.msra.gmra.mrb[56].mxu1 %vm2408_vm0, %v2587_v41 }
 0x407   : > { %5701 = vmatpush3.bf16.xpose.msra.mxu1 %v2708_v4 }
 0x408   : > { %6001 = vmatprep.subr.msk.bf16.mxu1 %vm2408_vm0, %v2690_v63 }
 0x40f   : > { %5703 = vmatpush3.bf16.xpose.msra.mxu1 %v2711_v18 }
 0x410   : > { %6002 = vmatprep.subr.msk.bf16.mxu1 %vm2408_vm0, %v2692_v42 }
 0x417   : > { %5705 = vmatpush3.bf16.xpose.msra.mxu1 %v2714_v33 }
 0x42e   : > { %v2569_v16 = vpop.xlane.xlu1 %2568 }
 0x42f   : > { %6534 = vrcp.f32 %v2569_v16 }
 0x430   : > { %6536 = vrcp.f32 %v2560_v57  ;;  %v2676_v57 = vpop.permute.xlu0 %2675 }
 0x431   : > { %6538 = vrcp.f32 %v2566_v14 }
 0x432   : > { %v2563_v43 = vpop.xlane.xlu1 %2562 }
 0x433   : > { %6540 = vrcp.f32 %v2563_v43 }
 0x434   : > { %v2680_v46 = vpop.permute.xlu0 %2679 }
 0x436   : > { %v2694_v31 = vpop.permute.xlu1 %2693 }
 0x437   : > { %6003 = vmatprep.subr.msk.bf16.mxu1 %vm2408_vm0, %v2694_v31  ;;  %v2717_v36 = vsel %vm2408_vm0, %v2694_v31, 0 }
 0x438   : > { %5707 = vmatpush3.bf16.xpose.msra.mxu1 %v2717_v36 }
 0x439   : > { %5748 = vmatprep.subr.bf16.mxu1 %v7321_v53  ;;  %v6535_v39 = vpop.eup %6534 }
 0x43a   : > { %v6537_v40 = vpop.eup %6536  ;;  %v2585_v52 = vmul.f32 %v6535_v39, %v6523_v30  ;;  %v2678_v25 = vpop.permute.xlu1 %2677 }
 0x43b   : > { %v6539_v20 = vpop.eup %6538  ;;  %v2582_v61 = vmul.f32 %v6537_v40, %v7404_v15 }
 0x43c   : > { %v2584_v14 = vmul.f32 %v6539_v20, %v7400_v3 }
 0x43d   : > { %v6541_v50 = vpop.eup %6540 }
 0x43e   : > { %v2583_v38 = vmul.f32 %v6541_v50, %v6525_v28  ;;  %v2589_v9 = vpack.c.bf16 %v2585_v52, %v2584_v14  ;;  %v2682_v3 = vpop.permute.xlu1 %2681 }
 0x440   : > { %v2588_v1 = vpack.c.bf16 %v2583_v38, %v2582_v61 }
 0x442   : > { %5696 = vmatprep.mubr.msk.bf16.mxu1 %vm2408_vm0, %v2588_v1 }
 0x443   : > { %5697 = vmatmul.mubr.msk.bf16.gmra.mrb[60].mxu1 %vm2408_vm0, %v2589_v9 }
 0x444   : > { %5708 = vmatprep.mubr.msk.bf16.mxu1 %vm2408_vm0, %v2676_v57 }
 0x44b   : > { %5709 = vmatmul.mubr.msk.bf16.vlgmr.msra.gmra.mrb[64].mxu1 %vm2408_vm0, %v2678_v25 }
 0x44c   : > { %5749 = vmatpush3.bf16.msra.mxu1 %v7321_v53  ;;  %5712 = vmatprep.mubr.msk.bf16.mxu1 %vm2408_vm0, %v2680_v46 }
 0x44d   : > { %5750 = vmatprep.subr.bf16.mxu1 %v7327_v13 }
 0x450   : > { %5751 = vmatpush3.bf16.msra.mxu1 %v7327_v13 }
 0x451   : > { %5752 = vmatprep.subr.bf16.mxu1 %v7333_v34 }
 0x453   : > { %5713 = vmatmul.mubr.msk.bf16.gmra.mrb[68].mxu1 %vm2408_vm0, %v2682_v3 }
 0x454   : > { %5753 = vmatpush3.bf16.msra.mxu1 %v7333_v34 }
 0x455   : > { %5754 = vmatprep.subr.bf16.mxu1 %v7339_v12 }
 0x458   : > { %5755 = vmatpush3.bf16.msra.mxu1 %v7339_v12 }
 0x4d9   : > { %v7453_v15 = vpop.f32.mrb[56].mxu1 }
 0x4da   : > { %8339 = vst [vmem:[#allocation26_spill] sm:$0xff] %v7453_v15  ;;  %v7455_v30 = vpop.f32.mrb[57].mxu1 }
 0x4db   : > { %8340 = vst [vmem:[#allocation27_spill] sm:$0xff] %v7455_v30  ;;  %v7457_v28 = vpop.f32.mrb[58].mxu1 }
 0x4dc   : > { %8341 = vst [vmem:[#allocation28_spill] sm:$0xff] %v7457_v28  ;;  %v7461_v27 = vpop.f32.mrb[59].mxu1 }
 0x516   : > { %v7465_v11 = vpop.f32.mrb[60].mxu1 }
 0x517   : > { %8342 = vst [vmem:[#allocation29_spill] sm:$0xff] %v7465_v11  ;;  %v7467_v29 = vpop.f32.mrb[61].mxu1 }
 0x518   : > { %8343 = vst [vmem:[#allocation30_spill] sm:$0xff] %v7467_v29  ;;  %v7469_v58 = vpop.f32.mrb[62].mxu1 }
 0x519   : > { %8344 = vst [vmem:[#allocation31_spill] sm:$0xff] %v7469_v58  ;;  %v7473_v4 = vpop.f32.mrb[63].mxu1 }
 0x51a   : > { %8345 = vst [vmem:[#allocation32_spill] sm:$0xff] %v7473_v4 }
 0x51e   : > { %v5710_v18 = vpop.f32.mrb[64].mxu1 }
 0x51f   : > { %v2762_v42 = vadd.f32 %v5710_v18, %v7357_v21  ;;  %v2753_v33 = vpop.f32.mrb[65].mxu1 }
 0x520   : > { %v5711_v16 = vpop.f32.mrb[66].mxu1  ;;  %v2754_v43 = vadd.f32 %v2753_v33, %v7359_v37 }
 0x521   : > { %v2756_v31 = vpop.f32.mrb[67].mxu1  ;;  %v2790_v36 = vsel %vm2408_vm0, %v2762_v42, -inf  ;;  %v2765_v20 = vadd.f32 %v5711_v16, %v7361_v62 }
 0x522   : > { %v2757_v39 = vadd.f32 %v2756_v31, %v7365_v19  ;;  %2791 = vmax.xlane.f32.xlu0 %v2790_v36  ;;  %v2784_v50 = vsel %vm2408_vm0, %v2754_v43, -inf }
 0x523   : > { %v2793_v57 = vsel %vm2408_vm0, %v2765_v20, -inf }
 0x524   : > { %v2787_v40 = vsel %vm2408_vm0, %v2757_v39, -inf }
 0x525   : > { %2788 = vmax.xlane.f32.xlu1 %v2787_v40 }
 0x526   : > { %2785 = vmax.xlane.f32.xlu0 %v2784_v50  ;;  %v5714_v52 = vpop.f32.mrb[68].mxu1 }
 0x527   : > { %v2769_v61 = vpop.f32.mrb[69].mxu1  ;;  %v2778_v3 = vadd.f32 %v5714_v52, %v7379_v51 }
 0x528   : > { %v5715_v38 = vpop.f32.mrb[70].mxu1  ;;  %v2770_v14 = vadd.f32 %v2769_v61, %v7376_v45 }
 0x529   : > { %v2781_v1 = vadd.f32 %v5715_v38, %v7384_v35  ;;  %v2772_v9 = vpop.f32.mrb[71].mxu1  ;;  %v2802_v16 = vsel %vm2408_vm0, %v2778_v3, -inf }
 0x52a   : > { %2794 = vmax.xlane.f32.xlu0 %v2793_v57  ;;  %v2773_v25 = vadd.f32 %v2772_v9, %v7381_v47  ;;  %v2796_v18 = vsel %vm2408_vm0, %v2770_v14, -inf }
 0x52b   : > { %v2805_v46 = vsel %vm2408_vm0, %v2781_v1, -inf }
 0x52c   : > { %2806 = vmax.xlane.f32.xlu1 %v2805_v46  ;;  %v2799_v33 = vsel %vm2408_vm0, %v2773_v25, -inf }
 0x52e   : > { %2797 = vmax.xlane.f32.xlu0 %v2796_v18 }
 0x530   : > { %2800 = vmax.xlane.f32.xlu1 %v2799_v33 }
 0x532   : > { %2803 = vmax.xlane.f32.xlu0 %v2802_v16 }
 0x541   : > { %2882 = vrot.lane.b32.xlu1 %v7325_v6, %s6871_s21 }
 0x545   : > { %2884 = vrot.lane.b32.xlu1 %v7331_v26, %s6871_s21 }
 0x5af   : > { %v2792_v31 = vpop.xlane.xlu0 %2791 }
 0x5b0   : > { %v2810_v36 = vsub.f32 %v2762_v42, %v2792_v31 }
 0x5b2   : > { %v2820_v40 = vmul.f32 1.442695, %v2810_v36  ;;  %v2789_v50 = vpop.xlane.xlu1 %2788 }
 0x5b3   : > { %v2786_v52 = vpop.xlane.xlu0 %2785  ;;  %v2809_v38 = vsub.f32 %v2757_v39, %v2789_v50 }
 0x5b4   : > { %6542 = vpow2.f32 %v2820_v40  ;;  %v2808_v61 = vsub.f32 %v2754_v43, %v2786_v52 }
 0x5b5   : > { %v2818_v18 = vmul.f32 1.442695, %v2809_v38 }
 0x5b6   : > { %v2816_v9 = vmul.f32 1.442695, %v2808_v61 }
 0x5b7   : > { %v2795_v57 = vpop.xlane.xlu0 %2794 }
 0x5b8   : > { %6544 = vpow2.f32 %v2816_v9  ;;  %v2811_v46 = vsub.f32 %v2765_v20, %v2795_v57 }
 0x5b9   : > { %v2807_v40 = vpop.xlane.xlu1 %2806 }
 0x5ba   : > { %v2822_v33 = vmul.f32 1.442695, %v2811_v46  ;;  %v2815_v57 = vsub.f32 %v2781_v1, %v2807_v40 }
 0x5bb   : > { %v2798_v36 = vpop.xlane.xlu0 %2797 }
 0x5bc   : > { %6546 = vpow2.f32 %v2822_v33  ;;  %v2812_v50 = vsub.f32 %v2770_v14, %v2798_v36  ;;  %v2830_v33 = vmul.f32 1.442695, %v2815_v57 }
 0x5bd   : > { %6548 = vpow2.f32 %v2818_v18  ;;  %v2801_v9 = vpop.xlane.xlu1 %2800 }
 0x5be   : > { %v7497_v16 = vpop.eup %6542  ;;  %v2824_v61 = vmul.f32 1.442695, %v2812_v50  ;;  %v2813_v46 = vsub.f32 %v2773_v25, %v2801_v9 }
 0x5bf   : > { %v2838_v6 = vsel %vm2408_vm0, %v7497_v16, 0.0  ;;  %v2804_v52 = vpop.xlane.xlu0 %2803 }
 0x5c0   : > { %2839 = vadd.xlane.f32.xlu0 %v2838_v6  ;;  %v2814_v38 = vsub.f32 %v2778_v3, %v2804_v52  ;;  %6550 = vpow2.f32 %v2824_v61  ;;  %v2826_v6 = vmul.f32 1.442695, %v2813_v46 }
 0x5c2   : > { %v7501_v26 = vpop.eup %6544  ;;  %v2828_v18 = vmul.f32 1.442695, %v2814_v38 }
 0x5c3   : > { %v2832_v42 = vsel %vm2408_vm0, %v7501_v26, 0.0 }
 0x5c4   : > { %2833 = vadd.xlane.f32.xlu0 %v2832_v42  ;;  %6552 = vpow2.f32 %v2828_v18 }
 0x5c5   : > { %6554 = vpow2.f32 %v2830_v33 }
 0x5c6   : > { %v6547_v43 = vpop.eup %6546  ;;  %6556 = vpow2.f32 %v2826_v6 }
 0x5c7   : > { %v2841_v39 = vsel %vm2408_vm0, %v6547_v43, 0.0  ;;  %v6549_v20 = vpop.eup %6548 }
 0x5c8   : > { %2842 = vadd.xlane.f32.xlu1 %v2841_v39  ;;  %v2835_v31 = vsel %vm2408_vm0, %v6549_v20, 0.0 }
 0x5cc   : > { %2836 = vadd.xlane.f32.xlu1 %v2835_v31  ;;  %v2883_v31 = vpop.permute.xlu1 %2882 }
 0x5d0   : > { %v2885_v40 = vpop.permute.xlu1 %2884 }
 0x5da   : > { %2880 = vrot.lane.b32.xlu0 %v7319_v0, %s6871_s21  ;;  %v7511_v0 = vpop.eup %6550 }
 0x5db   : > { %v7515_v42 = vpop.eup %6552 }
 0x5dc   : > { %v7517_v14 = vpop.eup %6554  ;;  %v2850_v1 = vsel %vm2408_vm0, %v7515_v42, 0.0 }
 0x5dd   : > { %2886 = vrot.lane.b32.xlu1 %v7337_v2, %s6871_s21  ;;  %v2844_v2 = vsel %vm2408_vm0, %v7511_v0, 0.0  ;;  %v7521_v25 = vpop.eup %6556  ;;  %v2853_v39 = vsel %vm2408_vm0, %v7517_v14, 0.0 }
 0x5de   : > { %v2847_v3 = vsel %vm2408_vm0, %v7521_v25, 0.0 }
 0x5f9   : > { %2845 = vadd.xlane.f32.xlu0 %v2844_v2 }
 0x5fd   : > { %2851 = vadd.xlane.f32.xlu0 %v2850_v1 }
 0x601   : > { %2848 = vadd.xlane.f32.xlu1 %v2847_v3  ;;  %2854 = vadd.xlane.f32.xlu0 %v2853_v39 }
 0x64d   : > { %v2840_v36 = vpop.xlane.xlu0 %2839 }
 0x651   : > { %v2834_v50 = vpop.xlane.xlu0 %2833 }
 0x655   : > { %v2843_v52 = vpop.xlane.xlu1 %2842  ;;  %v2881_v61 = vpop.permute.xlu0 %2880 }
 0x656   : > { %5716 = vmatprep.subr.bf16.mxu0 %v2881_v61  ;;  %6558 = vrcp.f32 %v2843_v52 }
 0x657   : > { %5717 = vmatpush3.bf16.msra.mxu0 %v2881_v61  ;;  %6560 = vrcp.f32 %v2834_v50 }
 0x658   : > { %5718 = vmatprep.subr.bf16.mxu0 %v2883_v31  ;;  %6562 = vrcp.f32 %v2840_v36  ;;  %v2990_v36 = vsel %vm2408_vm0, %v7301_v59, 0 }
 0x659   : > { %v2837_v38 = vpop.xlane.xlu1 %2836 }
 0x65a   : > { %6564 = vrcp.f32 %v2837_v38 }
 0x65b   : > { %5719 = vmatpush3.bf16.msra.mxu0 %v2883_v31 }
 0x65c   : > { %5720 = vmatprep.subr.bf16.mxu0 %v2885_v40 }
 0x65d   : > { %v2887_v9 = vpop.permute.xlu1 %2886 }
 0x65f   : > { %5721 = vmatpush3.bf16.msra.mxu0 %v2885_v40 }
 0x660   : > { %5722 = vmatprep.subr.bf16.mxu0 %v2887_v9  ;;  %v6559_v57 = vpop.eup %6558 }
 0x661   : > { %v6561_v46 = vpop.eup %6560  ;;  %v2867_v6 = vmul.f32 %v6559_v57, %v6547_v43  ;;  %v2993_v43 = vsel %vm2408_vm0, %v7307_v8, 0 }
 0x662   : > { %v6563_v18 = vpop.eup %6562  ;;  %v2864_v2 = vmul.f32 %v6561_v46, %v7501_v26  ;;  %v2999_v26 = vsel %vm2408_vm0, %v7315_v23, 0 }
 0x663   : > { %5723 = vmatpush3.bf16.msra.mxu0 %v2887_v9  ;;  %v2866_v3 = vmul.f32 %v6563_v18, %v7497_v16  ;;  %v2996_v16 = vsel %vm2408_vm0, %v7311_v24, 0 }
 0x664   : > { %v6565_v33 = vpop.eup %6564  ;;  %6004 = vmatprep.subr.msk.bf16.mxu0 %vm2408_vm0, %v7301_v59 }
 0x665   : > { %v2865_v1 = vmul.f32 %v6565_v33, %v6549_v20  ;;  %v2873_v31 = vpack.c.bf16 %v2867_v6, %v2866_v3  ;;  %v8346_v3 = vpack.c.bf16 %v7214_v7, %v7212_v44  ;;  %v8349_v44 = vpack.c.bf16 %v7239_v32, %v7237_v22 }
 0x667   : > { %v2872_v39 = vpack.c.bf16 %v2865_v1, %v2864_v2  ;;  %v7577_v7 = vmul.bf16 1040203264, %v8349_v44 }
 0x669   : > { %5724 = vmatprep.mubr.msk.bf16.mxu0 %vm2408_vm0, %v2872_v39  ;;  %v7554_v39 = vmul.bf16 1040203264, %v8346_v3 }
 0x66a   : > { %5725 = vmatmul.mubr.msk.bf16.vlgmr.msra.gmra.mrb[56].mxu0 %vm2408_vm0, %v2873_v31 }
 0x66c   : > { %5733 = vmatpush3.bf16.xpose.msra.mxu0 %v2990_v36 }
 0x66d   : > { %6005 = vmatprep.subr.msk.bf16.mxu0 %vm2408_vm0, %v7307_v8 }
 0x674   : > { %5735 = vmatpush3.bf16.xpose.msra.mxu0 %v2993_v43 }
 0x675   : > { %6006 = vmatprep.subr.msk.bf16.mxu0 %vm2408_vm0, %v7311_v24 }
 0x67c   : > { %5737 = vmatpush3.bf16.xpose.msra.mxu0 %v2996_v16 }
 0x67d   : > { %6007 = vmatprep.subr.msk.bf16.mxu0 %vm2408_vm0, %v7315_v23 }
 0x684   : > { %5739 = vmatpush3.bf16.xpose.msra.mxu0 %v2999_v26 }
 0x686   : > { %v2846_v20 = vpop.xlane.xlu0 %2845 }
 0x687   : > { %6566 = vrcp.f32 %v2846_v20 }
 0x68a   : > { %v2852_v40 = vpop.xlane.xlu0 %2851 }
 0x68b   : > { %6568 = vrcp.f32 %v2852_v40 }
 0x68e   : > { %v2849_v50 = vpop.xlane.xlu1 %2848  ;;  %v2855_v52 = vpop.xlane.xlu0 %2854 }
 0x68f   : > { %6570 = vrcp.f32 %v2849_v50 }
 0x690   : > { %6572 = vrcp.f32 %v2855_v52 }
 0x691   : > { %v6567_v61 = vpop.eup %6566 }
 0x692   : > { %v2868_v46 = vmul.f32 %v6567_v61, %v7511_v0  ;;  %v8347_v0 = vpack.c.bf16 %v7226_v60, %v7224_v56 }
 0x695   : > { %v6569_v38 = vpop.eup %6568 }
 0x696   : > { %v2870_v33 = vmul.f32 %v6569_v38, %v7515_v42  ;;  %v7563_v42 = vmul.bf16 1040203264, %v8347_v0 }
 0x699   : > { %v6571_v9 = vpop.eup %6570 }
 0x69a   : > { %v6573_v57 = vpop.eup %6572  ;;  %v2869_v18 = vmul.f32 %v6571_v9, %v7521_v25 }
 0x69b   : > { %v2871_v6 = vmul.f32 %v6573_v57, %v7517_v14  ;;  %v8348_v14 = vpack.c.bf16 %v7233_v10, %v7231_v5 }
 0x69c   : > { %v2874_v2 = vpack.c.bf16 %v2869_v18, %v2868_v46 }
 0x69d   : > { %v2875_v1 = vpack.c.bf16 %v2871_v6, %v2870_v33  ;;  %v7568_v25 = vmul.bf16 1040203264, %v8348_v14 }
 0x69e   : > { %5728 = vmatprep.mubr.msk.bf16.mxu0 %vm2408_vm0, %v2874_v2 }
 0x69f   : > { %5729 = vmatmul.mubr.msk.bf16.gmra.mrb[60].mxu0 %vm2408_vm0, %v2875_v1 }
 0x6a0   : > { %5740 = vmatprep.mubr.msk.bf16.mxu0 %vm2408_vm0, %v7554_v39 }
 0x6a7   : > { %5741 = vmatmul.mubr.msk.bf16.vlgmr.msra.gmra.mrb[64].mxu0 %vm2408_vm0, %v7563_v42 }
 0x6a8   : > { %5744 = vmatprep.mubr.msk.bf16.mxu0 %vm2408_vm0, %v7568_v25 }
 0x6af   : > { %5745 = vmatmul.mubr.msk.bf16.gmra.mrb[68].mxu0 %vm2408_vm0, %v7577_v7 }
 0x73d   : > { %v7581_v56 = vpop.f32.mrb[56].mxu0 }
 0x73e   : > { %v7583_v60 = vpop.f32.mrb[57].mxu0 }
 0x73f   : > { %v7585_v5 = vpop.f32.mrb[58].mxu0 }
 0x740   : > { %v7589_v31 = vpop.f32.mrb[59].mxu0 }
 0x772   : > { %v7593_v22 = vpop.f32.mrb[60].mxu0 }
 0x773   : > { %v7595_v32 = vpop.f32.mrb[61].mxu0 }
 0x774   : > { %v7597_v43 = vpop.f32.mrb[62].mxu0 }
 0x775   : > { %v7601_v26 = vpop.f32.mrb[63].mxu0 }
 0x77a   : > { %v5742_v40 = vpop.f32.mrb[64].mxu0 }
 0x77b   : > { %v3035_v50 = vpop.f32.mrb[65].mxu0  ;;  %v3044_v9 = vadd.f32 %v5742_v40, %v7357_v21 }
 0x77c   : > { %v3036_v52 = vadd.f32 %v3035_v50, %v7359_v37  ;;  %v5743_v61 = vpop.f32.mrb[66].mxu0 }
 0x77d   : > { %v3038_v38 = vpop.f32.mrb[67].mxu0  ;;  %v3047_v18 = vadd.f32 %v5743_v61, %v7361_v62  ;;  %v3072_v2 = vsel %vm2408_vm0, %v3044_v9, -inf }
 0x77e   : > { %v3039_v57 = vadd.f32 %v3038_v38, %v7365_v19  ;;  %v3066_v46 = vsel %vm2408_vm0, %v3036_v52, -inf }
 0x77f   : > { %3067 = vmax.xlane.f32.xlu0 %v3066_v46  ;;  %v3075_v14 = vsel %vm2408_vm0, %v3047_v18, -inf }
 0x780   : > { %v3069_v33 = vsel %vm2408_vm0, %v3039_v57, -inf }
 0x781   : > { %3070 = vmax.xlane.f32.xlu1 %v3069_v33 }
 0x782   : > { %v5746_v6 = vpop.f32.mrb[68].mxu0 }
 0x783   : > { %3073 = vmax.xlane.f32.xlu0 %v3072_v2  ;;  %v3051_v1 = vpop.f32.mrb[69].mxu0  ;;  %v3060_v40 = vadd.f32 %v5746_v6, %v7379_v51 }
 0x784   : > { %v3052_v3 = vadd.f32 %v3051_v1, %v7376_v45  ;;  %v5747_v0 = vpop.f32.mrb[70].mxu0 }
 0x785   : > { %3076 = vmax.xlane.f32.xlu1 %v3075_v14  ;;  %v3054_v44 = vpop.f32.mrb[71].mxu0  ;;  %v3063_v38 = vadd.f32 %v5747_v0, %v7384_v35  ;;  %v3084_v33 = vsel %vm2408_vm0, %v3060_v40, -inf }
 0x786   : > { %v3055_v50 = vadd.f32 %v3054_v44, %v7381_v47  ;;  %v3078_v61 = vsel %vm2408_vm0, %v3052_v3, -inf }
 0x787   : > { %3079 = vmax.xlane.f32.xlu0 %v3078_v61  ;;  %v3087_v2 = vsel %vm2408_vm0, %v3063_v38, -inf }
 0x788   : > { %v3081_v46 = vsel %vm2408_vm0, %v3055_v50, -inf }
 0x789   : > { %3082 = vmax.xlane.f32.xlu1 %v3081_v46 }
 0x78b   : > { %3085 = vmax.xlane.f32.xlu0 %v3084_v33 }
 0x78d   : > { %3088 = vmax.xlane.f32.xlu1 %v3087_v2 }
 0x80c   : > { %v3068_v1 = vpop.xlane.xlu0 %3067 }
 0x80d   : > { %v3090_v14 = vsub.f32 %v3036_v52, %v3068_v1 }
 0x80e   : > { %v3071_v41 = vpop.xlane.xlu1 %3070 }
 0x80f   : > { %v3091_v63 = vsub.f32 %v3039_v57, %v3071_v41  ;;  %v3098_v48 = vmul.f32 1.442695, %v3090_v14 }
 0x810   : > { %v3074_v6 = vpop.xlane.xlu0 %3073 }
 0x811   : > { %v3092_v44 = vsub.f32 %v3044_v9, %v3074_v6  ;;  %v3100_v20 = vmul.f32 1.442695, %v3091_v63 }
 0x812   : > { %v3077_v49 = vpop.xlane.xlu1 %3076 }
 0x813   : > { %v3102_v61 = vmul.f32 1.442695, %v3092_v44  ;;  %v3093_v16 = vsub.f32 %v3047_v18, %v3077_v49 }
 0x814   : > { %v3080_v0 = vpop.xlane.xlu0 %3079 }
 0x815   : > { %6574 = vpow2.f32 %v3102_v61  ;;  %v3104_v46 = vmul.f32 1.442695, %v3093_v16  ;;  %v3094_v33 = vsub.f32 %v3052_v3, %v3080_v0 }
 0x816   : > { %6576 = vpow2.f32 %v3098_v48  ;;  %v3083_v3 = vpop.xlane.xlu1 %3082 }
 0x817   : > { %6578 = vpow2.f32 %v3104_v46  ;;  %v3106_v36 = vmul.f32 1.442695, %v3094_v33  ;;  %v3095_v6 = vsub.f32 %v3055_v50, %v3083_v3 }
 0x818   : > { %v3086_v10 = vpop.xlane.xlu0 %3085  ;;  %6580 = vpow2.f32 %v3100_v20 }
 0x819   : > { %v3096_v2 = vsub.f32 %v3060_v40, %v3086_v10  ;;  %v3108_v61 = vmul.f32 1.442695, %v3095_v6 }
 0x81a   : > { %v3089_v40 = vpop.xlane.xlu1 %3088 }
 0x81b   : > { %v3110_v52 = vmul.f32 1.442695, %v3096_v2  ;;  %v3097_v14 = vsub.f32 %v3063_v38, %v3089_v40 }
 0x81d   : > { %6582 = vpow2.f32 %v3110_v52  ;;  %v3112_v44 = vmul.f32 1.442695, %v3097_v14 }
 0x81e   : > { %6584 = vpow2.f32 %v3106_v36 }
 0x81f   : > { %v6575_v1 = vpop.eup %6574  ;;  %6586 = vpow2.f32 %v3112_v44 }
 0x820   : > { %v6577_v41 = vpop.eup %6576  ;;  %v3120_v9 = vsel %vm2408_vm0, %v6575_v1, 0.0  ;;  %6588 = vpow2.f32 %v3108_v61 }
 0x821   : > { %v6579_v57 = vpop.eup %6578  ;;  %3121 = vadd.xlane.f32.xlu0 %v3120_v9  ;;  %v3114_v48 = vsel %vm2408_vm0, %v6577_v41, 0.0 }
 0x822   : > { %v3123_v49 = vsel %vm2408_vm0, %v6579_v57, 0.0  ;;  %v6581_v63 = vpop.eup %6580 }
 0x823   : > { %3124 = vadd.xlane.f32.xlu1 %v3123_v49  ;;  %v3117_v16 = vsel %vm2408_vm0, %v6581_v63, 0.0 }
 0x825   : > { %3115 = vadd.xlane.f32.xlu0 %v3114_v48 }
 0x827   : > { %v7625_v10 = vpop.eup %6582  ;;  %3118 = vadd.xlane.f32.xlu1 %v3117_v16 }
 0x828   : > { %v3132_v36 = vsel %vm2408_vm0, %v7625_v10, 0.0  ;;  %v7629_v20 = vpop.eup %6584 }
 0x829   : > { %3133 = vadd.xlane.f32.xlu0 %v3132_v36  ;;  %v3126_v18 = vsel %vm2408_vm0, %v7629_v20, 0.0 }
 0x82d   : > { %3127 = vadd.xlane.f32.xlu0 %v3126_v18 }
 0x838   : > { %3257 = vrot.lane.b32.xlu1 %v7307_v8, %s6871_s21  ;;  %v6587_v8 = vpop.eup %6586 }
 0x839   : > { %v6589_v0 = vpop.eup %6588 }
 0x83c   : > { %3259 = vrot.lane.b32.xlu1 %v7311_v24, %s6871_s21  ;;  %v3135_v24 = vsel %vm2408_vm0, %v6587_v8, 0.0 }
 0x843   : > { %3255 = vrot.lane.b32.xlu0 %v7301_v59, %s6871_s21  ;;  %v3129_v59 = vsel %vm2408_vm0, %v6589_v0, 0.0 }
 0x847   : > { %3243 = vrot.lane.b32.xlu0 %v7554_v39, %s6871_s21 }
 0x84b   : > { %3247 = vrot.lane.b32.xlu0 %v7568_v25, %s6871_s21 }
 0x860   : > { %3136 = vadd.xlane.f32.xlu1 %v3135_v24 }
 0x864   : > { %3130 = vadd.xlane.f32.xlu1 %v3129_v59 }
 0x875   : > { %3261 = vrot.lane.b32.xlu1 %v7315_v23, %s6871_s21 }
 0x879   : > { %3245 = vrot.lane.b32.xlu1 %v7563_v42, %s6871_s21 }
 0x87d   : > { %3249 = vrot.lane.b32.xlu1 %v7577_v7, %s6871_s21 }
 0x8ae   : > { %v3122_v39 = vpop.xlane.xlu0 %3121 }
 0x8b0   : > { %v3125_v25 = vpop.xlane.xlu1 %3124 }
 0x8b1   : > { %6590 = vrcp.f32 %v3125_v25 }
 0x8b2   : > { %v3116_v50 = vpop.xlane.xlu0 %3115 }
 0x8b3   : > { %6592 = vrcp.f32 %v3116_v50 }
 0x8b4   : > { %6594 = vrcp.f32 %v3122_v39  ;;  %v3119_v38 = vpop.xlane.xlu1 %3118 }
 0x8b5   : > { %6596 = vrcp.f32 %v3119_v38 }
 0x8b6   : > { %v3134_v46 = vpop.xlane.xlu0 %3133 }
 0x8b8   : > { %v3258_v40 = vpop.permute.xlu1 %3257 }
 0x8b9   : > { %v3279_v14 = vsel %vm2408_vm0, %v3258_v40, 0 }
 0x8ba   : > { %v3128_v33 = vpop.xlane.xlu0 %3127 }
 0x8bb   : > { %v6591_v2 = vpop.eup %6590 }
 0x8bc   : > { %v3149_v48 = vmul.f32 %v6591_v2, %v6579_v57  ;;  %v3260_v57 = vpop.permute.xlu1 %3259 }
 0x8bd   : > { %v6593_v52 = vpop.eup %6592 }
 0x8be   : > { %v6595_v9 = vpop.eup %6594  ;;  %v3256_v23 = vpop.permute.xlu0 %3255  ;;  %v3146_v42 = vmul.f32 %v6593_v52, %v6577_v41 }
 0x8bf   : > { %v6597_v49 = vpop.eup %6596  ;;  %6008 = vmatprep.subr.msk.bf16.mxu1 %vm2408_vm0, %v3256_v23  ;;  %v3148_v16 = vmul.f32 %v6595_v9, %v6575_v1  ;;  %v3276_v3 = vsel %vm2408_vm0, %v3256_v23, 0  ;;  %v3282_v1 = vsel %vm2408_vm0, %v3260_v57, 0 }
 0x8c0   : > { %v3147_v7 = vmul.f32 %v6597_v49, %v6581_v63 }
 0x8c1   : > { %v3155_v18 = vpack.c.bf16 %v3149_v48, %v3148_v16 }
 0x8c2   : > { %v3154_v36 = vpack.c.bf16 %v3147_v7, %v3146_v42  ;;  %v3244_v52 = vpop.permute.xlu0 %3243 }
 0x8c4   : > { %5756 = vmatprep.mubr.msk.bf16.mxu1 %vm2408_vm0, %v3154_v36 }
 0x8c5   : > { %5757 = vmatmul.mubr.msk.bf16.vlgmr.msra.gmra.mrb[72].mxu1 %vm2408_vm0, %v3155_v18 }
 0x8c6   : > { %5765 = vmatpush3.bf16.xpose.msra.mxu1 %v3276_v3  ;;  %v3248_v23 = vpop.permute.xlu0 %3247 }
 0x8c7   : > { %6009 = vmatprep.subr.msk.bf16.mxu1 %vm2408_vm0, %v3258_v40 }
 0x8ce   : > { %5767 = vmatpush3.bf16.xpose.msra.mxu1 %v3279_v14 }
 0x8cf   : > { %6010 = vmatprep.subr.msk.bf16.mxu1 %vm2408_vm0, %v3260_v57 }
 0x8d6   : > { %5769 = vmatpush3.bf16.xpose.msra.mxu1 %v3282_v1 }
 0x8ed   : > { %v3137_v41 = vpop.xlane.xlu1 %3136 }
 0x8ee   : > { %6598 = vrcp.f32 %v3137_v41 }
 0x8ef   : > { %6600 = vrcp.f32 %v3128_v33 }
 0x8f0   : > { %6602 = vrcp.f32 %v3134_v46 }
 0x8f1   : > { %v3131_v63 = vpop.xlane.xlu1 %3130 }
 0x8f2   : > { %6604 = vrcp.f32 %v3131_v63 }
 0x8f5   : > { %v3262_v6 = vpop.permute.xlu1 %3261 }
 0x8f6   : > { %v3285_v44 = vsel %vm2408_vm0, %v3262_v6, 0  ;;  %6011 = vmatprep.subr.msk.bf16.mxu1 %vm2408_vm0, %v3262_v6 }
 0x8f7   : > { %5771 = vmatpush3.bf16.xpose.msra.mxu1 %v3285_v44 }
 0x8f8   : > { %5812 = vmatprep.subr.bf16.mxu1 %v7345_v54  ;;  %v6599_v61 = vpop.eup %6598 }
 0x8f9   : > { %v6601_v24 = vpop.eup %6600  ;;  %v3153_v25 = vmul.f32 %v6599_v61, %v6587_v8  ;;  %v3246_v9 = vpop.permute.xlu1 %3245 }
 0x8fa   : > { %v6603_v59 = vpop.eup %6602  ;;  %v3150_v50 = vmul.f32 %v6601_v24, %v7629_v20  ;;  %v8350_v20 = vld [vmem:[#allocation24_spill] sm:$0xff] }
 0x8fb   : > { %v3152_v46 = vmul.f32 %v6603_v59, %v7625_v10 }
 0x8fc   : > { %v6605_v39 = vpop.eup %6604 }
 0x8fd   : > { %v3151_v38 = vmul.f32 %v6605_v39, %v6589_v0  ;;  %v3157_v2 = vpack.c.bf16 %v3153_v25, %v3152_v46  ;;  %v3250_v10 = vpop.permute.xlu1 %3249 }
 0x8ff   : > { %v3156_v33 = vpack.c.bf16 %v3151_v38, %v3150_v50 }
 0x901   : > { %5760 = vmatprep.mubr.msk.bf16.mxu1 %vm2408_vm0, %v3156_v33 }
 0x902   : > { %5761 = vmatmul.mubr.msk.bf16.gmra.mrb[76].mxu1 %vm2408_vm0, %v3157_v2 }
 0x903   : > { %5772 = vmatprep.mubr.msk.bf16.mxu1 %vm2408_vm0, %v3244_v52 }
 0x90a   : > { %5773 = vmatmul.mubr.msk.bf16.vlgmr.msra.gmra.mrb[80].mxu1 %vm2408_vm0, %v3246_v9 }
 0x90b   : > { %5813 = vmatpush3.bf16.msra.mxu1 %v7345_v54  ;;  %5776 = vmatprep.mubr.msk.bf16.mxu1 %vm2408_vm0, %v3248_v23 }
 0x90c   : > { %5814 = vmatprep.subr.bf16.mxu1 %v7343_v17 }
 0x90f   : > { %5815 = vmatpush3.bf16.msra.mxu1 %v7343_v17 }
 0x910   : > { %5816 = vmatprep.subr.bf16.mxu1 %v7349_v55 }
 0x912   : > { %5777 = vmatmul.mubr.msk.bf16.gmra.mrb[84].mxu1 %vm2408_vm0, %v3250_v10 }
 0x913   : > { %5817 = vmatpush3.bf16.msra.mxu1 %v7349_v55 }
 0x914   : > { %5818 = vmatprep.subr.bf16.mxu1 %v8350_v20 }
 0x917   : > { %5819 = vmatpush3.bf16.msra.mxu1 %v8350_v20 }
 0x998   : > { %v7677_v8 = vpop.f32.mrb[72].mxu1 }
 0x999   : > { %8351 = vst [vmem:[#allocation24_spill] sm:$0xff] %v7677_v8  ;;  %v7679_v0 = vpop.f32.mrb[73].mxu1 }
 0x99a   : > { %v7681_v49 = vpop.f32.mrb[74].mxu1 }
 0x99b   : > { %8352 = vst [vmem:[#allocation33_spill] sm:$0xff] %v7681_v49  ;;  %v7685_v42 = vpop.f32.mrb[75].mxu1 }
 0x9d5   : > { %v7689_v16 = vpop.f32.mrb[76].mxu1 }
 0x9d6   : > { %8353 = vst [vmem:[#allocation34_spill] sm:$0xff] %v7689_v16  ;;  %v7691_v36 = vpop.f32.mrb[77].mxu1 }
 0x9d7   : > { %8354 = vst [vmem:[#allocation35_spill] sm:$0xff] %v7691_v36  ;;  %v7693_v18 = vpop.f32.mrb[78].mxu1 }
 0x9d8   : > { %8355 = vst [vmem:[#allocation36_spill] sm:$0xff] %v7693_v18  ;;  %v7697_v40 = vpop.f32.mrb[79].mxu1 }
 0x9d9   : > { %8356 = vst [vmem:[#allocation37_spill] sm:$0xff] %v7697_v40 }
 0x9dd   : > { %v5774_v57 = vpop.f32.mrb[80].mxu1 }
 0x9de   : > { %v3330_v1 = vadd.f32 %v5774_v57, %v7357_v21  ;;  %v3321_v41 = vpop.f32.mrb[81].mxu1 }
 0x9df   : > { %v5775_v63 = vpop.f32.mrb[82].mxu1  ;;  %v3322_v6 = vadd.f32 %v3321_v41, %v7359_v37 }
 0x9e0   : > { %v3324_v44 = vpop.f32.mrb[83].mxu1  ;;  %v3358_v61 = vsel %vm2408_vm0, %v3330_v1, -inf  ;;  %v3333_v39 = vadd.f32 %v5775_v63, %v7361_v62 }
 0x9e1   : > { %v3325_v24 = vadd.f32 %v3324_v44, %v7365_v19  ;;  %3359 = vmax.xlane.f32.xlu0 %v3358_v61  ;;  %v3352_v25 = vsel %vm2408_vm0, %v3322_v6, -inf }
 0x9e2   : > { %v3361_v9 = vsel %vm2408_vm0, %v3333_v39, -inf }
 0x9e3   : > { %v3355_v59 = vsel %vm2408_vm0, %v3325_v24, -inf }
 0x9e4   : > { %3356 = vmax.xlane.f32.xlu1 %v3355_v59 }
 0x9e5   : > { %3353 = vmax.xlane.f32.xlu0 %v3352_v25  ;;  %v5778_v50 = vpop.f32.mrb[84].mxu1 }
 0x9e6   : > { %v3337_v38 = vpop.f32.mrb[85].mxu1  ;;  %v3346_v57 = vadd.f32 %v5778_v50, %v7379_v51 }
 0x9e7   : > { %v5779_v46 = vpop.f32.mrb[86].mxu1  ;;  %v3338_v33 = vadd.f32 %v3337_v38, %v7376_v45 }
 0x9e8   : > { %v3349_v2 = vadd.f32 %v5779_v46, %v7384_v35  ;;  %v3340_v52 = vpop.f32.mrb[87].mxu1  ;;  %v3370_v44 = vsel %vm2408_vm0, %v3346_v57, -inf }
 0x9e9   : > { %3362 = vmax.xlane.f32.xlu0 %v3361_v9  ;;  %v3341_v23 = vadd.f32 %v3340_v52, %v7381_v47  ;;  %v3364_v41 = vsel %vm2408_vm0, %v3338_v33, -inf }
 0x9ea   : > { %v3373_v10 = vsel %vm2408_vm0, %v3349_v2, -inf }
 0x9eb   : > { %3374 = vmax.xlane.f32.xlu1 %v3373_v10  ;;  %v3367_v63 = vsel %vm2408_vm0, %v3341_v23, -inf }
 0x9ed   : > { %3365 = vmax.xlane.f32.xlu0 %v3364_v41 }
 0x9ef   : > { %3368 = vmax.xlane.f32.xlu1 %v3367_v63 }
 0x9f1   : > { %3371 = vmax.xlane.f32.xlu0 %v3370_v44 }
 0xa00   : > { %3450 = vrot.lane.b32.xlu1 %v7327_v13, %s6871_s21 }
 0xa04   : > { %3452 = vrot.lane.b32.xlu1 %v7333_v34, %s6871_s21 }
 0xa6e   : > { %v3360_v61 = vpop.xlane.xlu0 %3359 }
 0xa6f   : > { %v3378_v59 = vsub.f32 %v3330_v1, %v3360_v61 }
 0xa71   : > { %v3388_v25 = vmul.f32 1.442695, %v3378_v59  ;;  %v3357_v38 = vpop.xlane.xlu1 %3356 }
 0xa72   : > { %v3354_v50 = vpop.xlane.xlu0 %3353  ;;  %v3377_v52 = vsub.f32 %v3325_v24, %v3357_v38 }
 0xa73   : > { %6606 = vpow2.f32 %v3388_v25  ;;  %v3376_v46 = vsub.f32 %v3322_v6, %v3354_v50 }
 0xa74   : > { %v3386_v63 = vmul.f32 1.442695, %v3377_v52 }
 0xa75   : > { %v3384_v9 = vmul.f32 1.442695, %v3376_v46 }
 0xa76   : > { %v3363_v10 = vpop.xlane.xlu0 %3362 }
 0xa77   : > { %6608 = vpow2.f32 %v3384_v9  ;;  %v3379_v41 = vsub.f32 %v3333_v39, %v3363_v10 }
 0xa78   : > { %v3375_v25 = vpop.xlane.xlu1 %3374 }
 0xa79   : > { %v3390_v44 = vmul.f32 1.442695, %v3379_v41  ;;  %v3383_v10 = vsub.f32 %v3349_v2, %v3375_v25 }
 0xa7a   : > { %v3366_v59 = vpop.xlane.xlu0 %3365 }
 0xa7b   : > { %6610 = vpow2.f32 %v3390_v44  ;;  %v3380_v38 = vsub.f32 %v3338_v33, %v3366_v59  ;;  %v3398_v44 = vmul.f32 1.442695, %v3383_v10 }
 0xa7c   : > { %6612 = vpow2.f32 %v3386_v63  ;;  %v3369_v9 = vpop.xlane.xlu1 %3368 }
 0xa7d   : > { %v7721_v3 = vpop.eup %6606  ;;  %v3392_v46 = vmul.f32 1.442695, %v3380_v38  ;;  %v3381_v41 = vsub.f32 %v3341_v23, %v3369_v9 }
 0xa7e   : > { %v3406_v13 = vsel %vm2408_vm0, %v7721_v3, 0.0  ;;  %v3372_v50 = vpop.xlane.xlu0 %3371 }
 0xa7f   : > { %3407 = vadd.xlane.f32.xlu0 %v3406_v13  ;;  %v3382_v52 = vsub.f32 %v3346_v57, %v3372_v50  ;;  %6614 = vpow2.f32 %v3392_v46  ;;  %v3394_v13 = vmul.f32 1.442695, %v3381_v41 }
 0xa81   : > { %v7725_v34 = vpop.eup %6608  ;;  %v3396_v63 = vmul.f32 1.442695, %v3382_v52 }
 0xa82   : > { %v3400_v1 = vsel %vm2408_vm0, %v7725_v34, 0.0 }
 0xa83   : > { %3401 = vadd.xlane.f32.xlu0 %v3400_v1  ;;  %6616 = vpow2.f32 %v3396_v63 }
 0xa84   : > { %6618 = vpow2.f32 %v3398_v44 }
 0xa85   : > { %v6611_v6 = vpop.eup %6610  ;;  %6620 = vpow2.f32 %v3394_v13 }
 0xa86   : > { %v3409_v24 = vsel %vm2408_vm0, %v6611_v6, 0.0  ;;  %v6613_v39 = vpop.eup %6612 }
 0xa87   : > { %3410 = vadd.xlane.f32.xlu1 %v3409_v24  ;;  %v3403_v61 = vsel %vm2408_vm0, %v6613_v39, 0.0 }
 0xa8b   : > { %3404 = vadd.xlane.f32.xlu1 %v3403_v61  ;;  %v3451_v61 = vpop.permute.xlu1 %3450 }
 0xa8f   : > { %v3453_v25 = vpop.permute.xlu1 %3452 }
 0xa99   : > { %3448 = vrot.lane.b32.xlu0 %v7321_v53, %s6871_s21  ;;  %v7735_v53 = vpop.eup %6614 }
 0xa9a   : > { %v7739_v1 = vpop.eup %6616 }
 0xa9b   : > { %v7741_v33 = vpop.eup %6618  ;;  %v3418_v2 = vsel %vm2408_vm0, %v7739_v1, 0.0 }
 0xa9c   : > { %3454 = vrot.lane.b32.xlu1 %v7339_v12, %s6871_s21  ;;  %v3412_v12 = vsel %vm2408_vm0, %v7735_v53, 0.0  ;;  %v7745_v23 = vpop.eup %6620  ;;  %v3421_v24 = vsel %vm2408_vm0, %v7741_v33, 0.0 }
 0xa9d   : > { %v3415_v57 = vsel %vm2408_vm0, %v7745_v23, 0.0 }
 0xab8   : > { %3413 = vadd.xlane.f32.xlu0 %v3412_v12  ;;  %v8357_v12 = vld [vmem:[#allocation20_spill] sm:$0xff] }
 0xabc   : > { %3419 = vadd.xlane.f32.xlu0 %v3418_v2 }
 0xac0   : > { %3416 = vadd.xlane.f32.xlu1 %v3415_v57  ;;  %3422 = vadd.xlane.f32.xlu0 %v3421_v24 }
 0xb0c   : > { %v3408_v59 = vpop.xlane.xlu0 %3407 }
 0xb10   : > { %v3402_v38 = vpop.xlane.xlu0 %3401 }
 0xb14   : > { %v3411_v50 = vpop.xlane.xlu1 %3410  ;;  %v3449_v46 = vpop.permute.xlu0 %3448 }
 0xb15   : > { %5780 = vmatprep.subr.bf16.mxu0 %v3449_v46  ;;  %6622 = vrcp.f32 %v3411_v50 }
 0xb16   : > { %5781 = vmatpush3.bf16.msra.mxu0 %v3449_v46  ;;  %6624 = vrcp.f32 %v3402_v38  ;;  %v8358_v38 = vld [vmem:[#allocation21_spill] sm:$0xff] }
 0xb17   : > { %5782 = vmatprep.subr.bf16.mxu0 %v3451_v61  ;;  %6626 = vrcp.f32 %v3408_v59 }
 0xb18   : > { %v3405_v52 = vpop.xlane.xlu1 %3404 }
 0xb19   : > { %6628 = vrcp.f32 %v3405_v52 }
 0xb1a   : > { %5783 = vmatpush3.bf16.msra.mxu0 %v3451_v61 }
 0xb1b   : > { %5784 = vmatprep.subr.bf16.mxu0 %v3453_v25 }
 0xb1c   : > { %v3455_v9 = vpop.permute.xlu1 %3454 }
 0xb1e   : > { %5785 = vmatpush3.bf16.msra.mxu0 %v3453_v25  ;;  %v3558_v25 = vsel %vm2408_vm0, %v8357_v12, 0 }
 0xb1f   : > { %5786 = vmatprep.subr.bf16.mxu0 %v3455_v9  ;;  %v6623_v10 = vpop.eup %6622 }
 0xb20   : > { %v6625_v41 = vpop.eup %6624  ;;  %v3435_v13 = vmul.f32 %v6623_v10, %v6611_v6  ;;  %v3561_v6 = vsel %vm2408_vm0, %v8358_v38, 0 }
 0xb21   : > { %v6627_v63 = vpop.eup %6626  ;;  %v3432_v2 = vmul.f32 %v6625_v41, %v7725_v34  ;;  %v8359_v34 = vld [vmem:[#allocation22_spill] sm:$0xff] }
 0xb22   : > { %5787 = vmatpush3.bf16.msra.mxu0 %v3455_v9  ;;  %v3434_v24 = vmul.f32 %v6627_v63, %v7721_v3  ;;  %v3564_v3 = vsel %vm2408_vm0, %v8359_v34, 0 }
 0xb23   : > { %v6629_v44 = vpop.eup %6628  ;;  %6012 = vmatprep.subr.msk.bf16.mxu0 %vm2408_vm0, %v8357_v12 }
 0xb24   : > { %v3433_v57 = vmul.f32 %v6629_v44, %v6613_v39  ;;  %v3441_v61 = vpack.c.bf16 %v3435_v13, %v3434_v24  ;;  %v8360_v39 = vld [vmem:[#allocation23_spill] sm:$0xff] }
 0xb25   : > { %v3567_v50 = vsel %vm2408_vm0, %v8360_v39, 0 }
 0xb26   : > { %v3440_v59 = vpack.c.bf16 %v3433_v57, %v3432_v2 }
 0xb28   : > { %5788 = vmatprep.mubr.msk.bf16.mxu0 %vm2408_vm0, %v3440_v59 }
 0xb29   : > { %5789 = vmatmul.mubr.msk.bf16.vlgmr.msra.gmra.mrb[72].mxu0 %vm2408_vm0, %v3441_v61 }
 0xb2b   : > { %5797 = vmatpush3.bf16.xpose.msra.mxu0 %v3558_v25 }
 0xb2c   : > { %6013 = vmatprep.subr.msk.bf16.mxu0 %vm2408_vm0, %v8358_v38 }
 0xb33   : > { %5799 = vmatpush3.bf16.xpose.msra.mxu0 %v3561_v6  ;;  %v8361_v6 = vld [vmem:[#allocation13_spill] sm:$0xff] }
 0xb34   : > { %6014 = vmatprep.subr.msk.bf16.mxu0 %vm2408_vm0, %v8359_v34 }
 0xb3b   : > { %5801 = vmatpush3.bf16.xpose.msra.mxu0 %v3564_v3  ;;  %v8362_v3 = vld [vmem:[#allocation12_spill] sm:$0xff] }
 0xb3c   : > { %6015 = vmatprep.subr.msk.bf16.mxu0 %vm2408_vm0, %v8360_v39 }
 0xb43   : > { %5803 = vmatpush3.bf16.xpose.msra.mxu0 %v3567_v50  ;;  %v8363_v50 = vpack.c.bf16 %v8361_v6, %v8362_v3 }
 0xb45   : > { %v3414_v46 = vpop.xlane.xlu0 %3413 }
 0xb46   : > { %6630 = vrcp.f32 %v3414_v46  ;;  %v7778_v46 = vmul.bf16 1040203264, %v8363_v50 }
 0xb49   : > { %v3420_v52 = vpop.xlane.xlu0 %3419 }
 0xb4a   : > { %6632 = vrcp.f32 %v3420_v52 }
 0xb4d   : > { %v3417_v9 = vpop.xlane.xlu1 %3416  ;;  %v3423_v10 = vpop.xlane.xlu0 %3422 }
 0xb4e   : > { %6634 = vrcp.f32 %v3417_v9  ;;  %v8368_v9 = vld [vmem:[#allocation16_spill] sm:$0xff] }
 0xb4f   : > { %6636 = vrcp.f32 %v3423_v10 }
 0xb50   : > { %v6631_v41 = vpop.eup %6630 }
 0xb51   : > { %v3436_v2 = vmul.f32 %v6631_v41, %v7735_v53  ;;  %v8364_v53 = vld [vmem:[#allocation15_spill] sm:$0xff] }
 0xb54   : > { %v6633_v63 = vpop.eup %6632 }
 0xb55   : > { %v3438_v24 = vmul.f32 %v6633_v63, %v7739_v1  ;;  %v8370_v63 = vld [vmem:[#allocation19_spill] sm:$0xff] }
 0xb58   : > { %v6635_v44 = vpop.eup %6634 }
 0xb59   : > { %v6637_v13 = vpop.eup %6636  ;;  %v3437_v57 = vmul.f32 %v6635_v44, %v7745_v23  ;;  %v8365_v23 = vld [vmem:[#allocation14_spill] sm:$0xff] }
 0xb5a   : > { %v3439_v59 = vmul.f32 %v6637_v13, %v7741_v33  ;;  %v8366_v52 = vpack.c.bf16 %v8364_v53, %v8365_v23  ;;  %v8367_v33 = vld [vmem:[#allocation17_spill] sm:$0xff]  ;;  %v8371_v44 = vld [vmem:[#allocation18_spill] sm:$0xff] }
 0xb5b   : > { %v3442_v61 = vpack.c.bf16 %v3437_v57, %v3436_v2  ;;  %v8369_v10 = vpack.c.bf16 %v8367_v33, %v8368_v9  ;;  %v8372_v13 = vpack.c.bf16 %v8370_v63, %v8371_v44 }
 0xb5c   : > { %v3443_v25 = vpack.c.bf16 %v3439_v59, %v3438_v24  ;;  %v7787_v1 = vmul.bf16 1040203264, %v8366_v52 }
 0xb5d   : > { %5792 = vmatprep.mubr.msk.bf16.mxu0 %vm2408_vm0, %v3442_v61  ;;  %v7792_v41 = vmul.bf16 1040203264, %v8369_v10  ;;  %v7801_v2 = vmul.bf16 1040203264, %v8372_v13 }
 0xb5e   : > { %5793 = vmatmul.mubr.msk.bf16.gmra.mrb[76].mxu0 %vm2408_vm0, %v3443_v25 }
 0xb5f   : > { %5804 = vmatprep.mubr.msk.bf16.mxu0 %vm2408_vm0, %v7778_v46 }
 0xb66   : > { %5805 = vmatmul.mubr.msk.bf16.vlgmr.msra.gmra.mrb[80].mxu0 %vm2408_vm0, %v7787_v1 }
 0xb67   : > { %5808 = vmatprep.mubr.msk.bf16.mxu0 %vm2408_vm0, %v7792_v41 }
 0xb6e   : > { %5809 = vmatmul.mubr.msk.bf16.gmra.mrb[84].mxu0 %vm2408_vm0, %v7801_v2 }
 0xbfc   : > { %v7805_v57 = vpop.f32.mrb[72].mxu0 }
 0xbfd   : > { %v7807_v24 = vpop.f32.mrb[73].mxu0 }
 0xbfe   : > { %v7809_v59 = vpop.f32.mrb[74].mxu0 }
 0xbff   : > { %v7813_v25 = vpop.f32.mrb[75].mxu0 }
 0xc31   : > { %v7817_v3 = vpop.f32.mrb[76].mxu0 }
 0xc32   : > { %v7819_v50 = vpop.f32.mrb[77].mxu0 }
 0xc33   : > { %v7821_v53 = vpop.f32.mrb[78].mxu0 }
 0xc34   : > { %v7825_v52 = vpop.f32.mrb[79].mxu0 }
 0xc39   : > { %v5806_v9 = vpop.f32.mrb[80].mxu0 }
 0xc3a   : > { %v3603_v10 = vpop.f32.mrb[81].mxu0  ;;  %v3612_v14 = vadd.f32 %v5806_v9, %v7357_v21 }
 0xc3b   : > { %v3604_v63 = vadd.f32 %v3603_v10, %v7359_v37  ;;  %v5807_v44 = vpop.f32.mrb[82].mxu0 }
 0xc3c   : > { %v3606_v13 = vpop.f32.mrb[83].mxu0  ;;  %v3615_v23 = vadd.f32 %v5807_v44, %v7361_v62  ;;  %v3640_v33 = vsel %vm2408_vm0, %v3612_v14, -inf }
 0xc3d   : > { %v3607_v48 = vadd.f32 %v3606_v13, %v7365_v19  ;;  %v3634_v7 = vsel %vm2408_vm0, %v3604_v63, -inf }
 0xc3e   : > { %3635 = vmax.xlane.f32.xlu0 %v3634_v7  ;;  %v3643_v9 = vsel %vm2408_vm0, %v3615_v23, -inf }
 0xc3f   : > { %v3637_v61 = vsel %vm2408_vm0, %v3607_v48, -inf }
 0xc40   : > { %3638 = vmax.xlane.f32.xlu1 %v3637_v61 }
 0xc41   : > { %v5810_v6 = vpop.f32.mrb[84].mxu0 }
 0xc42   : > { %v3619_v11 = vpop.f32.mrb[85].mxu0  ;;  %3641 = vmax.xlane.f32.xlu0 %v3640_v33  ;;  %v3628_v13 = vadd.f32 %v5810_v6, %v7379_v51 }
 0xc43   : > { %v3620_v10 = vadd.f32 %v3619_v11, %v7376_v45  ;;  %v5811_v58 = vpop.f32.mrb[86].mxu0 }
 0xc44   : > { %v3622_v16 = vpop.f32.mrb[87].mxu0  ;;  %3644 = vmax.xlane.f32.xlu1 %v3643_v9  ;;  %v3631_v61 = vadd.f32 %v5811_v58, %v7384_v35  ;;  %v3652_v33 = vsel %vm2408_vm0, %v3628_v13, -inf }
 0xc45   : > { %v3623_v7 = vadd.f32 %v3622_v16, %v7381_v47  ;;  %v3646_v44 = vsel %vm2408_vm0, %v3620_v10, -inf }
 0xc46   : > { %3647 = vmax.xlane.f32.xlu0 %v3646_v44  ;;  %v3655_v11 = vsel %vm2408_vm0, %v3631_v61, -inf }
 0xc47   : > { %v3649_v18 = vsel %vm2408_vm0, %v3623_v7, -inf }
 0xc48   : > { %3650 = vmax.xlane.f32.xlu1 %v3649_v18 }
 0xc4a   : > { %3653 = vmax.xlane.f32.xlu0 %v3652_v33 }
 0xc4c   : > { %3656 = vmax.xlane.f32.xlu1 %v3655_v11 }
 0xccb   : > { %v3636_v29 = vpop.xlane.xlu0 %3635 }
 0xccc   : > { %v3658_v9 = vsub.f32 %v3604_v63, %v3636_v29 }
 0xccd   : > { %v3639_v4 = vpop.xlane.xlu1 %3638 }
 0xcce   : > { %v3659_v36 = vsub.f32 %v3607_v48, %v3639_v4  ;;  %v3666_v40 = vmul.f32 1.442695, %v3658_v9 }
 0xccf   : > { %v3642_v6 = vpop.xlane.xlu0 %3641 }
 0xcd0   : > { %v3660_v16 = vsub.f32 %v3612_v14, %v3642_v6  ;;  %v3668_v8 = vmul.f32 1.442695, %v3659_v36 }
 0xcd1   : > { %v3645_v15 = vpop.xlane.xlu1 %3644 }
 0xcd2   : > { %v3670_v44 = vmul.f32 1.442695, %v3660_v16  ;;  %v3661_v28 = vsub.f32 %v3615_v23, %v3645_v15 }
 0xcd3   : > { %v3648_v58 = vpop.xlane.xlu0 %3647 }
 0xcd4   : > { %6638 = vpow2.f32 %v3670_v44  ;;  %v3672_v18 = vmul.f32 1.442695, %v3661_v28  ;;  %v3662_v33 = vsub.f32 %v3620_v10, %v3648_v58 }
 0xcd5   : > { %6640 = vpow2.f32 %v3666_v40  ;;  %v3651_v10 = vpop.xlane.xlu1 %3650 }
 0xcd6   : > { %6642 = vpow2.f32 %v3672_v18  ;;  %v3674_v30 = vmul.f32 1.442695, %v3662_v33  ;;  %v3663_v6 = vsub.f32 %v3623_v7, %v3651_v10 }
 0xcd7   : > { %v3654_v49 = vpop.xlane.xlu0 %3653  ;;  %6644 = vpow2.f32 %v3668_v8 }
 0xcd8   : > { %v3664_v11 = vsub.f32 %v3628_v13, %v3654_v49  ;;  %v3676_v44 = vmul.f32 1.442695, %v3663_v6 }
 0xcd9   : > { %v3657_v13 = vpop.xlane.xlu1 %3656 }
 0xcda   : > { %v3678_v29 = vmul.f32 1.442695, %v3664_v11  ;;  %v3665_v9 = vsub.f32 %v3631_v61, %v3657_v13 }
 0xcdc   : > { %6646 = vpow2.f32 %v3678_v29  ;;  %v3680_v16 = vmul.f32 1.442695, %v3665_v9 }
 0xcdd   : > { %6648 = vpow2.f32 %v3674_v30 }
 0xcde   : > { %v6639_v63 = vpop.eup %6638  ;;  %6650 = vpow2.f32 %v3680_v16 }
 0xcdf   : > { %v6641_v4 = vpop.eup %6640  ;;  %v3688_v48 = vsel %vm2408_vm0, %v6639_v63, 0.0  ;;  %6652 = vpow2.f32 %v3676_v44 }
 0xce0   : > { %v6643_v14 = vpop.eup %6642  ;;  %3689 = vadd.xlane.f32.xlu0 %v3688_v48  ;;  %v3682_v28 = vsel %vm2408_vm0, %v6641_v4, 0.0 }
 0xce1   : > { %v3691_v15 = vsel %vm2408_vm0, %v6643_v14, 0.0  ;;  %v6645_v36 = vpop.eup %6644 }
 0xce2   : > { %3692 = vadd.xlane.f32.xlu1 %v3691_v15  ;;  %v3685_v8 = vsel %vm2408_vm0, %v6645_v36, 0.0 }
 0xce4   : > { %3683 = vadd.xlane.f32.xlu0 %v3682_v28 }
 0xce6   : > { %v7849_v49 = vpop.eup %6646  ;;  %3686 = vadd.xlane.f32.xlu1 %v3685_v8 }
 0xce7   : > { %v3700_v30 = vsel %vm2408_vm0, %v7849_v49, 0.0  ;;  %v7853_v40 = vpop.eup %6648 }
 0xce8   : > { %3701 = vadd.xlane.f32.xlu0 %v3700_v30  ;;  %v3694_v23 = vsel %vm2408_vm0, %v7853_v40, 0.0 }
 0xcec   : > { %3695 = vadd.xlane.f32.xlu0 %v3694_v23 }
 0xcf7   : > { %3825 = vrot.lane.b32.xlu1 %v8358_v38, %s6871_s21  ;;  %v6651_v38 = vpop.eup %6650 }
 0xcf8   : > { %v6653_v58 = vpop.eup %6652 }
 0xcfb   : > { %3827 = vrot.lane.b32.xlu1 %v8359_v34, %s6871_s21  ;;  %v3703_v34 = vsel %vm2408_vm0, %v6651_v38, 0.0 }
 0xd02   : > { %3823 = vrot.lane.b32.xlu0 %v8357_v12, %s6871_s21  ;;  %v3697_v12 = vsel %vm2408_vm0, %v6653_v58, 0.0 }
 0xd06   : > { %3811 = vrot.lane.b32.xlu0 %v7778_v46, %s6871_s21 }
 0xd0a   : > { %3815 = vrot.lane.b32.xlu0 %v7792_v41, %s6871_s21 }
 0xd1f   : > { %3704 = vadd.xlane.f32.xlu1 %v3703_v34 }
 0xd23   : > { %3698 = vadd.xlane.f32.xlu1 %v3697_v12 }
 0xd34   : > { %3829 = vrot.lane.b32.xlu1 %v8360_v39, %s6871_s21 }
 0xd38   : > { %3813 = vrot.lane.b32.xlu1 %v7787_v1, %s6871_s21 }
 0xd3c   : > { %3817 = vrot.lane.b32.xlu1 %v7801_v2, %s6871_s21 }
 0xd6d   : > { %v3690_v46 = vpop.xlane.xlu0 %3689 }
 0xd6f   : > { %v3693_v41 = vpop.xlane.xlu1 %3692 }
 0xd70   : > { %6654 = vrcp.f32 %v3693_v41 }
 0xd71   : > { %v3684_v7 = vpop.xlane.xlu0 %3683 }
 0xd72   : > { %6656 = vrcp.f32 %v3684_v7 }
 0xd73   : > { %6658 = vrcp.f32 %v3690_v46  ;;  %v3687_v61 = vpop.xlane.xlu1 %3686 }
 0xd74   : > { %6660 = vrcp.f32 %v3687_v61 }
 0xd75   : > { %v3702_v18 = vpop.xlane.xlu0 %3701 }
 0xd77   : > { %v3826_v13 = vpop.permute.xlu1 %3825 }
 0xd78   : > { %v3847_v9 = vsel %vm2408_vm0, %v3826_v13, 0 }
 0xd79   : > { %v3696_v33 = vpop.xlane.xlu0 %3695 }
 0xd7a   : > { %v6655_v11 = vpop.eup %6654 }
 0xd7b   : > { %v3717_v28 = vmul.f32 %v6655_v11, %v6643_v14  ;;  %v3828_v14 = vpop.permute.xlu1 %3827 }
 0xd7c   : > { %v6657_v29 = vpop.eup %6656 }
 0xd7d   : > { %v6659_v48 = vpop.eup %6658  ;;  %v3824_v39 = vpop.permute.xlu0 %3823  ;;  %v3714_v1 = vmul.f32 %v6657_v29, %v6641_v4 }
 0xd7e   : > { %v6661_v15 = vpop.eup %6660  ;;  %6016 = vmatprep.subr.msk.bf16.mxu1 %vm2408_vm0, %v3824_v39  ;;  %v3716_v8 = vmul.f32 %v6659_v48, %v6639_v63  ;;  %v3844_v10 = vsel %vm2408_vm0, %v3824_v39, 0  ;;  %v3850_v63 = vsel %vm2408_vm0, %v3828_v14, 0 }
 0xd7f   : > { %v3715_v2 = vmul.f32 %v6661_v15, %v6645_v36 }
 0xd80   : > { %v3723_v23 = vpack.c.bf16 %v3717_v28, %v3716_v8 }
 0xd81   : > { %v3722_v30 = vpack.c.bf16 %v3715_v2, %v3714_v1  ;;  %v3812_v29 = vpop.permute.xlu0 %3811 }
 0xd83   : > { %5820 = vmatprep.mubr.msk.bf16.mxu1 %vm2408_vm0, %v3722_v30 }
 0xd84   : > { %5821 = vmatmul.mubr.msk.bf16.vlgmr.msra.gmra.mrb[88].mxu1 %vm2408_vm0, %v3723_v23 }
 0xd85   : > { %5829 = vmatpush3.bf16.xpose.msra.mxu1 %v3844_v10  ;;  %v3816_v39 = vpop.permute.xlu0 %3815 }
 0xd86   : > { %6017 = vmatprep.subr.msk.bf16.mxu1 %vm2408_vm0, %v3826_v13 }
 0xd8d   : > { %5831 = vmatpush3.bf16.xpose.msra.mxu1 %v3847_v9 }
 0xd8e   : > { %6018 = vmatprep.subr.msk.bf16.mxu1 %vm2408_vm0, %v3828_v14 }
 0xd95   : > { %5833 = vmatpush3.bf16.xpose.msra.mxu1 %v3850_v63 }
 0xdac   : > { %v3705_v4 = vpop.xlane.xlu1 %3704 }
 0xdad   : > { %6662 = vrcp.f32 %v3705_v4 }
 0xdae   : > { %6664 = vrcp.f32 %v3696_v33 }
 0xdaf   : > { %6666 = vrcp.f32 %v3702_v18 }
 0xdb0   : > { %v3699_v36 = vpop.xlane.xlu1 %3698 }
 0xdb1   : > { %6668 = vrcp.f32 %v3699_v36 }
 0xdb4   : > { %v3830_v6 = vpop.permute.xlu1 %3829 }
 0xdb5   : > { %v3853_v16 = vsel %vm2408_vm0, %v3830_v6, 0  ;;  %6019 = vmatprep.subr.msk.bf16.mxu1 %vm2408_vm0, %v3830_v6 }
 0xdb6   : > { %5835 = vmatpush3.bf16.xpose.msra.mxu1 %v3853_v16 }
 0xdb7   : > { %v6663_v44 = vpop.eup %6662 }
 0xdb8   : > { %v6665_v34 = vpop.eup %6664  ;;  %v3721_v41 = vmul.f32 %v6663_v44, %v6651_v38  ;;  %v3814_v48 = vpop.permute.xlu1 %3813 }
 0xdb9   : > { %v6667_v12 = vpop.eup %6666  ;;  %v3718_v7 = vmul.f32 %v6665_v34, %v7853_v40 }
 0xdba   : > { %v3720_v11 = vmul.f32 %v6667_v12, %v7849_v49 }
 0xdbb   : > { %v6669_v46 = vpop.eup %6668 }
 0xdbc   : > { %v3719_v61 = vmul.f32 %v6669_v46, %v6653_v58  ;;  %v3725_v18 = vpack.c.bf16 %v3721_v41, %v3720_v11  ;;  %v3818_v38 = vpop.permute.xlu1 %3817 }
 0xdbe   : > { %v3724_v33 = vpack.c.bf16 %v3719_v61, %v3718_v7 }
 0xdc0   : > { %5824 = vmatprep.mubr.msk.bf16.mxu1 %vm2408_vm0, %v3724_v33 }
 0xdc1   : > { %5825 = vmatmul.mubr.msk.bf16.gmra.mrb[92].mxu1 %vm2408_vm0, %v3725_v18 }
 0xdc2   : > { %5836 = vmatprep.mubr.msk.bf16.mxu1 %vm2408_vm0, %v3812_v29 }
 0xdc9   : > { %5837 = vmatmul.mubr.msk.bf16.vlgmr.msra.gmra.mrb[96].mxu1 %vm2408_vm0, %v3814_v48 }
 0xdca   : > { %5840 = vmatprep.mubr.msk.bf16.mxu1 %vm2408_vm0, %v3816_v39 }
 0xdd1   : > { %5841 = vmatmul.mubr.msk.bf16.gmra.mrb[100].mxu1 %vm2408_vm0, %v3818_v38 }
 0xe57   : > { %v7893_v40 = vpop.f32.mrb[88].mxu1 }
 0xe58   : > { %v7895_v49 = vpop.f32.mrb[89].mxu1 }
 0xe59   : > { %v7897_v58 = vpop.f32.mrb[90].mxu1 }
 0xe5a   : > { %v3804_v15 = vpack.c.bf16 %v7897_v58, %v7893_v40  ;;  %v7901_v28 = vpop.f32.mrb[91].mxu1  ;;  %v8403_v40 = vld [vmem:[#allocation25_spill] sm:$0xff] }
 0xe5b   : > { %v3803_v1 = vpack.c.bf16 %v7901_v28, %v7895_v49  ;;  %v4293_v58 = vsub.s32 0, %v8403_v40 }
 0xe94   : > { %v7905_v2 = vpop.f32.mrb[92].mxu1 }
 0xe95   : > { %v7907_v8 = vpop.f32.mrb[93].mxu1 }
 0xe96   : > { %v7909_v30 = vpop.f32.mrb[94].mxu1 }
 0xe97   : > { %v3806_v23 = vpack.c.bf16 %v7909_v30, %v7905_v2  ;;  %v7913_v10 = vpop.f32.mrb[95].mxu1  ;;  %v4289_v2 = vld [vmem:[%s8280_s3] sm:$0x7] }
 0xe98   : > { %v3805_v13 = vpack.c.bf16 %v7913_v10, %v7907_v8  ;;  %v8160_v8 = vrot.slane %v4289_v2, %v4293_v58 }
 0xe9c   : > { %v5838_v9 = vpop.f32.mrb[96].mxu1 }
 0xe9d   : > { %v3889_v14 = vpop.f32.mrb[97].mxu1  ;;  %v3898_v6 = vadd.f32 %v5838_v9, %v7357_v21 }
 0xe9e   : > { %v3890_v63 = vadd.f32 %v3889_v14, %v7359_v37  ;;  %v5839_v4 = vpop.f32.mrb[98].mxu1 }
 0xe9f   : > { %v3892_v36 = vpop.f32.mrb[99].mxu1  ;;  %v3901_v12 = vadd.f32 %v5839_v4, %v7361_v62  ;;  %v3926_v41 = vsel %vm2408_vm0, %v3898_v6, -inf }
 0xea0   : > { %v3893_v16 = vadd.f32 %v3892_v36, %v7365_v19  ;;  %v3920_v44 = vsel %vm2408_vm0, %v3890_v63, -inf }
 0xea1   : > { %3921 = vmax.xlane.f32.xlu0 %v3920_v44  ;;  %v3929_v19 = vsel %vm2408_vm0, %v3901_v12, -inf }
 0xea2   : > { %v3923_v34 = vsel %vm2408_vm0, %v3893_v16, -inf }
 0xea3   : > { %3924 = vmax.xlane.f32.xlu1 %v3923_v34 }
 0xea4   : > { %v5842_v46 = vpop.f32.mrb[100].mxu1 }
 0xea5   : > { %3927 = vmax.xlane.f32.xlu0 %v3926_v41  ;;  %v3905_v7 = vpop.f32.mrb[101].mxu1  ;;  %v3914_v62 = vadd.f32 %v5842_v46, %v7379_v51 }
 0xea6   : > { %v5843_v37 = vpop.f32.mrb[102].mxu1  ;;  %v3906_v11 = vadd.f32 %v3905_v7, %v7376_v45 }
 0xea7   : > { %v3908_v61 = vpop.f32.mrb[103].mxu1  ;;  %v3917_v33 = vadd.f32 %v5843_v37, %v7384_v35  ;;  %v3938_v45 = vsel %vm2408_vm0, %v3914_v62, -inf }
 0xea8   : > { %v3909_v21 = vadd.f32 %v3908_v61, %v7381_v47  ;;  %v3932_v29 = vsel %vm2408_vm0, %v3906_v11, -inf }
 0xea9   : > { %3930 = vmax.xlane.f32.xlu0 %v3929_v19  ;;  %v3941_v48 = vsel %vm2408_vm0, %v3917_v33, -inf }
 0xeaa   : > { %v3935_v18 = vsel %vm2408_vm0, %v3909_v21, -inf }
 0xeab   : > { %3936 = vmax.xlane.f32.xlu1 %v3935_v18 }
 0xead   : > { %3933 = vmax.xlane.f32.xlu0 %v3932_v29 }
 0xeaf   : > { %3942 = vmax.xlane.f32.xlu1 %v3941_v48 }
 0xeb1   : > { %3939 = vmax.xlane.f32.xlu0 %v3938_v45 }
 0xec7   : > { %4016 = vrot.lane.b32.xlu0 %v7345_v54, %s6871_s21 }
 0xf2e   : > { %v3922_v47 = vpop.xlane.xlu0 %3921 }
 0xf2f   : > { %v3944_v39 = vsub.f32 %v3890_v63, %v3922_v47 }
 0xf30   : > { %v3925_v35 = vpop.xlane.xlu1 %3924 }
 0xf31   : > { %v3952_v14 = vmul.f32 1.442695, %v3944_v39  ;;  %v3945_v4 = vsub.f32 %v3893_v16, %v3925_v35 }
 0xf32   : > { %v3928_v38 = vpop.xlane.xlu0 %3927 }
 0xf33   : > { %v3946_v9 = vsub.f32 %v3898_v6, %v3928_v38  ;;  %v3954_v46 = vmul.f32 1.442695, %v3945_v4  ;;  %v6414_v4 = vld [vmem:[#allocation7 + $0xc8] ss:$12 sps:$4 sm:$0xff]  }
 0xf34   : > { %5592 = vmatprep.subr.bf16.mxu1 %v6414_v4 }
 0xf35   : > { %v3956_v51 = vmul.f32 1.442695, %v3946_v9 }
 0xf36   : > { %v3931_v36 = vpop.xlane.xlu0 %3930 }
 0xf37   : > { %6670 = vpow2.f32 %v3956_v51  ;;  %v3947_v44 = vsub.f32 %v3901_v12, %v3931_v36  ;;  %v6415_v36 = vld [vmem:[#allocation7 + $0x8] ss:$12 sps:$4 sm:$0xff]  }
 0xf38   : > { %v3937_v34 = vpop.xlane.xlu1 %3936  ;;  %6672 = vpow2.f32 %v3952_v14  ;;  %5593 = vmatpush3.bf16.msra.mxu1 %v6415_v36 }
 0xf39   : > { %v3958_v41 = vmul.f32 1.442695, %v3947_v44 }
 0xf3a   : > { %v3934_v7 = vpop.xlane.xlu0 %3933 }
 0xf3b   : > { %6674 = vpow2.f32 %v3958_v41  ;;  %v3948_v37 = vsub.f32 %v3906_v11, %v3934_v7  ;;  %v3949_v11 = vsub.f32 %v3909_v21, %v3937_v34  ;;  %v6416_v34 = vld [vmem:[#allocation7 + $0xe0] ss:$12 sps:$4 sm:$0xff]  }
 0xf3c   : > { %6676 = vpow2.f32 %v3954_v46  ;;  %v3943_v54 = vpop.xlane.xlu1 %3942  ;;  %v6417_v41 = vld [vmem:[#allocation7 + $0x20] ss:$12 sps:$4 sm:$0xff]   ;;  %5594 = vmatprep.subr.bf16.mxu1 %v6416_v34 }
 0xf3d   : > { %v3960_v6 = vmul.f32 1.442695, %v3948_v37  ;;  %v3951_v18 = vsub.f32 %v3917_v33, %v3943_v54  ;;  %v3962_v35 = vmul.f32 1.442695, %v3949_v11  ;;  %5595 = vmatpush3.bf16.msra.mxu1 %v6417_v41  ;;  %v6418_v37 = vld [vmem:[#allocation7 + $0xf8] ss:$12 sps:$4 sm:$0xff]  }
 0xf3e   : > { %v3940_v61 = vpop.xlane.xlu0 %3939  ;;  %5596 = vmatprep.subr.bf16.mxu1 %v6418_v37  ;;  %v6425_v11 = vld [vmem:[#allocation7 + $0x80] ss:$12 sps:$4 sm:$0xff]  }
 0xf3f   : > { %v3950_v63 = vsub.f32 %v3914_v62, %v3940_v61  ;;  %v3966_v62 = vmul.f32 1.442695, %v3951_v18  ;;  %v6419_v61 = vld [vmem:[#allocation7 + $0x38] ss:$12 sps:$4 sm:$0xff]   ;;  %v6422_v18 = vld [vmem:[#allocation7 + $0x128] ss:$12 sps:$4 sm:$0xff]  }
 0xf41   : > { %v7935_v19 = vpop.eup %6670  ;;  %v3964_v16 = vmul.f32 1.442695, %v3950_v63  ;;  %5597 = vmatpush3.bf16.msra.mxu1 %v6419_v61  ;;  %v6420_v63 = vld [vmem:[#allocation7 + $0x110] ss:$12 sps:$4 sm:$0xff]  }
 0xf42   : > { %v4017_v29 = vpop.permute.xlu0 %4016  ;;  %v3974_v12 = vsel %vm2408_vm0, %v7935_v19, 0.0  ;;  %v7939_v48 = vpop.eup %6672  ;;  %5598 = vmatprep.subr.bf16.mxu1 %v6420_v63  ;;  %v8384_v63 = vld [vmem:[#allocation33_spill] sm:$0xff] }
 0xf43   : > { %6678 = vpow2.f32 %v3964_v16  ;;  %3975 = vadd.xlane.f32.xlu0 %v3974_v12  ;;  %5844 = vmatprep.subr.bf16.mxu0 %v4017_v29  ;;  %v3968_v47 = vsel %vm2408_vm0, %v7939_v48, 0.0  ;;  %v6423_v16 = vld [vmem:[#allocation7 + $0x68] ss:$12 sps:$4 sm:$0xff]   ;;  %v6424_v12 = vld [vmem:[#allocation7 + $0x140] ss:$12 sps:$4 sm:$0xff]  }
 0xf44   : > { %5845 = vmatpush3.bf16.msra.mxu0 %v4017_v29  ;;  %6680 = vpow2.f32 %v3960_v6  ;;  %v6421_v6 = vld [vmem:[#allocation7 + $0x50] ss:$12 sps:$4 sm:$0xff]   ;;  %v8373_v29 = vpack.c.bf16 %v7813_v25, %v7807_v24  ;;  %v8375_v24 = vpack.c.bf16 %v7825_v52, %v7819_v50  ;;  %v8379_v50 = vpack.c.bf16 %v7601_v26, %v7595_v32 }
 0xf45   : > { %v7941_v45 = vpop.eup %6674  ;;  %6682 = vpow2.f32 %v3966_v62  ;;  %5599 = vmatpush3.bf16.msra.mxu1 %v6421_v6  ;;  %v6426_v62 = vld [vmem:[#allocation7 + $0x158] ss:$12 sps:$4 sm:$0xff]   ;;  %v6428_v25 = vld [vmem:[#allocation7 + $0x170] ss:$12 sps:$4 sm:$0xff]   ;;  %v8381_v32 = vpack.c.bf16 %v7685_v42, %v7679_v0 }
 0xf46   : > { %v3977_v33 = vsel %vm2408_vm0, %v7941_v45, 0.0  ;;  %v7947_v39 = vpop.eup %6676  ;;  %6684 = vpow2.f32 %v3962_v35  ;;  %5600 = vmatprep.subr.bf16.mxu1 %v6422_v18  ;;  %v8385_v6 = vld [vmem:[#allocation24_spill] sm:$0xff] }
 0xf47   : > { %3969 = vadd.xlane.f32.xlu0 %v3968_v47  ;;  %3978 = vadd.xlane.f32.xlu1 %v3977_v33  ;;  %v3971_v38 = vsel %vm2408_vm0, %v7947_v39, 0.0  ;;  %v6429_v47 = vld [vmem:[#allocation7 + $0xb0] ss:$12 sps:$4 sm:$0xff]   ;;  %v8386_v18 = vpack.c.bf16 %v8384_v63, %v8385_v6  ;;  %v6445_v6 = vld [vmem:[#allocation7 + $0x78] ss:$12 sps:$4 sm:$0xff]  }
 0xf49   : > { %5601 = vmatpush3.bf16.msra.mxu1 %v6423_v16 }
 0xf4a   : > { %5602 = vmatprep.subr.bf16.mxu1 %v6424_v12 }
 0xf4b   : > { %3972 = vadd.xlane.f32.xlu1 %v3971_v38 }
 0xf4d   : > { %v7951_v9 = vpop.eup %6678  ;;  %5603 = vmatpush3.bf16.msra.mxu1 %v6425_v11 }
 0xf4e   : > { %v3986_v21 = vsel %vm2408_vm0, %v7951_v9, 0.0  ;;  %v7955_v14 = vpop.eup %6680  ;;  %5604 = vmatprep.subr.bf16.mxu1 %v6426_v62  ;;  %v6430_v62 = vld [vmem:[#allocation7] ss:$12 sps:$4 sm:$0xff]  }
 0xf4f   : > { %3987 = vadd.xlane.f32.xlu1 %v3986_v21  ;;  %v3980_v51 = vsel %vm2408_vm0, %v7955_v14, 0.0  ;;  %v7959_v44 = vpop.eup %6682 }
 0xf50   : > { %v3989_v46 = vsel %vm2408_vm0, %v7959_v44, 0.0  ;;  %v7963_v7 = vpop.eup %6684 }
 0xf51   : > { %v3983_v54 = vsel %vm2408_vm0, %v7963_v7, 0.0 }
 0xf53   : > { %3981 = vadd.xlane.f32.xlu1 %v3980_v51 }
 0xf57   : > { %3990 = vadd.xlane.f32.xlu1 %v3989_v46 }
 0xf5b   : > { %3984 = vadd.xlane.f32.xlu1 %v3983_v54 }
 0xf5d   : > { %4020 = vrot.lane.b32.xlu0 %v7349_v55, %s6871_s21  ;;  %v8374_v55 = vpack.c.bf16 %v7809_v59, %v7805_v57  ;;  %v8376_v57 = vpack.c.bf16 %v7589_v31, %v7583_v60  ;;  %v8377_v59 = vpack.c.bf16 %v7821_v53, %v7817_v3  ;;  %v8380_v60 = vpack.c.bf16 %v7597_v43, %v7593_v22 }
 0xf61   : > { %4022 = vrot.lane.b32.xlu0 %v8350_v20, %s6871_s21  ;;  %v6427_v20 = vld [vmem:[#allocation7 + $0x98] ss:$12 sps:$4 sm:$0xff]  }
 0xf62   : > { %5605 = vmatpush3.bf16.msra.mxu1 %v6427_v20 }
 0xf63   : > { %5606 = vmatprep.subr.bf16.mxu1 %v6428_v25 }
 0xf65   : > { %4125 = vrot.lane.b32.xlu0 %v8373_v29, %s6871_s21 }
 0xf66   : > { %5607 = vmatpush3.bf16.msra.mxu1 %v6429_v47  ;;  %v6435_v47 = vld [vmem:[#allocation7 + $0x1c] ss:$12 sps:$4 sm:$0xff]  }
 0xf69   : > { %4127 = vrot.lane.b32.xlu0 %v8374_v55, %s6871_s21 }
 0xf6c   : > { %4018 = vrot.lane.b32.xlu1 %v7343_v17, %s6871_s21  ;;  %v8378_v17 = vpack.c.bf16 %v7585_v5, %v7581_v56 }
 0xf6d   : > { %4129 = vrot.lane.b32.xlu0 %v8375_v24, %s6871_s21 }
 0xf70   : > { %4113 = vrot.lane.b32.xlu1 %v8376_v57, %s6871_s21 }
 0xf71   : > { %4131 = vrot.lane.b32.xlu0 %v8377_v59, %s6871_s21 }
 0xf74   : > { %4115 = vrot.lane.b32.xlu1 %v8378_v17, %s6871_s21 }
 0xf78   : > { %4117 = vrot.lane.b32.xlu1 %v8379_v50, %s6871_s21  ;;  %v8388_v50 = vld [vmem:[#allocation26_spill] sm:$0xff] }
 0xf7c   : > { %4119 = vrot.lane.b32.xlu1 %v8380_v60, %s6871_s21 }
 0xfd0   : > { %v3976_v31 = vpop.xlane.xlu0 %3975 }
 0xfd4   : > { %v3979_v52 = vpop.xlane.xlu1 %3978  ;;  %v3970_v33 = vpop.xlane.xlu0 %3969 }
 0xfd5   : > { %6686 = vrcp.f32 %v3970_v33 }
 0xfd8   : > { %v3973_v3 = vpop.xlane.xlu1 %3972  ;;  %v4021_v53 = vpop.permute.xlu0 %4020 }
 0xfd9   : > { %6688 = vrcp.f32 %v3973_v3 }
 0xfda   : > { %6690 = vrcp.f32 %v3979_v52  ;;  %v8391_v52 = vld [vmem:[#allocation35_spill] sm:$0xff] }
 0xfdb   : > { %6692 = vrcp.f32 %v3976_v31  ;;  %v8390_v31 = vld [vmem:[#allocation37_spill] sm:$0xff] }
 0xfdc   : > { %v3988_v35 = vpop.xlane.xlu1 %3987  ;;  %v4023_v56 = vpop.permute.xlu0 %4022  ;;  %v8392_v33 = vpack.c.bf16 %v8390_v31, %v8391_v52  ;;  %v6475_v31 = vld [vmem:[#allocation7 + $0x168] ss:$12 sps:$4 sm:$0xff]   ;;  %v8402_v52 = vmov 0  }
 0xfdf   : > { %v6687_v21 = vpop.eup %6686 }
 0xfe0   : > { %v3982_v5 = vpop.xlane.xlu1 %3981  ;;  %v4126_v38 = vpop.permute.xlu0 %4125  ;;  %v4000_v4 = vmul.f32 %v6687_v21, %v7939_v48 }
 0xfe1   : > { %v8009_v26 = vsel %vm2408_vm0, %v8381_v32, %v4126_v38  ;;  %6694 = vrcp.f32 %v3982_v5  ;;  %v6436_v5 = vld [vmem:[#allocation7 + $0x30] ss:$12 sps:$4 sm:$0xff]   ;;  %v6441_v32 = vld [vmem:[#allocation7 + $0x4c] ss:$12 sps:$4 sm:$0xff]  }
 0xfe2   : > { %4868 = vmatprep.mubr.bf16.mxu1 %v8009_v26 }
 0xfe3   : > { %v6689_v22 = vpop.eup %6688 }
 0xfe4   : > { %v3991_v43 = vpop.xlane.xlu1 %3990  ;;  %v4001_v51 = vmul.f32 %v6689_v22, %v7947_v39  ;;  %v4128_v42 = vpop.permute.xlu0 %4127  ;;  %v8382_v39 = vld [vmem:[#allocation27_spill] sm:$0xff] }
 0xfe5   : > { %v6691_v46 = vpop.eup %6690  ;;  %v8383_v37 = vpack.c.bf16 %v7461_v27, %v8382_v39  ;;  %v8026_v16 = vsel %vm2408_vm0, %v8386_v18, %v4128_v42  ;;  %v6432_v27 = vld [vmem:[#allocation7 + $0x4] ss:$12 sps:$4 sm:$0xff]   ;;  %v8399_v39 = vld [vmem:[#allocation31_spill] sm:$0xff]  ;;  %v6450_v18 = vld [vmem:[#allocation7 + $0x94] ss:$12 sps:$4 sm:$0xff]  }
 0xfe6   : > { %v4008_v36 = vpack.c.bf16 %v4001_v51, %v4000_v4  ;;  %v6693_v48 = vpop.eup %6692  ;;  %v4003_v12 = vmul.f32 %v6691_v46, %v7941_v45  ;;  %v8394_v4 = vld [vmem:[#allocation30_spill] sm:$0xff] }
 0xfe7   : > { %v4002_v55 = vmul.f32 %v6693_v48, %v7935_v19  ;;  %v6444_v46 = vld [vmem:[#allocation7 + $0x64] ss:$12 sps:$4 sm:$0xff]  }
 0xfe8   : > { %v3985_v34 = vpop.xlane.xlu1 %3984  ;;  %5852 = vmatprep.mubr.msk.bf16.mxu0 %vm2408_vm0, %v4008_v36  ;;  %v4130_v59 = vpop.permute.xlu0 %4129  ;;  %v6439_v36 = vld [vmem:[#allocation7 + $0x48] ss:$12 sps:$4 sm:$0xff]  }
 0xfe9   : > { %6696 = vrcp.f32 %v3985_v34  ;;  %v4009_v24 = vpack.c.bf16 %v4003_v12, %v4002_v55  ;;  %v8046_v3 = vsel %vm2408_vm0, %v8392_v33, %v4130_v59  ;;  %v8397_v34 = vld [vmem:[#allocation34_spill] sm:$0xff]  ;;  %v6453_v12 = vld [vmem:[#allocation7 + $0xac] ss:$12 sps:$4 sm:$0xff]  }
 0xfea   : > { %6698 = vrcp.f32 %v3991_v43  ;;  %v8393_v43 = vld [vmem:[#allocation32_spill] sm:$0xff] }
 0xfeb   : > { %6700 = vrcp.f32 %v3988_v35  ;;  %v6695_v61 = vpop.eup %6694  ;;  %v6438_v35 = vld [vmem:[#allocation7 + $0x34] ss:$12 sps:$4 sm:$0xff]   ;;  %v6468_v59 = vld [vmem:[#allocation7 + $0x124] ss:$12 sps:$4 sm:$0xff]  }
 0xfec   : > { %v4019_v0 = vpop.permute.xlu1 %4018  ;;  %v4004_v20 = vmul.f32 %v6695_v61, %v7955_v14  ;;  %v6433_v14 = vld [vmem:[#allocation7 + $0x18] ss:$12 sps:$4 sm:$0xff]   ;;  %v4132_v22 = vpop.permute.xlu0 %4131  ;;  %v6454_v55 = vld [vmem:[#allocation7 + $0xc0] ss:$12 sps:$4 sm:$0xff]  }
 0xfed   : > { %5846 = vmatprep.subr.bf16.mxu0 %v4019_v0  ;;  %v6478_v33 = vld [vmem:[#allocation7 + $0x180] ss:$12 sps:$4 sm:$0xff]  }
 0xfee   : > { %5847 = vmatpush3.bf16.msra.mxu0 %v4019_v0 }
 0xfef   : > { %5848 = vmatprep.subr.bf16.mxu0 %v4021_v53 }
 0xff0   : > { %v4114_v41 = vpop.permute.xlu1 %4113 }
 0xff1   : > { %v8019_v54 = vsel %vm2408_vm0, %v8383_v37, %v4114_v41  ;;  %v6442_v41 = vld [vmem:[#allocation7 + $0x60] ss:$12 sps:$4 sm:$0xff]  }
 0xff2   : > { %5849 = vmatpush3.bf16.msra.mxu0 %v4021_v53  ;;  %4869 = vmatmul.mubr.bf16.vlgmr.msra.gmra.mrb[104].mxu1 %v8019_v54  ;;  %v8400_v37 = vld [vmem:[#allocation29_spill] sm:$0xff] }
 0xff3   : > { %v6697_v29 = vpop.eup %6696  ;;  %5850 = vmatprep.subr.bf16.mxu0 %v4023_v56  ;;  %4876 = vmatprep.mubr.bf16.mxu1 %v8026_v16  ;;  %v8401_v61 = vpack.c.bf16 %v8399_v39, %v8400_v37 }
 0xff4   : > { %v4005_v11 = vmul.f32 %v6697_v29, %v7963_v7  ;;  %v4116_v25 = vpop.permute.xlu1 %4115  ;;  %v6699_v57 = vpop.eup %6698  ;;  %v8387_v7 = vld [vmem:[#allocation28_spill] sm:$0xff]  ;;  %v6448_v29 = vld [vmem:[#allocation7 + $0x90] ss:$12 sps:$4 sm:$0xff]  }
 0xff5   : > { %v6701_v45 = vpop.eup %6700  ;;  %v8389_v19 = vpack.c.bf16 %v8387_v7, %v8388_v50  ;;  %v4007_v53 = vmul.f32 %v6699_v57, %v7959_v44  ;;  %v8395_v44 = vpack.c.bf16 %v8393_v43, %v8394_v4  ;;  %v6463_v57 = vld [vmem:[#allocation7 + $0x108] ss:$12 sps:$4 sm:$0xff]   ;;  %v6469_v7 = vld [vmem:[#allocation7 + $0x138] ss:$12 sps:$4 sm:$0xff]   ;;  %v6492_v4 = vld [vmem:[#allocation7 + $0x1e0] ss:$12 sps:$4 sm:$0xff]  }
 0xff6   : > { %5851 = vmatpush3.bf16.msra.mxu0 %v4023_v56  ;;  %v4010_v17 = vpack.c.bf16 %v4005_v11, %v4004_v20  ;;  %v4006_v56 = vmul.f32 %v6701_v45, %v7951_v9  ;;  %v8396_v9 = vld [vmem:[#allocation36_spill] sm:$0xff]  ;;  %v6471_v45 = vld [vmem:[#allocation7 + $0x13c] ss:$12 sps:$4 sm:$0xff]  }
 0xff7   : > { %4690 = vmatprep.subr.bf16.mxu0 %v6432_v27  ;;  %v8039_v60 = vsel %vm2408_vm0, %v8389_v19, %v4116_v25  ;;  %v8398_v0 = vpack.c.bf16 %v8396_v9, %v8397_v34  ;;  %v6451_v27 = vld [vmem:[#allocation7 + $0xa8] ss:$12 sps:$4 sm:$0xff]   ;;  %v6456_v11 = vld [vmem:[#allocation7 + $0xc4] ss:$12 sps:$4 sm:$0xff]   ;;  %v6506_v34 = vld [vmem:[#allocation7 + $0x22c] ss:$12 sps:$4 sm:$0xff]  }
 0xff8   : > { %v4118_v38 = vpop.permute.xlu1 %4117  ;;  %v4011_v21 = vpack.c.bf16 %v4007_v53, %v4006_v56  ;;  %v6457_v20 = vld [vmem:[#allocation7 + $0xd8] ss:$12 sps:$4 sm:$0xff]   ;;  %v6460_v25 = vld [vmem:[#allocation7 + $0xf0] ss:$12 sps:$4 sm:$0xff]   ;;  %v6474_v50 = vld [vmem:[#allocation7 + $0x154] ss:$12 sps:$4 sm:$0xff]  }
 0xff9   : > { %5853 = vmatmul.mubr.msk.bf16.vlgmr.msra.gmra.mrb[88].mxu0 %vm2408_vm0, %v4009_v24  ;;  %v4155_v51 = vsel %vm2408_vm0, %v8395_v44, %v4118_v38  ;;  %v4175_v42 = vsel %vm2408_vm0, %v8398_v0, %v4132_v22  ;;  %v6462_v24 = vld [vmem:[#allocation7 + $0xf4] ss:$12 sps:$4 sm:$0xff]   ;;  %v6472_v19 = vld [vmem:[#allocation7 + $0x150] ss:$12 sps:$4 sm:$0xff]   ;;  %v6490_v38 = vld [vmem:[#allocation7 + $0x1cc] ss:$12 sps:$4 sm:$0xff]  }
 0xffa   : > { %5856 = vmatprep.mubr.msk.bf16.mxu0 %vm2408_vm0, %v4010_v17  ;;  %4691 = vmatpush1.bf16.msra.mxu0 %v6430_v62  ;;  %v6459_v62 = vld [vmem:[#allocation7 + $0xdc] ss:$12 sps:$4 sm:$0xff]   ;;  %v6466_v17 = vld [vmem:[#allocation7 + $0x120] ss:$12 sps:$4 sm:$0xff]   ;;  %v6480_v53 = vld [vmem:[#allocation7 + $0x184] ss:$12 sps:$4 sm:$0xff]  }
 0xffb   : > { %4877 = vmatmul.mubr.bf16.gmra.mrb[108].mxu1 %v8039_v60  ;;  %4692 = vmatprep.subr.bf16.mxu0 %v6435_v47  ;;  %v6465_v47 = vld [vmem:[#allocation7 + $0x10c] ss:$12 sps:$4 sm:$0xff]   ;;  %v8070_v56 = vld [vmem:[#allocation7 + $0x188] ss:$12 sps:$4 sm:$0xff]   ;;  %v6494_v22 = vld [vmem:[#allocation7 + $0x1e4] ss:$12 sps:$4 sm:$0xff]  }
 0xffc   : > { %4884 = vmatprep.mubr.bf16.mxu1 %v8046_v3  ;;  %v4120_v48 = vpop.permute.xlu1 %4119  ;;  %5884 = vmatprep.subr.bf16.mxu1 %v8070_v56  ;;  %v8085_v43 = vld [vmem:[#allocation7 + $0x1e8] ss:$12 sps:$4 sm:$0xff]   ;;  %v6500_v9 = vld [vmem:[#allocation7 + $0x210] ss:$12 sps:$4 sm:$0xff]  }
 0xffd   : > { %v4159_v63 = vsel %vm2408_vm0, %v8401_v61, %v4120_v48  ;;  %5892 = vmatpush3.bf16.msra.mxu1 %v8070_v56  ;;  %v6498_v44 = vld [vmem:[#allocation7 + $0x1fc] ss:$12 sps:$4 sm:$0xff]   ;;  %v8095_v48 = vld [vmem:[#allocation7 + $0x218] ss:$12 sps:$4 sm:$0xff]  }
 0xffe   : > { %4693 = vmatpush1.bf16.msra.mxu0 %v6433_v14  ;;  %v6477_v14 = vld [vmem:[#allocation7 + $0x16c] ss:$12 sps:$4 sm:$0xff]   ;;  %v6504_v0 = vld [vmem:[#allocation7 + $0x228] ss:$12 sps:$4 sm:$0xff]  }
 0xfff   : > { %4694 = vmatprep.subr.bf16.mxu0 %v6438_v35  ;;  %v6483_v35 = vld [vmem:[#allocation7 + $0x19c] ss:$12 sps:$4 sm:$0xff]  }
0x1001   : > { %5857 = vmatmul.mubr.msk.bf16.gmra.mrb[92].mxu0 %vm2408_vm0, %v4011_v21  ;;  %v8081_v21 = vld [vmem:[#allocation7 + $0x1d0] ss:$12 sps:$4 sm:$0xff]  }
0x1002   : > { %4695 = vmatpush1.bf16.msra.mxu0 %v6436_v5  ;;  %4722 = vmatprep.mubr.bf16.mxu0 %v8009_v26  ;;  %v6447_v26 = vld [vmem:[#allocation7 + $0x7c] ss:$12 sps:$4 sm:$0xff]   ;;  %v6481_v5 = vld [vmem:[#allocation7 + $0x198] ss:$12 sps:$4 sm:$0xff]  }
0x1003   : > { %4885 = vmatmul.mubr.bf16.gmra.mrb[112].mxu1 %v4155_v51  ;;  %4696 = vmatprep.subr.bf16.mxu0 %v6441_v32  ;;  %v6488_v32 = vld [vmem:[#allocation7 + $0x1c8] ss:$12 sps:$4 sm:$0xff]  }
0x1004   : > { %4892 = vmatprep.mubr.bf16.mxu1 %v4175_v42 }
0x1006   : > { %4697 = vmatpush1.bf16.msra.mxu0 %v6439_v36  ;;  %v6502_v36 = vld [vmem:[#allocation7 + $0x214] ss:$12 sps:$4 sm:$0xff]  }
0x1007   : > { %4698 = vmatprep.subr.bf16.mxu0 %v6444_v46 }
0x100a   : > { %4699 = vmatpush1.bf16.msra.mxu0 %v6442_v41 }
0x100b   : > { %4893 = vmatmul.mubr.bf16.gmra.mrb[116].mxu1 %v4159_v63  ;;  %4700 = vmatprep.subr.bf16.mxu0 %v6447_v26 }
0x100e   : > { %4701 = vmatpush1.bf16.msra.mxu0 %v6445_v6 }
0x100f   : > { %4702 = vmatprep.subr.bf16.mxu0 %v6450_v18 }
0x1012   : > { %4703 = vmatpush1.bf16.msra.mxu0 %v6448_v29 }
0x1013   : > { %4704 = vmatprep.subr.bf16.mxu0 %v6453_v12 }
0x1016   : > { %4705 = vmatpush1.bf16.msra.mxu0 %v6451_v27 }
0x1017   : > { %4706 = vmatprep.subr.bf16.mxu0 %v6456_v11 }
0x101a   : > { %4707 = vmatpush1.bf16.msra.mxu0 %v6454_v55 }
0x101b   : > { %4708 = vmatprep.subr.bf16.mxu0 %v6459_v62 }
0x101e   : > { %4709 = vmatpush1.bf16.msra.mxu0 %v6457_v20 }
0x101f   : > { %4710 = vmatprep.subr.bf16.mxu0 %v6462_v24 }
0x1022   : > { %4711 = vmatpush1.bf16.msra.mxu0 %v6460_v25 }
0x1023   : > { %4712 = vmatprep.subr.bf16.mxu0 %v6465_v47 }
0x1026   : > { %4713 = vmatpush1.bf16.msra.mxu0 %v6463_v57 }
0x1027   : > { %4714 = vmatprep.subr.bf16.mxu0 %v6468_v59 }
0x102a   : > { %4715 = vmatpush1.bf16.msra.mxu0 %v6466_v17 }
0x102b   : > { %4716 = vmatprep.subr.bf16.mxu0 %v6471_v45 }
0x102e   : > { %4717 = vmatpush1.bf16.msra.mxu0 %v6469_v7 }
0x102f   : > { %4718 = vmatprep.subr.bf16.mxu0 %v6474_v50 }
0x1032   : > { %4719 = vmatpush1.bf16.msra.mxu0 %v6472_v19 }
0x1033   : > { %4720 = vmatprep.subr.bf16.mxu0 %v6477_v14 }
0x1036   : > { %4721 = vmatpush1.bf16.msra.mxu0 %v6475_v31 }
0x1037   : > { %4763 = vmatprep.subr.bf16.mxu0 %v6480_v53 }
0x1039   : > { %4723 = vmatmul.mubr.bf16.vlgmr.msra.gmra.mrb[96].mxu0 %v8019_v54  ;;  %v8072_v54 = vld [vmem:[#allocation7 + $0x1a0] ss:$12 sps:$4 sm:$0xff]  }
0x103a   : > { %4732 = vmatprep.mubr.bf16.mxu0 %v8026_v16  ;;  %4764 = vmatpush1.bf16.msra.mxu0 %v6478_v33  ;;  %v6486_v16 = vld [vmem:[#allocation7 + $0x1b4] ss:$12 sps:$4 sm:$0xff]  }
0x103b   : > { %4765 = vmatprep.subr.bf16.mxu0 %v6483_v35  ;;  %5885 = vmatprep.subr.bf16.mxu1 %v8072_v54 }
0x103c   : > { %5893 = vmatpush3.bf16.msra.mxu1 %v8072_v54 }
0x103e   : > { %4766 = vmatpush1.bf16.msra.mxu0 %v6481_v5 }
0x103f   : > { %4767 = vmatprep.subr.bf16.mxu0 %v6486_v16 }
0x1041   : > { %4733 = vmatmul.mubr.bf16.gmra.mrb[100].mxu0 %v8039_v60  ;;  %v8077_v60 = vld [vmem:[#allocation7 + $0x1b8] ss:$12 sps:$4 sm:$0xff]  }
0x1042   : > { %4742 = vmatprep.mubr.bf16.mxu0 %v8046_v3  ;;  %v6484_v3 = vld [vmem:[#allocation7 + $0x1b0] ss:$12 sps:$4 sm:$0xff]   ;;  %5886 = vmatprep.subr.bf16.mxu1 %v8077_v60 }
0x1043   : > { %4768 = vmatpush1.bf16.msra.mxu0 %v6484_v3  ;;  %5894 = vmatpush3.bf16.msra.mxu1 %v8077_v60 }
0x1044   : > { %4769 = vmatprep.subr.bf16.mxu0 %v6490_v38  ;;  %5887 = vmatprep.subr.bf16.mxu1 %v8081_v21 }
0x1047   : > { %4770 = vmatpush1.bf16.msra.mxu0 %v6488_v32  ;;  %5895 = vmatpush3.bf16.msra.mxu1 %v8081_v21 }
0x1048   : > { %4771 = vmatprep.subr.bf16.mxu0 %v6494_v22  ;;  %5888 = vmatprep.subr.bf16.mxu1 %v8085_v43 }
0x1049   : > { %4743 = vmatmul.mubr.bf16.gmra.mrb[104].mxu0 %v4155_v51  ;;  %v6496_v51 = vld [vmem:[#allocation7 + $0x1f8] ss:$12 sps:$4 sm:$0xff]  }
0x104a   : > { %4752 = vmatprep.mubr.bf16.mxu0 %v4175_v42  ;;  %v8091_v42 = vld [vmem:[#allocation7 + $0x200] ss:$12 sps:$4 sm:$0xff]  }
0x104b   : > { %4772 = vmatpush1.bf16.msra.mxu0 %v6492_v4  ;;  %5896 = vmatpush3.bf16.msra.mxu1 %v8085_v43 }
0x104c   : > { %4773 = vmatprep.subr.bf16.mxu0 %v6498_v44  ;;  %5889 = vmatprep.subr.bf16.mxu1 %v8091_v42 }
0x104f   : > { %4774 = vmatpush1.bf16.msra.mxu0 %v6496_v51  ;;  %5897 = vmatpush3.bf16.msra.mxu1 %v8091_v42 }
0x1050   : > { %4775 = vmatprep.subr.bf16.mxu0 %v6502_v36  ;;  %5890 = vmatprep.subr.bf16.mxu1 %v8095_v48 }
0x1051   : > { %4753 = vmatmul.mubr.bf16.gmra.mrb[108].mxu0 %v4159_v63  ;;  %v8103_v63 = vld [vmem:[#allocation7 + $0x230] ss:$12 sps:$4 sm:$0xff]  }
0x1052   : > { %4795 = vmatprep.mubr.bf16.mxu0 %v8402_v52 }
0x1053   : > { %4776 = vmatpush1.bf16.msra.mxu0 %v6500_v9  ;;  %5898 = vmatpush3.bf16.msra.mxu1 %v8095_v48 }
0x1054   : > { %4777 = vmatprep.subr.bf16.mxu0 %v6506_v34  ;;  %5891 = vmatprep.subr.bf16.mxu1 %v8103_v63 }
0x1057   : > { %4778 = vmatpush1.bf16.msra.mxu0 %v6504_v0  ;;  %5899 = vmatpush3.bf16.msra.mxu1 %v8103_v63 }
0x1058   : > { %5860 = vmatprep.subr.bf16.mxu0 %v8070_v56 }
0x10c5   : > { %v5608_v46 = vpop.f32.mrb[104].mxu1 }
0x10c6   : > { %v5609_v41 = vpop.f32.mrb[105].mxu1 }
0x10c7   : > { %v8097_v26 = vadd.f32 %v5609_v41, %v5608_v46  ;;  %v5611_v39 = vpop.f32.mrb[106].mxu1 }
0x10c8   : > { %v5612_v37 = vpop.f32.mrb[107].mxu1 }
0x10c9   : > { %v8100_v61 = vadd.f32 %v5612_v37, %v5611_v39 }
0x10cc   : > { %v5854_v6 = vpop.f32.mrb[88].mxu0 }
0x10cd   : > { %v4074_v18 = vpop.f32.mrb[89].mxu0 }
0x10ce   : > { %v5614_v29 = vpop.f32.mrb[108].mxu1  ;;  %v5855_v12 = vpop.f32.mrb[90].mxu0 }
0x10cf   : > { %v4106_v27 = vpack.c.bf16 %v5855_v12, %v5854_v6  ;;  %v5615_v11 = vpop.f32.mrb[109].mxu1  ;;  %v4077_v55 = vpop.f32.mrb[91].mxu0 }
0x10d0   : > { %v8107_v62 = vadd.f32 %v5615_v11, %v5614_v29  ;;  %v4105_v20 = vpack.c.bf16 %v4077_v55, %v4074_v18  ;;  %v5617_v24 = vpop.f32.mrb[110].mxu1 }
0x10d1   : > { %v5618_v25 = vpop.f32.mrb[111].mxu1  ;;  %4139 = vrot.lane.b32.xlu1 %v4106_v27, %s6871_s21 }
0x10d2   : > { %v8110_v47 = vadd.f32 %v5618_v25, %v5617_v24  ;;  %4137 = vrot.lane.b32.xlu0 %v4105_v20, %s6871_s21 }
0x10d4   : > { %v5858_v57 = vpop.f32.mrb[92].mxu0 }
0x10d5   : > { %v4090_v59 = vpop.f32.mrb[93].mxu0 }
0x10d6   : > { %v5620_v17 = vpop.f32.mrb[112].mxu1  ;;  %v5859_v45 = vpop.f32.mrb[94].mxu0 }
0x10d7   : > { %v4108_v7 = vpack.c.bf16 %v5859_v45, %v5858_v57  ;;  %v5621_v50 = vpop.f32.mrb[113].mxu1  ;;  %v4093_v19 = vpop.f32.mrb[95].mxu0 }
0x10d8   : > { %v8113_v14 = vadd.f32 %v5621_v50, %v5620_v17  ;;  %v4107_v31 = vpack.c.bf16 %v4093_v19, %v4090_v59  ;;  %v5623_v33 = vpop.f32.mrb[114].mxu1 }
0x10d9   : > { %v5624_v53 = vpop.f32.mrb[115].mxu1  ;;  %4143 = vrot.lane.b32.xlu1 %v4108_v7, %s6871_s21 }
0x10da   : > { %v8116_v35 = vadd.f32 %v5624_v53, %v5623_v33  ;;  %4141 = vrot.lane.b32.xlu0 %v4107_v31, %s6871_s21 }
0x10de   : > { %v5626_v5 = vpop.f32.mrb[116].mxu1 }
0x10df   : > { %v5627_v16 = vpop.f32.mrb[117].mxu1 }
0x10e0   : > { %v5628_v3 = vadd.f32 %v5627_v16, %v5626_v5  ;;  %v5629_v38 = vpop.f32.mrb[118].mxu1 }
0x10e1   : > { %v5630_v32 = vpop.f32.mrb[119].mxu1 }
0x10e2   : > { %v8119_v22 = vadd.f32 %v5630_v32, %v5629_v38 }
0x1143   : > { %v4140_v51 = vpop.permute.xlu1 %4139 }
0x1144   : > { %v4138_v4 = vpop.permute.xlu0 %4137  ;;  %v4183_v49 = vsel %vm2408_vm0, %v3804_v15, %v4140_v51  ;;  %v4297_v15 = vsub.s32 1, %v8403_v40 }
0x1145   : > { %v4179_v44 = vsel %vm2408_vm0, %v3803_v1, %v4138_v4 }
0x1146   : > { %4796 = vmatmul.mubr.bf16.vlgmr.msra.gmra.mrb[96].mxu0 %v4179_v44  ;;  %v8162_v30 = vrot.slane %v4289_v2, %v4297_v15 }
0x1147   : > { %5861 = vmatpush3.bf16.msra.mxu0 %v8070_v56  ;;  %4805 = vmatprep.mubr.bf16.mxu0 %v8402_v52 }
0x1148   : > { %5862 = vmatprep.subr.bf16.mxu0 %v8072_v54 }
0x114b   : > { %v4144_v36 = vpop.permute.xlu1 %4143  ;;  %5863 = vmatpush3.bf16.msra.mxu0 %v8072_v54  ;;  %v4301_v54 = vsub.s32 2, %v8403_v40 }
0x114c   : > { %v4142_v9 = vpop.permute.xlu0 %4141  ;;  %5864 = vmatprep.subr.bf16.mxu0 %v8077_v60  ;;  %v4191_v1 = vsel %vm2408_vm0, %v3806_v23, %v4144_v36 }
0x114d   : > { %v4187_v28 = vsel %vm2408_vm0, %v3805_v13, %v4142_v9  ;;  %v8177_v34 = vrot.slane %v4289_v2, %v4301_v54 }
0x114e   : > { %4806 = vmatmul.mubr.bf16.gmra.mrb[100].mxu0 %v4183_v49  ;;  %5880 = vmatprep.mubr.bf16.mxu1 %v4187_v28 }
0x114f   : > { %5865 = vmatpush3.bf16.msra.mxu0 %v8077_v60  ;;  %5881 = vmatmul.mubr.bf16.vlgmr.msra.gmra.mrb[120].mxu1 %v4191_v1  ;;  %v4887_v39 = vadd.f32 %v8113_v14, %v8177_v34  ;;  %v4898_v29 = vadd.f32 %v8119_v22, %v8177_v34  ;;  %v4890_v20 = vadd.f32 %v8116_v35, %v8177_v34 }
0x1150   : > { %5866 = vmatprep.subr.bf16.mxu0 %v8081_v21  ;;  %4815 = vmatprep.mubr.bf16.mxu0 %v8402_v52  ;;  %v4879_v4 = vadd.f32 %v8107_v62, %v8177_v34  ;;  %v4871_v51 = vadd.f32 %v8097_v26, %v8177_v34  ;;  %v4874_v62 = vadd.f32 %v8100_v61, %v8177_v34 }
0x1153   : > { %5867 = vmatpush3.bf16.msra.mxu0 %v8081_v21 }
0x1154   : > { %5868 = vmatprep.subr.bf16.mxu0 %v8085_v43 }
0x1156   : > { %4816 = vmatmul.mubr.bf16.gmra.mrb[104].mxu0 %v4187_v28 }
0x1157   : > { %5869 = vmatpush3.bf16.msra.mxu0 %v8085_v43  ;;  %4825 = vmatprep.mubr.bf16.mxu0 %v8402_v52 }
0x1158   : > { %5870 = vmatprep.subr.bf16.mxu0 %v8091_v42 }
0x115b   : > { %5871 = vmatpush3.bf16.msra.mxu0 %v8091_v42  ;;  %v4895_v42 = vadd.f32 %v5628_v3, %v8177_v34 }
0x115c   : > { %5872 = vmatprep.subr.bf16.mxu0 %v8095_v48 }
0x115e   : > { %4826 = vmatmul.mubr.bf16.gmra.mrb[108].mxu0 %v4191_v1 }
0x115f   : > { %5873 = vmatpush3.bf16.msra.mxu0 %v8095_v48  ;;  %5876 = vmatprep.mubr.bf16.mxu0 %v4179_v44 }
0x1160   : > { %5874 = vmatprep.subr.bf16.mxu0 %v8103_v63 }
0x1163   : > { %5875 = vmatpush3.bf16.msra.mxu0 %v8103_v63 }
0x1166   : > { %5877 = vmatmul.mubr.bf16.vlgmr.msra.gmra.mrb[112].mxu0 %v4183_v49  ;;  %v4882_v49 = vadd.f32 %v8110_v47, %v8177_v34 }
0x1219   : > { %v4797_v23 = vpop.f32.mrb[96].mxu0 }
0x121a   : > { %v5916_v10 = vadd.f32 %v4797_v23, %v8160_v8  ;;  %v4799_v13 = vpop.f32.mrb[97].mxu0 }
0x121b   : > { %v5917_v52 = vadd.f32 %v4799_v13, %v8162_v30  ;;  %v4801_v56 = vpop.f32.mrb[98].mxu0 }
0x121c   : > { %4966 = vst [vmem:[%s8169_s5] sm:$0xff] %v5916_v10  ;;  %v5918_v60 = vadd.f32 %v4801_v56, %v8160_v8  ;;  %v4803_v21 = vpop.f32.mrb[99].mxu0 }
0x121d   : > { %4967 = vst [vmem:[%s8169_s5 + $0x8] sm:$0xff] %v5917_v52  ;;  %v5919_v43 = vadd.f32 %v4803_v21, %v8162_v30 }
0x121e   : > { %4969 = vst [vmem:[%s8169_s5 + $0x18] sm:$0xff] %v5918_v60 }
0x121f   : > { %4970 = vst [vmem:[%s8169_s5 + $0x20] sm:$0xff] %v5919_v43 }
0x1221   : > { %v4807_v0 = vpop.f32.mrb[100].mxu0 }
0x1222   : > { %v5920_v46 = vadd.f32 %v4807_v0, %v8160_v8  ;;  %v4809_v41 = vpop.f32.mrb[101].mxu0  ;;  %v5882_v48 = vpop.f32.mrb[120].mxu1 }
0x1223   : > { %v5921_v37 = vadd.f32 %v4809_v41, %v8162_v30  ;;  %v4960_v63 = vadd.f32 %v5882_v48, %v4895_v42  ;;  %v4811_v6 = vpop.f32.mrb[102].mxu0  ;;  %v4951_v18 = vpop.f32.mrb[121].mxu1 }
0x1224   : > { %4972 = vst [vmem:[%s8169_s5 + $0x30] sm:$0xff] %v5920_v46  ;;  %v5922_v12 = vadd.f32 %v4811_v6, %v8160_v8  ;;  %v4952_v27 = vadd.f32 %v4951_v18, %v4887_v39  ;;  %v4813_v11 = vpop.f32.mrb[103].mxu0  ;;  %v5883_v55 = vpop.f32.mrb[122].mxu1 }
0x1225   : > { %4973 = vst [vmem:[%s8169_s5 + $0x38] sm:$0xff] %v5921_v37  ;;  %4986 = vst [vmem:[%s8169_s5 + $0xa0] sm:$0xff] %v4960_v63  ;;  %v5923_v24 = vadd.f32 %v4813_v11, %v8162_v30  ;;  %v4963_v25 = vadd.f32 %v5883_v55, %v4898_v29  ;;  %v4954_v57 = vpop.f32.mrb[123].mxu1 }
0x1226   : > { %4975 = vst [vmem:[%s8169_s5 + $0x48] sm:$0xff] %v5922_v12  ;;  %4980 = vst [vmem:[%s8169_s5 + $0x70] sm:$0xff] %v4952_v27  ;;  %v4955_v59 = vadd.f32 %v4954_v57, %v4890_v20 }
0x1227   : > { %4976 = vst [vmem:[%s8169_s5 + $0x50] sm:$0xff] %v5923_v24  ;;  %4989 = vst [vmem:[%s8169_s5 + $0xb8] sm:$0xff] %v4963_v25 }
0x1228   : > { %4983 = vst [vmem:[%s8169_s5 + $0x88] sm:$0xff] %v4955_v59 }
0x1229   : > { %v4817_v17 = vpop.f32.mrb[104].mxu0 }
0x122a   : > { %v5924_v45 = vadd.f32 %v4817_v17, %v8160_v8  ;;  %v4819_v7 = vpop.f32.mrb[105].mxu0 }
0x122b   : > { %v5925_v50 = vadd.f32 %v4819_v7, %v8162_v30  ;;  %v4821_v19 = vpop.f32.mrb[106].mxu0 }
0x122c   : > { %4978 = vst [vmem:[%s8169_s5 + $0x60] sm:$0xff] %v5924_v45  ;;  %v5926_v14 = vadd.f32 %v4821_v19, %v8160_v8  ;;  %v4823_v31 = vpop.f32.mrb[107].mxu0 }
0x122d   : > { %4979 = vst [vmem:[%s8169_s5 + $0x68] sm:$0xff] %v5925_v50  ;;  %v5927_v33 = vadd.f32 %v4823_v31, %v8162_v30 }
0x122e   : > { %4981 = vst [vmem:[%s8169_s5 + $0x78] sm:$0xff] %v5926_v14 }
0x122f   : > { %4982 = vst [vmem:[%s8169_s5 + $0x80] sm:$0xff] %v5927_v33 }
0x1231   : > { %v4827_v53 = vpop.f32.mrb[108].mxu0 }
0x1232   : > { %v5928_v35 = vadd.f32 %v4827_v53, %v8160_v8  ;;  %v4829_v5 = vpop.f32.mrb[109].mxu0 }
0x1233   : > { %v5929_v16 = vadd.f32 %v4829_v5, %v8162_v30  ;;  %v4831_v3 = vpop.f32.mrb[110].mxu0 }
0x1234   : > { %4984 = vst [vmem:[%s8169_s5 + $0x90] sm:$0xff] %v5928_v35  ;;  %v5930_v38 = vadd.f32 %v4831_v3, %v8160_v8  ;;  %v4833_v32 = vpop.f32.mrb[111].mxu0 }
0x1235   : > { %4985 = vst [vmem:[%s8169_s5 + $0x98] sm:$0xff] %v5929_v16  ;;  %v5931_v22 = vadd.f32 %v4833_v32, %v8162_v30 }
0x1236   : > { %4987 = vst [vmem:[%s8169_s5 + $0xa8] sm:$0xff] %v5930_v38 }
0x1237   : > { %4988 = vst [vmem:[%s8169_s5 + $0xb0] sm:$0xff] %v5931_v22 }
0x1239   : > { %v5878_v44 = vpop.f32.mrb[112].mxu0 }
0x123a   : > { %v4944_v36 = vadd.f32 %v5878_v44, %v4879_v4  ;;  %v4935_v9 = vpop.f32.mrb[113].mxu0 }
0x123b   : > { %v4936_v28 = vadd.f32 %v4935_v9, %v4871_v51  ;;  %v5879_v1 = vpop.f32.mrb[114].mxu0 }
0x123c   : > { %4974 = vst [vmem:[%s8169_s5 + $0x40] sm:$0xff] %v4944_v36  ;;  %v4947_v40 = vadd.f32 %v5879_v1, %v4882_v49  ;;  %v4938_v58 = vpop.f32.mrb[115].mxu0 }
0x123d   : > { %4968 = vst [vmem:[%s8169_s5 + $0x10] sm:$0xff] %v4936_v28  ;;  %v4939_v26 = vadd.f32 %v4938_v58, %v4874_v62 }
0x123e   : > { %4977 = vst [vmem:[%s8169_s5 + $0x58] sm:$0xff] %v4947_v40 }
0x123f   : > { %4971 = vst [vmem:[%s8169_s5 + $0x28] sm:$0xff] %v4939_v26 }
0x1240   : > { %6801 = shalt.err (!%p6798_p2)
}
0x1241   : > { %s6802_s10 = scalar_lea.hbm %s8228_s26, 3072  ;;  %s6806_s21 = scalar_lea.hbm %s8281_s4, 6144 }
0x1242   : > { %p6803_p13 = scmp.ne.s32.totalorder %s8228_s26, %s6802_s10  ;;  %p6807_p4 = scmp.lt.u32.totalorder %s8228_s26, %s8281_s4 }
0x1243   : > { %p6808_p7 = scmp.lt.u32.totalorder %s6806_s21, %s6802_s10  ;;  %p6810_p11 = scmp.lt.u32.totalorder %s6802_s10, %s8228_s26 }
0x1244   : > { %p6804_p6 = pnand %p6803_p13, %p8404_p0 }
0x1245   : > { %p6809_p8 = por %p6808_p7, %p6807_p4 }
0x1246   : > { %p6805_p10 = pneg %p6804_p6 }
0x1247   : > { %p6811_p1 = por %p6810_p11, %p6809_p8 }
0x1249   : > { %p6812_p3 = pnand %p6811_p1, %p6805_p10 }
0x124b   : > { %6815 = shalt.err (!%p6812_p3)
}
0x124c   : > { %s6873_s5 = smov 384   ;;  %s6874_s25 = smov 24  }
0x124d   : > { %6034 = dma.vmem_to_hbm [thread:$0]  (%p8404_p0), %s8230_s7, 3072, %s8228_s26, %s4991_s24, %s6873_s5, %s6873_s5, %s6874_s25  }
0x124e PF: > { %s5019_s19 = sand.u32 1, %s6846_s15   ;;  %p8405_p5 = scmp.ne.s32.totalorder %s8316_s22, 0 }
0x124f   : > { %p8406_p9 = scmp.ge.s32.totalorder %s6858_s18, 2  ;;  %s5020_s28 = scalar_lea.sflag [#allocation4], %s5019_s19 }
0x1251   : > { %p6048_p12 = pnand %p8406_p9, %p8405_p5 }
0x1253   : > { %6841 = dma.done.wait (!%p6048_p12), %s5020_s28, 3072  }
0x1254   : > { %6843 = vsyncadd (!%p6048_p12), %s5020_s28, 4294964224  ;;  %p18_p2 = scmp.ge.s32.totalorder %s7010_s11, 4   ;;  %s8407_s15 = smov %s6850_s16 }
0x1255   : > { %s8408_s16 = smov %s6854_s17  ;;  %s8409_s17 = smov %s7019_s14 }
0x1256   : > { %s8410_s18 = smov %s7010_s11  ;;  %20 = sbr.rel (!%p18_p2) target bundleno = 6 (0x6), region = 89 }
0x125d   :  { %5025 = vsyncpa [#allocation3], 1 }
0x125e   :  { %5027 = vsyncpa [#allocation3 + $0x1], 1 }
0x125f   :  { %5028 = vsyncpa [#allocation6], 1 }
0x1260   :  { %5029 = vsyncpa [#allocation4], 1 }
0x1261   :  { %5031 = vsyncpa [#allocation4 + $0x1], 1 }

</bundles_post_ra>
